<compile_context>
chip_gen: v6e
topology: v6e:2x2x1
jax: 0.10.0
libtpu: 0.0.40
codegen_flags: <defaults>
</compile_context>

<pallas_src>
import functools

import jax
import jax.numpy as jnp
import numpy as np
from jax import lax
from jax.experimental import pallas as pl
from jax.experimental.pallas import tpu as pltpu

LANES = 128
SUBLANES = 8
LPAD = 8          # left spatial halo padding -> aligned residual / dx=1 slices


def _round_up(a, m):
    return (a + m - 1) // m * m


def _vmem_capacity_bytes():
    """Physical VMEM per TensorCore; conservative 64 MiB (v7x-sized) fallback."""
    try:
        info = pltpu.get_tpu_info()
        cap = getattr(info, "vmem_capacity_bytes", None)
        if cap:
            return int(cap)
    except Exception:
        pass
    return 64 * 1024 * 1024


# ------------------------------- kernel --------------------------------------

def _resblock_kernel(x_top_ref, x_mid_ref, x_bot_ref,
                     s1_ref, b1_ref, w1_ref, b2_ref, w2_ref, b3_ref, w3_ref,
                     *rest, H, W, TH, has_downsample, fuse_taps):
    if has_downsample:
        sd_ref, bd_ref, wd_ref, out_ref, acc_ref = rest
    else:
        out_ref, acc_ref = rest

    TH2 = TH + 2
    Wp = x_mid_ref.shape[1]
    Cpi = x_mid_ref.shape[2]
    Cph = w1_ref.shape[1]
    Cpo = w3_ref.shape[1]
    cdt = w1_ref.dtype                       # matmul operand dtype (bf16 or f32)

    t = pl.program_id(1)                     # H-tile index

    # ---- assemble the (TH+2)-row window from the three blocked inputs -------
    xw = jnp.concatenate([x_top_ref[...], x_mid_ref[...], x_bot_ref[...]],
                         axis=0)                              # (TH2, Wp, Cpi) f32

    # ---- stage 1: BN1 + ReLU -> conv1 (1x1, BN2 scale folded) + bias + ReLU -
    h = jnp.maximum(xw * s1_ref[...] + b1_ref[...], 0.0)
    h = jnp.dot(h.reshape(TH2 * Wp, Cpi).astype(cdt), w1_ref[...],
                preferred_element_type=jnp.float32)           # (TH2*Wp, Cph)
    h = jnp.maximum(h + b2_ref[...], 0.0).reshape(TH2, Wp, Cph)

    # ---- zero the ring so conv2 sees exact padding=1.  This also kills the
    #      clamped out-of-image halo rows and the W/lane alignment padding. ---
    rows = lax.broadcasted_iota(jnp.int32, (TH2, Wp, 1), 0) + t * TH
    cols = lax.broadcasted_iota(jnp.int32, (TH2, Wp, 1), 1)
    valid = (rows >= 1) & (rows <= H) & (cols >= LPAD) & (cols < LPAD + W)
    h = jnp.where(valid, h, 0.0).astype(cdt)

    # ---- conv2: 3x3 stride 1 pad 1 (BN3 scale folded), fp32 VMEM accumulator -
    for dx in range(3):
        c0 = LPAD - 1 + dx                   # dx=1 is a sublane-aligned slice
        hs = h[:, c0:c0 + W, :].reshape(TH2 * W, Cph)
        if fuse_taps:
            # K = 3*Cph: fills the 256-deep MXU on v6e/v7x.
            a = jnp.concatenate(
                [hs[dy * W:(dy + TH) * W, :] for dy in range(3)], axis=1)
            p = jnp.dot(a, w2_ref[dx], preferred_element_type=jnp.float32)
            if dx == 0:
                acc_ref[...] = p
            else:
                acc_ref[...] += p
        else:
            for dy in range(3):
                p = jnp.dot(hs[dy * W:(dy + TH) * W, :], w2_ref[dy, dx],
                            preferred_element_type=jnp.float32)
                if dx == 0 and dy == 0:
                    acc_ref[...] = p
                else:
                    acc_ref[...] += p

    h2 = jnp.maximum(acc_ref[...] + b3_ref[...], 0.0)          # (TH*W, Cph)

    # ---- conv3 (1x1) ---------------------------------------------------------
    out = jnp.dot(h2.astype(cdt), w3_ref[...],
                  preferred_element_type=jnp.float32)          # (TH*W, Cpo)

    # ---- residual path (LPAD is a multiple of 8 -> aligned slice) -----------
    xr = x_mid_ref[:, LPAD:LPAD + W, :]                        # (TH, W, Cpi)
    if has_downsample:
        r = jnp.maximum(xr * sd_ref[...] + bd_ref[...], 0.0)
        r = jnp.dot(r.reshape(TH * W, Cpi).astype(cdt), wd_ref[...],
                    preferred_element_type=jnp.float32)        # (TH*W, Cpo)
    else:
        r = xr.reshape(TH * W, Cpi)                            # Cpi == Cpo here

    out_ref[...] = (out + r).reshape(TH, W, Cpo).astype(out_ref.dtype)


# ------------------------------- wrapper --------------------------------------

def resblock_pallas(x, params, *, tile_h=32, compute_dtype=jnp.bfloat16,
                    fuse_conv2_taps=False, vmem_budget_bytes=None):
    """x: NHWC float32.  params = (s1,b1,w1,s2,b2,w2,s3,b3,w3,sd,bd,wd),
    scales/biases 1-D per-channel (inference-mode BN already folded), conv
    weights in matmul form (1x1 -> (Cin,Cout), 3x3 -> HWIO).  sd/bd/wd may be
    None when feat_in == feat_out (identity residual)."""
    (s1, b1, w1, s2, b2, w2, s3, b3, w3, sd, bd, wd) = params
    has_ds = wd is not None

    N, H, W, Cin = x.shape
    Chalf = w1.shape[1]
    Cout = w3.shape[1]
    if not has_ds:
        assert Cin == Cout, "identity residual requires feat_in == feat_out"

    Cpi = _round_up(Cin, LANES)
    Cph = _round_up(Chalf, LANES)
    Cpo = _round_up(Cout, LANES)
    Wp = _round_up(W + LPAD + 1, SUBLANES)
    cdt_bytes = jnp.dtype(compute_dtype).itemsize

    # ---- per-generation VMEM budget & H-tile selection -----------------------
    cap = _vmem_capacity_bytes()             # 128 MiB v5e/v6e, 64 MiB v7x
    budget = vmem_budget_bytes or cap // 3   # per-block data budget

    def est(th):                             # rough per-block VMEM footprint
        th2 = th + 2
        xb = th2 * Wp * Cpi * 4 * 2                         # x window, dbl-buffered
        outb = th * W * Cpo * 4 * 2                         # output, dbl-buffered
        wts = (Cpi * Cph + 9 * Cph * Cph + Cph * Cpo +
               (Cpi * Cpo if has_ds else 0)) * cdt_bytes
        hbuf = th2 * Wp * Cph * (4 + cdt_bytes)             # conv1 out + cast copy
        acc = th * W * Cph * 4                              # conv2 accumulator
        oper = th2 * W * Cph * cdt_bytes * (3 if fuse_conv2_taps else 1) \
            + th * W * Cph * 4                              # shifted operand + partial
        resb = th * W * (Cpi + Cpo) * 4
        return int(1.25 * (xb + outb + wts + hbuf + acc + oper + resb))

    tile_h = max(1, int(tile_h))
    cand = [d for d in range(min(tile_h, H), 0, -1) if H % d == 0]
    TH = next((d for d in cand if est(d) <= budget), cand[-1])
    nH = H // TH
    if N == 1 and nH == 1 and H % 2 == 0:    # keep both v7x TensorCores busy
        TH, nH = H // 2, 2
    TH2 = TH + 2

    vmem_limit = int(min(cap * 3 // 4, max(32 * 1024 * 1024, 2 * est(TH))))

    # ---- parameter prep: exact BN folds + lane padding -----------------------
    def padc(v, c):
        return jnp.pad(v, (0, c - v.shape[0])).reshape(1, c).astype(jnp.float32)

    def pad2(m, r, c):
        return jnp.pad(m, ((0, r - m.shape[0]), (0, c - m.shape[1])))

    w1f = w1 * s2[None, :]                                   # fold BN2 scale
    w2f = w2 * s3[None, None, None, :]                       # fold BN3 scale

    s1p, b1p = padc(s1, Cpi), padc(b1, Cpi)
    b2p, b3p = padc(b2, Cph), padc(b3, Cph)
    w1p = pad2(w1f, Cpi, Cph).astype(compute_dtype)
    w2p = jnp.pad(w2f, ((0, 0), (0, 0), (0, Cph - Chalf),
                        (0, Cph - Chalf))).astype(compute_dtype)
    if fuse_conv2_taps:
        # (dy, dx, ci, co) -> (dx, dy*Cph + ci, co): rows match the dy-major
        # channel concatenation of the fused operand.
        w2x = jnp.transpose(w2p, (1, 0, 2, 3)).reshape(3, 3 * Cph, Cph)
        w2_spec = pl.BlockSpec((3, 3 * Cph, Cph), lambda n, t: (0, 0, 0))
    else:
        w2x = w2p
        w2_spec = pl.BlockSpec((3, 3, Cph, Cph), lambda n, t: (0, 0, 0, 0))
    w3p = pad2(w3, Cph, Cpo).astype(compute_dtype)

    # single input pad: W halo (left padded to LPAD for alignment) + channels.
    x_p = jnp.pad(x, ((0, 0), (0, 0), (LPAD, Wp - W - LPAD), (0, Cpi - Cin)))

    # ---- BlockSpecs -----------------------------------------------------------
    top_spec = pl.BlockSpec(
        (None, 1, Wp, Cpi), lambda n, t: (n, jnp.maximum(t * TH - 1, 0), 0, 0))
    mid_spec = pl.BlockSpec((None, TH, Wp, Cpi), lambda n, t: (n, t, 0, 0))
    bot_spec = pl.BlockSpec(
        (None, 1, Wp, Cpi), lambda n, t: (n, jnp.minimum((t + 1) * TH, H - 1), 0, 0))

    def cspec(c):
        return pl.BlockSpec((1, c), lambda n, t: (0, 0))

    in_specs = [top_spec, mid_spec, bot_spec,
                cspec(Cpi), cspec(Cpi),
                pl.BlockSpec((Cpi, Cph), lambda n, t: (0, 0)),
                cspec(Cph), w2_spec, cspec(Cph),
                pl.BlockSpec((Cph, Cpo), lambda n, t: (0, 0))]
    args = [x_p, x_p, x_p, s1p, b1p, w1p, b2p, w2x, b3p, w3p]
    if has_ds:
        in_specs += [cspec(Cpi), cspec(Cpi),
                     pl.BlockSpec((Cpi, Cpo), lambda n, t: (0, 0))]
        args += [padc(sd, Cpi), padc(bd, Cpi),
                 pad2(wd, Cpi, Cpo).astype(compute_dtype)]

    kern = functools.partial(_resblock_kernel, H=H, W=W, TH=TH,
                             has_downsample=has_ds, fuse_taps=fuse_conv2_taps)

    out = pl.pallas_call(
        kern,
        out_shape=jax.ShapeDtypeStruct((N, H, W, Cpo), jnp.float32),
        grid=(N, nH),
        in_specs=in_specs,
        out_specs=pl.BlockSpec((None, TH, W, Cpo), lambda n, t: (n, t, 0, 0)),
        scratch_shapes=[pltpu.VMEM((TH * W, Cph), jnp.float32)],
        compiler_params=pltpu.CompilerParams(
            dimension_semantics=("parallel", "parallel"),
            vmem_limit_bytes=vmem_limit),
    )(*args)

    # lane-dense output passes through untouched when Cout is already padded.
    return out if Cpo == Cout else out[..., :Cout]


# --------------------------- parameters & reference ---------------------------

def fold_bn(gamma, beta, mean, var, eps=1e-5):
    scale = gamma / jnp.sqrt(var + eps)
    bias = beta - mean * scale
    return scale, bias


def make_params(key, feat_in, feat_out):
    half = feat_out // 2
    ks = jax.random.split(key, 8)

    def bn_params(k, c):
        k0, k1, k2, k3 = jax.random.split(k, 4)
        gamma = jax.random.uniform(k0, (c,), jnp.float32, 0.5, 1.5)
        beta = jax.random.normal(k1, (c,), jnp.float32) * 0.1
        mean = jax.random.normal(k2, (c,), jnp.float32) * 0.1
        var = jax.random.uniform(k3, (c,), jnp.float32, 0.5, 1.5)
        return fold_bn(gamma, beta, mean, var)

    s1, b1 = bn_params(ks[0], feat_in)
    s2, b2 = bn_params(ks[1], half)
    s3, b3 = bn_params(ks[2], half)
    w1 = jax.random.normal(ks[4], (feat_in, half), jnp.float32) * 0.2     # 1x1
    w2 = jax.random.normal(ks[5], (3, 3, half, half), jnp.float32) * 0.2  # 3x3 HWIO
    w3 = jax.random.normal(ks[6], (half, feat_out), jnp.float32) * 0.2    # 1x1

    if feat_in != feat_out:
        sd, bd = bn_params(ks[3], feat_in)
        wd = jax.random.normal(ks[7], (feat_in, feat_out), jnp.float32) * 0.2
    else:
        sd = bd = wd = None
    return (s1, b1, w1, s2, b2, w2, s3, b3, w3, sd, bd, wd)


def resblock_reference(x, params):
    """Plain-JAX NHWC reference mirroring the PyTorch forward in eval mode."""
    (s1, b1, w1, s2, b2, w2, s3, b3, w3, sd, bd, wd) = params

    def bn_relu(v, s, b):
        return jnp.maximum(v * s + b, 0.0)

    h = bn_relu(x, s1, b1)
    h = jnp.einsum('nhwc,co->nhwo', h, w1)
    h = bn_relu(h, s2, b2)
    h = lax.conv_general_dilated(h, w2, window_strides=(1, 1), padding='SAME',
                                 dimension_numbers=('NHWC', 'HWIO', 'NHWC'))
    h = bn_relu(h, s3, b3)
    h = jnp.einsum('nhwc,co->nhwo', h, w3)

    if wd is not None:
        r = bn_relu(x, sd, bd)
        r = jnp.einsum('nhwc,co->nhwo', r, wd)
    else:
        r = x
    return h + r


if __name__ == "__main__":
    key = jax.random.PRNGKey(0)
    k_x, k_p, k_p2 = jax.random.split(key, 3)

    N, H, W = 2, 16, 16
    feat_in, feat_out = 4, 8

    # NHWC input (equivalent PyTorch NCHW input would be x.transpose(0, 3, 1, 2))
    x = jax.random.normal(k_x, (N, H, W, feat_in), jnp.float32)
    params = make_params(k_p, feat_in, feat_out)
    ref = resblock_reference(x, params)

    # 1) fp32, whole-image tile (nH == 1), downsample residual — tight check.
    out = jax.block_until_ready(jax.jit(functools.partial(
        resblock_pallas, tile_h=16, compute_dtype=jnp.float32))(x, params))
    np.testing.assert_allclose(np.asarray(out), np.asarray(ref),
                               rtol=1e-4, atol=1e-4)

    # 2) fp32, H-tiled (nH == 2, exercises the halo blocks) + fused dy taps.
    out = jax.block_until_ready(jax.jit(functools.partial(
        resblock_pallas, tile_h=8, compute_dtype=jnp.float32,
        fuse_conv2_taps=True))(x, params))
    np.testing.assert_allclose(np.asarray(out), np.asarray(ref),
                               rtol=1e-4, atol=1e-4)

    # 3) identity-residual path (feat_in == feat_out), fp32, tiled.
    x_id = jax.random.normal(k_x, (N, H, W, feat_out), jnp.float32)
    params_id = make_params(k_p2, feat_out, feat_out)
    ref_id = resblock_reference(x_id, params_id)
    out = jax.block_until_ready(jax.jit(functools.partial(
        resblock_pallas, tile_h=8, compute_dtype=jnp.float32))(x_id, params_id))
    np.testing.assert_allclose(np.asarray(out), np.asarray(ref_id),
                               rtol=1e-4, atol=1e-4)

    # 4) default bf16 compute path (fp32 accumulation) — loose sanity check.
    out = jax.block_until_ready(jax.jit(functools.partial(
        resblock_pallas, tile_h=8))(x, params))
    np.testing.assert_allclose(np.asarray(out), np.asarray(ref),
                               rtol=5e-2, atol=1e-1)

    print("KERNEL_OK")
</pallas_src>

<mosaic_0001>
module attributes {stable_mosaic.version = 11 : i64} {
  func.func @_resblock_kernel(%arg0: i32, %arg1: i32, %arg2: memref<1x1x32x128xf32, #tpu.memory_space<vmem>>, %arg3: memref<1x16x32x128xf32, #tpu.memory_space<vmem>>, %arg4: memref<1x1x32x128xf32, #tpu.memory_space<vmem>>, %arg5: memref<1x128xf32, #tpu.memory_space<vmem>>, %arg6: memref<1x128xf32, #tpu.memory_space<vmem>>, %arg7: memref<128x128xf32, #tpu.memory_space<vmem>>, %arg8: memref<1x128xf32, #tpu.memory_space<vmem>>, %arg9: memref<3x3x128x128xf32, #tpu.memory_space<vmem>>, %arg10: memref<1x128xf32, #tpu.memory_space<vmem>>, %arg11: memref<128x128xf32, #tpu.memory_space<vmem>>, %arg12: memref<1x128xf32, #tpu.memory_space<vmem>>, %arg13: memref<1x128xf32, #tpu.memory_space<vmem>>, %arg14: memref<128x128xf32, #tpu.memory_space<vmem>>, %arg15: memref<1x16x16x128xf32, #tpu.memory_space<vmem>>, %arg16: memref<256x128xf32, #tpu.memory_space<vmem>>) attributes {dimension_semantics = [#tpu.dimension_semantics<parallel>, #tpu.dimension_semantics<parallel>], iteration_bounds = array<i64: 2, 1>, scalar_prefetch = 0 : i64, scratch_operands = 1 : i64, tpu.core_type = #tpu.core_type<tc>, window_params = [{transform_indices = @transform_0, window_bounds = array<i64: 1, 1, 32, 128>}, {transform_indices = @transform_1, window_bounds = array<i64: 1, 16, 32, 128>}, {transform_indices = @transform_2, window_bounds = array<i64: 1, 1, 32, 128>}, {pipeline_mode = #tpu.pipeline_mode<synchronous>, transform_indices = @transform_3, window_bounds = array<i64: 1, 128>}, {pipeline_mode = #tpu.pipeline_mode<synchronous>, transform_indices = @transform_4, window_bounds = array<i64: 1, 128>}, {pipeline_mode = #tpu.pipeline_mode<synchronous>, transform_indices = @transform_5, window_bounds = array<i64: 128, 128>}, {pipeline_mode = #tpu.pipeline_mode<synchronous>, transform_indices = @transform_6, window_bounds = array<i64: 1, 128>}, {pipeline_mode = #tpu.pipeline_mode<synchronous>, transform_indices = @transform_7, window_bounds = array<i64: 3, 3, 128, 128>}, {pipeline_mode = #tpu.pipeline_mode<synchronous>, transform_indices = @transform_8, window_bounds = array<i64: 1, 128>}, {pipeline_mode = #tpu.pipeline_mode<synchronous>, transform_indices = @transform_9, window_bounds = array<i64: 128, 128>}, {pipeline_mode = #tpu.pipeline_mode<synchronous>, transform_indices = @transform_10, window_bounds = array<i64: 1, 128>}, {pipeline_mode = #tpu.pipeline_mode<synchronous>, transform_indices = @transform_11, window_bounds = array<i64: 1, 128>}, {pipeline_mode = #tpu.pipeline_mode<synchronous>, transform_indices = @transform_12, window_bounds = array<i64: 128, 128>}, {transform_indices = @transform_13, window_bounds = array<i64: 1, 16, 16, 128>}]} {
    %c0 = arith.constant 0 : index
    %c0_0 = arith.constant 0 : index
    %c0_1 = arith.constant 0 : index
    %c0_2 = arith.constant 0 : index
    %0 = vector.load %arg2[%c0, %c0_0, %c0_1, %c0_2] : memref<1x1x32x128xf32, #tpu.memory_space<vmem>>, vector<1x1x32x128xf32>
    %1 = vector.shape_cast %0 : vector<1x1x32x128xf32> to vector<1x32x128xf32>
    %c0_3 = arith.constant 0 : index
    %c0_4 = arith.constant 0 : index
    %c0_5 = arith.constant 0 : index
    %c0_6 = arith.constant 0 : index
    %2 = vector.load %arg3[%c0_3, %c0_4, %c0_5, %c0_6] : memref<1x16x32x128xf32, #tpu.memory_space<vmem>>, vector<1x16x32x128xf32>
    %3 = vector.shape_cast %2 : vector<1x16x32x128xf32> to vector<16x32x128xf32>
    %c0_7 = arith.constant 0 : index
    %c0_8 = arith.constant 0 : index
    %c0_9 = arith.constant 0 : index
    %c0_10 = arith.constant 0 : index
    %4 = vector.load %arg4[%c0_7, %c0_8, %c0_9, %c0_10] : memref<1x1x32x128xf32, #tpu.memory_space<vmem>>, vector<1x1x32x128xf32>
    %5 = vector.shape_cast %4 : vector<1x1x32x128xf32> to vector<1x32x128xf32>
    %6 = tpu.concatenate %1, %3, %5 in 0 : vector<1x32x128xf32>, vector<16x32x128xf32>, vector<1x32x128xf32> -> vector<18x32x128xf32>
    %c0_11 = arith.constant 0 : index
    %c0_12 = arith.constant 0 : index
    %7 = vector.load %arg5[%c0_11, %c0_12] : memref<1x128xf32, #tpu.memory_space<vmem>>, vector<1x128xf32>
    %8 = vector.shape_cast %7 : vector<1x128xf32> to vector<1x1x128xf32>
    %9 = vector.broadcast %8 : vector<1x1x128xf32> to vector<18x32x128xf32>
    %10 = arith.mulf %6, %9 : vector<18x32x128xf32>
    %c0_13 = arith.constant 0 : index
    %c0_14 = arith.constant 0 : index
    %11 = vector.load %arg6[%c0_13, %c0_14] : memref<1x128xf32, #tpu.memory_space<vmem>>, vector<1x128xf32>
    %12 = vector.shape_cast %11 : vector<1x128xf32> to vector<1x1x128xf32>
    %13 = vector.broadcast %12 : vector<1x1x128xf32> to vector<18x32x128xf32>
    %14 = arith.addf %10, %13 : vector<18x32x128xf32>
    %cst = arith.constant 0.000000e+00 : f32
    %15 = vector.broadcast %cst : f32 to vector<18x32x128xf32>
    %16 = arith.maximumf %14, %15 : vector<18x32x128xf32>
    %17 = vector.shape_cast %16 : vector<18x32x128xf32> to vector<576x128xf32>
    %c0_15 = arith.constant 0 : index
    %c0_16 = arith.constant 0 : index
    %18 = vector.load %arg7[%c0_15, %c0_16] : memref<128x128xf32, #tpu.memory_space<vmem>>, vector<128x128xf32>
    %cst_17 = arith.constant dense<0.000000e+00> : vector<576x128xf32>
    %19 = tpu.matmul %17, %18, %cst_17 {dimension_numbers = #tpu.dot_dimension_numbers<[1], [0], [0], [1], [0, 0, 1, 1], [], []>} : vector<576x128xf32>, vector<128x128xf32>, vector<576x128xf32> -> vector<576x128xf32>
    %c0_18 = arith.constant 0 : index
    %c0_19 = arith.constant 0 : index
    %20 = vector.load %arg8[%c0_18, %c0_19] : memref<1x128xf32, #tpu.memory_space<vmem>>, vector<1x128xf32>
    %21 = vector.broadcast %20 : vector<1x128xf32> to vector<576x128xf32>
    %22 = arith.addf %19, %21 : vector<576x128xf32>
    %cst_20 = arith.constant 0.000000e+00 : f32
    %23 = vector.broadcast %cst_20 : f32 to vector<576x128xf32>
    %24 = arith.maximumf %22, %23 : vector<576x128xf32>
    %25 = vector.shape_cast %24 : vector<576x128xf32> to vector<18x32x128xf32>
    %26 = tpu.iota {dimensions = array<i32: 0>} : vector<18x32x1xi32>
    %c16_i32 = arith.constant 16 : i32
    %27 = arith.muli %arg1, %c16_i32 : i32
    %28 = vector.broadcast %27 : i32 to vector<18x32x1xi32>
    %29 = arith.addi %26, %28 : vector<18x32x1xi32>
    %30 = tpu.iota {dimensions = array<i32: 1>} : vector<18x32x1xi32>
    %c1_i32 = arith.constant 1 : i32
    %31 = vector.broadcast %c1_i32 : i32 to vector<18x32x1xi32>
    %32 = arith.cmpi sge, %29, %31 : vector<18x32x1xi32>
    %c16_i32_21 = arith.constant 16 : i32
    %33 = vector.broadcast %c16_i32_21 : i32 to vector<18x32x1xi32>
    %34 = arith.cmpi sle, %29, %33 : vector<18x32x1xi32>
    %35 = arith.andi %32, %34 : vector<18x32x1xi1>
    %c8_i32 = arith.constant 8 : i32
    %36 = vector.broadcast %c8_i32 : i32 to vector<18x32x1xi32>
    %37 = arith.cmpi sge, %30, %36 : vector<18x32x1xi32>
    %38 = arith.andi %35, %37 : vector<18x32x1xi1>
    %c24_i32 = arith.constant 24 : i32
    %39 = vector.broadcast %c24_i32 : i32 to vector<18x32x1xi32>
    %40 = arith.cmpi slt, %30, %39 : vector<18x32x1xi32>
    %41 = arith.andi %38, %40 : vector<18x32x1xi1>
    %cst_22 = arith.constant 0.000000e+00 : f32
    %42 = vector.shape_cast %41 : vector<18x32x1xi1> to vector<18x32x1xi1>
    %43 = vector.broadcast %42 : vector<18x32x1xi1> to vector<18x32x128xi1>
    %44 = vector.broadcast %cst_22 : f32 to vector<18x32x128xf32>
    %45 = arith.select %43, %25, %44 : vector<18x32x128xi1>, vector<18x32x128xf32>
    %46 = vector.extract_strided_slice %45 {offsets = [0, 7, 0], sizes = [18, 16, 128], strides = [1, 1, 1]} : vector<18x32x128xf32> to vector<18x16x128xf32>
    %47 = vector.shape_cast %46 : vector<18x16x128xf32> to vector<288x128xf32>
    %48 = vector.extract_strided_slice %47 {offsets = [0, 0], sizes = [256, 128], strides = [1, 1]} : vector<288x128xf32> to vector<256x128xf32>
    %c0_23 = arith.constant 0 : index
    %c0_24 = arith.constant 0 : index
    %c0_25 = arith.constant 0 : index
    %c0_26 = arith.constant 0 : index
    %49 = vector.load %arg9[%c0_23, %c0_24, %c0_25, %c0_26] : memref<3x3x128x128xf32, #tpu.memory_space<vmem>>, vector<1x1x128x128xf32>
    %50 = vector.shape_cast %49 : vector<1x1x128x128xf32> to vector<128x128xf32>
    %cst_27 = arith.constant dense<0.000000e+00> : vector<256x128xf32>
    %51 = tpu.matmul %48, %50, %cst_27 {dimension_numbers = #tpu.dot_dimension_numbers<[1], [0], [0], [1], [0, 0, 1, 1], [], []>} : vector<256x128xf32>, vector<128x128xf32>, vector<256x128xf32> -> vector<256x128xf32>
    %c0_28 = arith.constant 0 : index
    %c0_29 = arith.constant 0 : index
    %52 = vector.load %arg16[%c0_28, %c0_29] : memref<256x128xf32, #tpu.memory_space<vmem>>, vector<256x128xf32>
    tpu.vector_store %arg16[%c0_28, %c0_29], %51 {strides = array<i32>} : memref<256x128xf32, #tpu.memory_space<vmem>>, vector<256x128xf32>,
    %53 = vector.extract_strided_slice %47 {offsets = [16, 0], sizes = [256, 128], strides = [1, 1]} : vector<288x128xf32> to vector<256x128xf32>
    %c1 = arith.constant 1 : index
    %c0_30 = arith.constant 0 : index
    %c0_31 = arith.constant 0 : index
    %c0_32 = arith.constant 0 : index
    %54 = vector.load %arg9[%c1, %c0_30, %c0_31, %c0_32] : memref<3x3x128x128xf32, #tpu.memory_space<vmem>>, vector<1x1x128x128xf32>
    %55 = vector.shape_cast %54 : vector<1x1x128x128xf32> to vector<128x128xf32>
    %cst_33 = arith.constant dense<0.000000e+00> : vector<256x128xf32>
    %56 = tpu.matmul %53, %55, %cst_33 {dimension_numbers = #tpu.dot_dimension_numbers<[1], [0], [0], [1], [0, 0, 1, 1], [], []>} : vector<256x128xf32>, vector<128x128xf32>, vector<256x128xf32> -> vector<256x128xf32>
    %c0_34 = arith.constant 0 : index
    %c0_35 = arith.constant 0 : index
    %57 = vector.load %arg16[%c0_34, %c0_35] : memref<256x128xf32, #tpu.memory_space<vmem>>, vector<256x128xf32>
    %58 = arith.addf %57, %56 : vector<256x128xf32>
    %c0_36 = arith.constant 0 : index
    %c0_37 = arith.constant 0 : index
    %59 = vector.load %arg16[%c0_36, %c0_37] : memref<256x128xf32, #tpu.memory_space<vmem>>, vector<256x128xf32>
    tpu.vector_store %arg16[%c0_36, %c0_37], %58 {strides = array<i32>} : memref<256x128xf32, #tpu.memory_space<vmem>>, vector<256x128xf32>,
    %60 = vector.extract_strided_slice %47 {offsets = [32, 0], sizes = [256, 128], strides = [1, 1]} : vector<288x128xf32> to vector<256x128xf32>
    %c2 = arith.constant 2 : index
    %c0_38 = arith.constant 0 : index
    %c0_39 = arith.constant 0 : index
    %c0_40 = arith.constant 0 : index
    %61 = vector.load %arg9[%c2, %c0_38, %c0_39, %c0_40] : memref<3x3x128x128xf32, #tpu.memory_space<vmem>>, vector<1x1x128x128xf32>
    %62 = vector.shape_cast %61 : vector<1x1x128x128xf32> to vector<128x128xf32>
    %cst_41 = arith.constant dense<0.000000e+00> : vector<256x128xf32>
    %63 = tpu.matmul %60, %62, %cst_41 {dimension_numbers = #tpu.dot_dimension_numbers<[1], [0], [0], [1], [0, 0, 1, 1], [], []>} : vector<256x128xf32>, vector<128x128xf32>, vector<256x128xf32> -> vector<256x128xf32>
    %c0_42 = arith.constant 0 : index
    %c0_43 = arith.constant 0 : index
    %64 = vector.load %arg16[%c0_42, %c0_43] : memref<256x128xf32, #tpu.memory_space<vmem>>, vector<256x128xf32>
    %65 = arith.addf %64, %63 : vector<256x128xf32>
    %c0_44 = arith.constant 0 : index
    %c0_45 = arith.constant 0 : index
    %66 = vector.load %arg16[%c0_44, %c0_45] : memref<256x128xf32, #tpu.memory_space<vmem>>, vector<256x128xf32>
    tpu.vector_store %arg16[%c0_44, %c0_45], %65 {strides = array<i32>} : memref<256x128xf32, #tpu.memory_space<vmem>>, vector<256x128xf32>,
    %67 = vector.extract_strided_slice %45 {offsets = [0, 8, 0], sizes = [18, 16, 128], strides = [1, 1, 1]} : vector<18x32x128xf32> to vector<18x16x128xf32>
    %68 = vector.shape_cast %67 : vector<18x16x128xf32> to vector<288x128xf32>
    %69 = vector.extract_strided_slice %68 {offsets = [0, 0], sizes = [256, 128], strides = [1, 1]} : vector<288x128xf32> to vector<256x128xf32>
    %c0_46 = arith.constant 0 : index
    %c1_47 = arith.constant 1 : index
    %c0_48 = arith.constant 0 : index
    %c0_49 = arith.constant 0 : index
    %70 = vector.load %arg9[%c0_46, %c1_47, %c0_48, %c0_49] : memref<3x3x128x128xf32, #tpu.memory_space<vmem>>, vector<1x1x128x128xf32>
    %71 = vector.shape_cast %70 : vector<1x1x128x128xf32> to vector<128x128xf32>
    %cst_50 = arith.constant dense<0.000000e+00> : vector<256x128xf32>
    %72 = tpu.matmul %69, %71, %cst_50 {dimension_numbers = #tpu.dot_dimension_numbers<[1], [0], [0], [1], [0, 0, 1, 1], [], []>} : vector<256x128xf32>, vector<128x128xf32>, vector<256x128xf32> -> vector<256x128xf32>
    %c0_51 = arith.constant 0 : index
    %c0_52 = arith.constant 0 : index
    %73 = vector.load %arg16[%c0_51, %c0_52] : memref<256x128xf32, #tpu.memory_space<vmem>>, vector<256x128xf32>
    %74 = arith.addf %73, %72 : vector<256x128xf32>
    %c0_53 = arith.constant 0 : index
    %c0_54 = arith.constant 0 : index
    %75 = vector.load %arg16[%c0_53, %c0_54] : memref<256x128xf32, #tpu.memory_space<vmem>>, vector<256x128xf32>
    tpu.vector_store %arg16[%c0_53, %c0_54], %74 {strides = array<i32>} : memref<256x128xf32, #tpu.memory_space<vmem>>, vector<256x128xf32>,
    %76 = vector.extract_strided_slice %68 {offsets = [16, 0], sizes = [256, 128], strides = [1, 1]} : vector<288x128xf32> to vector<256x128xf32>
    %c1_55 = arith.constant 1 : index
    %c1_56 = arith.constant 1 : index
    %c0_57 = arith.constant 0 : index
    %c0_58 = arith.constant 0 : index
    %77 = vector.load %arg9[%c1_55, %c1_56, %c0_57, %c0_58] : memref<3x3x128x128xf32, #tpu.memory_space<vmem>>, vector<1x1x128x128xf32>
    %78 = vector.shape_cast %77 : vector<1x1x128x128xf32> to vector<128x128xf32>
    %cst_59 = arith.constant dense<0.000000e+00> : vector<256x128xf32>
    %79 = tpu.matmul %76, %78, %cst_59 {dimension_numbers = #tpu.dot_dimension_numbers<[1], [0], [0], [1], [0, 0, 1, 1], [], []>} : vector<256x128xf32>, vector<128x128xf32>, vector<256x128xf32> -> vector<256x128xf32>
    %c0_60 = arith.constant 0 : index
    %c0_61 = arith.constant 0 : index
    %80 = vector.load %arg16[%c0_60, %c0_61] : memref<256x128xf32, #tpu.memory_space<vmem>>, vector<256x128xf32>
    %81 = arith.addf %80, %79 : vector<256x128xf32>
    %c0_62 = arith.constant 0 : index
    %c0_63 = arith.constant 0 : index
    %82 = vector.load %arg16[%c0_62, %c0_63] : memref<256x128xf32, #tpu.memory_space<vmem>>, vector<256x128xf32>
    tpu.vector_store %arg16[%c0_62, %c0_63], %81 {strides = array<i32>} : memref<256x128xf32, #tpu.memory_space<vmem>>, vector<256x128xf32>,
    %83 = vector.extract_strided_slice %68 {offsets = [32, 0], sizes = [256, 128], strides = [1, 1]} : vector<288x128xf32> to vector<256x128xf32>
    %c2_64 = arith.constant 2 : index
    %c1_65 = arith.constant 1 : index
    %c0_66 = arith.constant 0 : index
    %c0_67 = arith.constant 0 : index
    %84 = vector.load %arg9[%c2_64, %c1_65, %c0_66, %c0_67] : memref<3x3x128x128xf32, #tpu.memory_space<vmem>>, vector<1x1x128x128xf32>
    %85 = vector.shape_cast %84 : vector<1x1x128x128xf32> to vector<128x128xf32>
    %cst_68 = arith.constant dense<0.000000e+00> : vector<256x128xf32>
    %86 = tpu.matmul %83, %85, %cst_68 {dimension_numbers = #tpu.dot_dimension_numbers<[1], [0], [0], [1], [0, 0, 1, 1], [], []>} : vector<256x128xf32>, vector<128x128xf32>, vector<256x128xf32> -> vector<256x128xf32>
    %c0_69 = arith.constant 0 : index
    %c0_70 = arith.constant 0 : index
    %87 = vector.load %arg16[%c0_69, %c0_70] : memref<256x128xf32, #tpu.memory_space<vmem>>, vector<256x128xf32>
    %88 = arith.addf %87, %86 : vector<256x128xf32>
    %c0_71 = arith.constant 0 : index
    %c0_72 = arith.constant 0 : index
    %89 = vector.load %arg16[%c0_71, %c0_72] : memref<256x128xf32, #tpu.memory_space<vmem>>, vector<256x128xf32>
    tpu.vector_store %arg16[%c0_71, %c0_72], %88 {strides = array<i32>} : memref<256x128xf32, #tpu.memory_space<vmem>>, vector<256x128xf32>,
    %90 = vector.extract_strided_slice %45 {offsets = [0, 9, 0], sizes = [18, 16, 128], strides = [1, 1, 1]} : vector<18x32x128xf32> to vector<18x16x128xf32>
    %91 = vector.shape_cast %90 : vector<18x16x128xf32> to vector<288x128xf32>
    %92 = vector.extract_strided_slice %91 {offsets = [0, 0], sizes = [256, 128], strides = [1, 1]} : vector<288x128xf32> to vector<256x128xf32>
    %c0_73 = arith.constant 0 : index
    %c2_74 = arith.constant 2 : index
    %c0_75 = arith.constant 0 : index
    %c0_76 = arith.constant 0 : index
    %93 = vector.load %arg9[%c0_73, %c2_74, %c0_75, %c0_76] : memref<3x3x128x128xf32, #tpu.memory_space<vmem>>, vector<1x1x128x128xf32>
    %94 = vector.shape_cast %93 : vector<1x1x128x128xf32> to vector<128x128xf32>
    %cst_77 = arith.constant dense<0.000000e+00> : vector<256x128xf32>
    %95 = tpu.matmul %92, %94, %cst_77 {dimension_numbers = #tpu.dot_dimension_numbers<[1], [0], [0], [1], [0, 0, 1, 1], [], []>} : vector<256x128xf32>, vector<128x128xf32>, vector<256x128xf32> -> vector<256x128xf32>
    %c0_78 = arith.constant 0 : index
    %c0_79 = arith.constant 0 : index
    %96 = vector.load %arg16[%c0_78, %c0_79] : memref<256x128xf32, #tpu.memory_space<vmem>>, vector<256x128xf32>
    %97 = arith.addf %96, %95 : vector<256x128xf32>
    %c0_80 = arith.constant 0 : index
    %c0_81 = arith.constant 0 : index
    %98 = vector.load %arg16[%c0_80, %c0_81] : memref<256x128xf32, #tpu.memory_space<vmem>>, vector<256x128xf32>
    tpu.vector_store %arg16[%c0_80, %c0_81], %97 {strides = array<i32>} : memref<256x128xf32, #tpu.memory_space<vmem>>, vector<256x128xf32>,
    %99 = vector.extract_strided_slice %91 {offsets = [16, 0], sizes = [256, 128], strides = [1, 1]} : vector<288x128xf32> to vector<256x128xf32>
    %c1_82 = arith.constant 1 : index
    %c2_83 = arith.constant 2 : index
    %c0_84 = arith.constant 0 : index
    %c0_85 = arith.constant 0 : index
    %100 = vector.load %arg9[%c1_82, %c2_83, %c0_84, %c0_85] : memref<3x3x128x128xf32, #tpu.memory_space<vmem>>, vector<1x1x128x128xf32>
    %101 = vector.shape_cast %100 : vector<1x1x128x128xf32> to vector<128x128xf32>
    %cst_86 = arith.constant dense<0.000000e+00> : vector<256x128xf32>
    %102 = tpu.matmul %99, %101, %cst_86 {dimension_numbers = #tpu.dot_dimension_numbers<[1], [0], [0], [1], [0, 0, 1, 1], [], []>} : vector<256x128xf32>, vector<128x128xf32>, vector<256x128xf32> -> vector<256x128xf32>
    %c0_87 = arith.constant 0 : index
    %c0_88 = arith.constant 0 : index
    %103 = vector.load %arg16[%c0_87, %c0_88] : memref<256x128xf32, #tpu.memory_space<vmem>>, vector<256x128xf32>
    %104 = arith.addf %103, %102 : vector<256x128xf32>
    %c0_89 = arith.constant 0 : index
    %c0_90 = arith.constant 0 : index
    %105 = vector.load %arg16[%c0_89, %c0_90] : memref<256x128xf32, #tpu.memory_space<vmem>>, vector<256x128xf32>
    tpu.vector_store %arg16[%c0_89, %c0_90], %104 {strides = array<i32>} : memref<256x128xf32, #tpu.memory_space<vmem>>, vector<256x128xf32>,
    %106 = vector.extract_strided_slice %91 {offsets = [32, 0], sizes = [256, 128], strides = [1, 1]} : vector<288x128xf32> to vector<256x128xf32>
    %c2_91 = arith.constant 2 : index
    %c2_92 = arith.constant 2 : index
    %c0_93 = arith.constant 0 : index
    %c0_94 = arith.constant 0 : index
    %107 = vector.load %arg9[%c2_91, %c2_92, %c0_93, %c0_94] : memref<3x3x128x128xf32, #tpu.memory_space<vmem>>, vector<1x1x128x128xf32>
    %108 = vector.shape_cast %107 : vector<1x1x128x128xf32> to vector<128x128xf32>
    %cst_95 = arith.constant dense<0.000000e+00> : vector<256x128xf32>
    %109 = tpu.matmul %106, %108, %cst_95 {dimension_numbers = #tpu.dot_dimension_numbers<[1], [0], [0], [1], [0, 0, 1, 1], [], []>} : vector<256x128xf32>, vector<128x128xf32>, vector<256x128xf32> -> vector<256x128xf32>
    %c0_96 = arith.constant 0 : index
    %c0_97 = arith.constant 0 : index
    %110 = vector.load %arg16[%c0_96, %c0_97] : memref<256x128xf32, #tpu.memory_space<vmem>>, vector<256x128xf32>
    %111 = arith.addf %110, %109 : vector<256x128xf32>
    %c0_98 = arith.constant 0 : index
    %c0_99 = arith.constant 0 : index
    %112 = vector.load %arg16[%c0_98, %c0_99] : memref<256x128xf32, #tpu.memory_space<vmem>>, vector<256x128xf32>
    tpu.vector_store %arg16[%c0_98, %c0_99], %111 {strides = array<i32>} : memref<256x128xf32, #tpu.memory_space<vmem>>, vector<256x128xf32>,
    %c0_100 = arith.constant 0 : index
    %c0_101 = arith.constant 0 : index
    %113 = vector.load %arg16[%c0_100, %c0_101] : memref<256x128xf32, #tpu.memory_space<vmem>>, vector<256x128xf32>
    %c0_102 = arith.constant 0 : index
    %c0_103 = arith.constant 0 : index
    %114 = vector.load %arg10[%c0_102, %c0_103] : memref<1x128xf32, #tpu.memory_space<vmem>>, vector<1x128xf32>
    %115 = vector.broadcast %114 : vector<1x128xf32> to vector<256x128xf32>
    %116 = arith.addf %113, %115 : vector<256x128xf32>
    %cst_104 = arith.constant 0.000000e+00 : f32
    %117 = vector.broadcast %cst_104 : f32 to vector<256x128xf32>
    %118 = arith.maximumf %116, %117 : vector<256x128xf32>
    %c0_105 = arith.constant 0 : index
    %c0_106 = arith.constant 0 : index
    %119 = vector.load %arg11[%c0_105, %c0_106] : memref<128x128xf32, #tpu.memory_space<vmem>>, vector<128x128xf32>
    %cst_107 = arith.constant dense<0.000000e+00> : vector<256x128xf32>
    %120 = tpu.matmul %118, %119, %cst_107 {dimension_numbers = #tpu.dot_dimension_numbers<[1], [0], [0], [1], [0, 0, 1, 1], [], []>} : vector<256x128xf32>, vector<128x128xf32>, vector<256x128xf32> -> vector<256x128xf32>
    %c0_108 = arith.constant 0 : index
    %c0_109 = arith.constant 0 : index
    %c8 = arith.constant 8 : index
    %c0_110 = arith.constant 0 : index
    %121 = vector.load %arg3[%c0_108, %c0_109, %c8, %c0_110] : memref<1x16x32x128xf32, #tpu.memory_space<vmem>>, vector<1x16x16x128xf32>
    %122 = vector.shape_cast %121 : vector<1x16x16x128xf32> to vector<16x16x128xf32>
    %c0_111 = arith.constant 0 : index
    %c0_112 = arith.constant 0 : index
    %123 = vector.load %arg12[%c0_111, %c0_112] : memref<1x128xf32, #tpu.memory_space<vmem>>, vector<1x128xf32>
    %124 = vector.shape_cast %123 : vector<1x128xf32> to vector<1x1x128xf32>
    %125 = vector.broadcast %124 : vector<1x1x128xf32> to vector<16x16x128xf32>
    %126 = arith.mulf %122, %125 : vector<16x16x128xf32>
    %c0_113 = arith.constant 0 : index
    %c0_114 = arith.constant 0 : index
    %127 = vector.load %arg13[%c0_113, %c0_114] : memref<1x128xf32, #tpu.memory_space<vmem>>, vector<1x128xf32>
    %128 = vector.shape_cast %127 : vector<1x128xf32> to vector<1x1x128xf32>
    %129 = vector.broadcast %128 : vector<1x1x128xf32> to vector<16x16x128xf32>
    %130 = arith.addf %126, %129 : vector<16x16x128xf32>
    %cst_115 = arith.constant 0.000000e+00 : f32
    %131 = vector.broadcast %cst_115 : f32 to vector<16x16x128xf32>
    %132 = arith.maximumf %130, %131 : vector<16x16x128xf32>
    %133 = vector.shape_cast %132 : vector<16x16x128xf32> to vector<256x128xf32>
    %c0_116 = arith.constant 0 : index
    %c0_117 = arith.constant 0 : index
    %134 = vector.load %arg14[%c0_116, %c0_117] : memref<128x128xf32, #tpu.memory_space<vmem>>, vector<128x128xf32>
    %cst_118 = arith.constant dense<0.000000e+00> : vector<256x128xf32>
    %135 = tpu.matmul %133, %134, %cst_118 {dimension_numbers = #tpu.dot_dimension_numbers<[1], [0], [0], [1], [0, 0, 1, 1], [], []>} : vector<256x128xf32>, vector<128x128xf32>, vector<256x128xf32> -> vector<256x128xf32>
    %136 = arith.addf %120, %135 : vector<256x128xf32>
    %137 = vector.shape_cast %136 : vector<256x128xf32> to vector<16x16x128xf32>
    %c0_119 = arith.constant 0 : index
    %c0_120 = arith.constant 0 : index
    %c0_121 = arith.constant 0 : index
    %c0_122 = arith.constant 0 : index
    %138 = vector.load %arg15[%c0_119, %c0_120, %c0_121, %c0_122] : memref<1x16x16x128xf32, #tpu.memory_space<vmem>>, vector<1x16x16x128xf32>
    %139 = vector.shape_cast %138 : vector<1x16x16x128xf32> to vector<16x16x128xf32>
    %140 = vector.shape_cast %137 : vector<16x16x128xf32> to vector<1x16x16x128xf32>
    tpu.vector_store %arg15[%c0_119, %c0_120, %c0_121, %c0_122], %140 {strides = array<i32>} : memref<1x16x16x128xf32, #tpu.memory_space<vmem>>, vector<1x16x16x128xf32>,
    return
  }
  func.func @transform_0(%arg0: i32, %arg1: i32) -> (i32, i32, i32, i32) {
    %c16_i32 = arith.constant 16 : i32
    %0 = arith.muli %arg1, %c16_i32 : i32
    %c1_i32 = arith.constant 1 : i32
    %1 = arith.subi %0, %c1_i32 : i32
    %c0_i32 = arith.constant 0 : i32
    %2 = arith.maxsi %1, %c0_i32 : i32
    %c0_i32_0 = arith.constant 0 : i32
    %c0_i32_1 = arith.constant 0 : i32
    %c0_i32_2 = arith.constant 0 : i32
    return %arg0, %2, %c0_i32_0, %c0_i32_1 : i32, i32, i32, i32
  }
  func.func @transform_1(%arg0: i32, %arg1: i32) -> (i32, i32, i32, i32) {
    %c0_i32 = arith.constant 0 : i32
    %c0_i32_0 = arith.constant 0 : i32
    %c0_i32_1 = arith.constant 0 : i32
    return %arg0, %arg1, %c0_i32, %c0_i32_0 : i32, i32, i32, i32
  }
  func.func @transform_2(%arg0: i32, %arg1: i32) -> (i32, i32, i32, i32) {
    %c1_i32 = arith.constant 1 : i32
    %0 = arith.addi %arg1, %c1_i32 : i32
    %c16_i32 = arith.constant 16 : i32
    %1 = arith.muli %0, %c16_i32 : i32
    %c15_i32 = arith.constant 15 : i32
    %2 = arith.minsi %1, %c15_i32 : i32
    %c0_i32 = arith.constant 0 : i32
    %c0_i32_0 = arith.constant 0 : i32
    %c0_i32_1 = arith.constant 0 : i32
    return %arg0, %2, %c0_i32, %c0_i32_0 : i32, i32, i32, i32
  }
  func.func @transform_3(%arg0: i32, %arg1: i32) -> (i32, i32) {
    %c0_i32 = arith.constant 0 : i32
    %c0_i32_0 = arith.constant 0 : i32
    %c0_i32_1 = arith.constant 0 : i32
    return %c0_i32, %c0_i32_0 : i32, i32
  }
  func.func @transform_4(%arg0: i32, %arg1: i32) -> (i32, i32) {
    %c0_i32 = arith.constant 0 : i32
    %c0_i32_0 = arith.constant 0 : i32
    %c0_i32_1 = arith.constant 0 : i32
    return %c0_i32, %c0_i32_0 : i32, i32
  }
  func.func @transform_5(%arg0: i32, %arg1: i32) -> (i32, i32) {
    %c0_i32 = arith.constant 0 : i32
    %c0_i32_0 = arith.constant 0 : i32
    %c0_i32_1 = arith.constant 0 : i32
    return %c0_i32, %c0_i32_0 : i32, i32
  }
  func.func @transform_6(%arg0: i32, %arg1: i32) -> (i32, i32) {
    %c0_i32 = arith.constant 0 : i32
    %c0_i32_0 = arith.constant 0 : i32
    %c0_i32_1 = arith.constant 0 : i32
    return %c0_i32, %c0_i32_0 : i32, i32
  }
  func.func @transform_7(%arg0: i32, %arg1: i32) -> (i32, i32, i32, i32) {
    %c0_i32 = arith.constant 0 : i32
    %c0_i32_0 = arith.constant 0 : i32
    %c0_i32_1 = arith.constant 0 : i32
    %c0_i32_2 = arith.constant 0 : i32
    %c0_i32_3 = arith.constant 0 : i32
    return %c0_i32, %c0_i32_0, %c0_i32_1, %c0_i32_2 : i32, i32, i32, i32
  }
  func.func @transform_8(%arg0: i32, %arg1: i32) -> (i32, i32) {
    %c0_i32 = arith.constant 0 : i32
    %c0_i32_0 = arith.constant 0 : i32
    %c0_i32_1 = arith.constant 0 : i32
    return %c0_i32, %c0_i32_0 : i32, i32
  }
  func.func @transform_9(%arg0: i32, %arg1: i32) -> (i32, i32) {
    %c0_i32 = arith.constant 0 : i32
    %c0_i32_0 = arith.constant 0 : i32
    %c0_i32_1 = arith.constant 0 : i32
    return %c0_i32, %c0_i32_0 : i32, i32
  }
  func.func @transform_10(%arg0: i32, %arg1: i32) -> (i32, i32) {
    %c0_i32 = arith.constant 0 : i32
    %c0_i32_0 = arith.constant 0 : i32
    %c0_i32_1 = arith.constant 0 : i32
    return %c0_i32, %c0_i32_0 : i32, i32
  }
  func.func @transform_11(%arg0: i32, %arg1: i32) -> (i32, i32) {
    %c0_i32 = arith.constant 0 : i32
    %c0_i32_0 = arith.constant 0 : i32
    %c0_i32_1 = arith.constant 0 : i32
    return %c0_i32, %c0_i32_0 : i32, i32
  }
  func.func @transform_12(%arg0: i32, %arg1: i32) -> (i32, i32) {
    %c0_i32 = arith.constant 0 : i32
    %c0_i32_0 = arith.constant 0 : i32
    %c0_i32_1 = arith.constant 0 : i32
    return %c0_i32, %c0_i32_0 : i32, i32
  }
  func.func @transform_13(%arg0: i32, %arg1: i32) -> (i32, i32, i32, i32) {
    %c0_i32 = arith.constant 0 : i32
    %c0_i32_0 = arith.constant 0 : i32
    %c0_i32_1 = arith.constant 0 : i32
    return %arg0, %arg1, %c0_i32, %c0_i32_0 : i32, i32, i32, i32
  }
}

</mosaic_0001>

<bundles_post_ra>
// kernel: resblock_pallas.1
= control target key start
LH: loop header
LB: loop body
LE: loop exit
PB: predicated region body
PF: predicated region fallthrough
CT: control target
= control target key end

     0   :  { %s8020_s25 = smov 0   ;;  %s8022_s26 = smov 0   ;;  %s10531_s0 = inlined_call_operand.vmem [shape: f32[2,16,32,128], index: 0, kind: input, shape index: {}, may-alias: {0,1,2}]   ;;  %s10532_s1 = inlined_call_operand.vmem [shape: f32[2,16,32,128], index: 1, kind: input, shape index: {}, may-alias: {0,1,2}]   ;;  %s10533_s2 = inlined_call_operand.vmem [shape: f32[2,16,32,128], index: 2, kind: input, shape index: {}, may-alias: {0,1,2}]   ;;  %s10534_s3 = inlined_call_operand.vmem [shape: f32[1,128], index: 3, kind: input, shape index: {}]   ;;  %s10535_s4 = inlined_call_operand.vmem [shape: f32[1,128], index: 4, kind: input, shape index: {}]   ;;  %s10536_s5 = inlined_call_operand.vmem [shape: f32[128,128], index: 5, kind: input, shape index: {}]   ;;  %s10537_s6 = inlined_call_operand.vmem [shape: f32[1,128], index: 6, kind: input, shape index: {}]   ;;  %s10538_s7 = inlined_call_operand.vmem [shape: f32[3,3,128,128], index: 7, kind: input, shape index: {}]   ;;  %s10539_s8 = inlined_call_operand.vmem [shape: f32[1,128], index: 8, kind: input, shape index: {}]   ;;  %s10540_s9 = inlined_call_operand.vmem [shape: f32[128,128], index: 9, kind: input, shape index: {}]   ;;  %s10541_s10 = inlined_call_operand.vmem [shape: f32[1,128], index: 10, kind: input, shape index: {}]   ;;  %s10542_s11 = inlined_call_operand.vmem [shape: f32[1,128], index: 11, kind: input, shape index: {}]   ;;  %s10543_s12 = inlined_call_operand.vmem [shape: f32[128,128], index: 12, kind: input, shape index: {}]   ;;  %s10544_s13 = inlined_call_operand.vmem [shape: f32[2,16,16,128], index: 13, kind: output, shape index: {}]  }
   0x1   :  { %s8024_s27 = smov 0  }
   0x2 LB: > { %s35_s28 = sadd.s32 1, %s7943_s26  ;;  %p6081_p0 = scmp.ge.s32.totalorder %s7947_s27, 1  ;;  %s7947_s27 = sphi %s8024_s27, %s23_s27   ;;  %s7943_s26 = sphi %s8022_s26, %s10901_s26   ;;  %s7939_s25 = sphi %s8020_s25, %s10900_s25  }
   0x3   : > { %p37_p1 = scmp.ge.s32.totalorder %s35_s28, 2  ;;  %p473_p2 = scmp.lt.s32.totalorder %s7947_s27, 3 }
   0x5   : > { %s10903_s28 = smov (%p37_p1, %s35_s28), 0  ;;  %p474_p3 = pnand %p6081_p0, %p473_p2 }
   0x7   : > { %477 = sbr.rel (%p474_p3) target bundleno = 1091 (0x443), region = 72 }
   0xc   : > { %v926_v0 = vld [vmem:[%s10536_s5 + $0x78] sm:$0xff]  ;;  %v925_v1 = vld [vmem:[%s10536_s5 + $0x70] sm:$0xff]  ;;  %p557_p4 = scmp.lt.s32.totalorder %s7939_s25, 1  ;;  %v924_v2 = vld [vmem:[%s10536_s5 + $0x68] sm:$0xff]  ;;  %vm1931_vm0 = vcmask 1040384   ;;  %vm4039_vm1 = vcmask 1046528  }
   0xd   : > { %6848 = vmatprep.subr.mxu0 %v926_v0  ;;  %v923_v3 = vld [vmem:[%s10536_s5 + $0x60] sm:$0xff]  ;;  %v922_v5 = vld [vmem:[%s10536_s5 + $0x58] sm:$0xff]  ;;  %v921_v9 = vld [vmem:[%s10536_s5 + $0x50] sm:$0xff] }
   0xe   : > { %6849 = vmatpush3.msra.mxu0 %v926_v0  ;;  %s10905_s25 = smov (!%p557_p4, %s7939_s25), 1  ;;  %v8064_v4 = vld [vmem:[%s10534_s3] ss:$0 sm:$0xff]  ;;  %v920_v11 = vld [vmem:[%s10536_s5 + $0x48] sm:$0xff]  ;;  %v918_v14 = vld [vmem:[%s10536_s5 + $0x38] sm:$0xff] }
   0xf   : > { %6850 = vmatprep.subr.mxu0 %v925_v1  ;;  %s8053_s20 = sshll.u32 %s10905_s25, 9  ;;  %v8073_v7 = vld [vmem:[%s10535_s4] ss:$0 sm:$0xff]  ;;  %v917_v15 = vld [vmem:[%s10536_s5 + $0x30] sm:$0xff]  ;;  %v916_v16 = vld [vmem:[%s10536_s5 + $0x28] sm:$0xff]  ;;  %s6230_s17 = sshll.u32 %s10905_s25, 8 }
  0x10   : > { %6851 = vmatpush3.msra.mxu0 %v925_v1  ;;  %s8059_s23 = scalar_lea.vmem %s10531_s0, %s8053_s20  ;;  %v919_v13 = vld [vmem:[%s10536_s5 + $0x40] sm:$0xff]  ;;  %s8104_s24 = scalar_lea.vmem %s10532_s1, %s8053_s20  ;;  %v914_v21 = vld [vmem:[%s10536_s5 + $0x18] sm:$0xff]  ;;  %v913_v25 = vld [vmem:[%s10536_s5 + $0x10] sm:$0xff] }
  0x11   : > { %6852 = vmatprep.subr.mxu0 %v924_v2  ;;  %v609_v6 = vld [vmem:[%s8059_s23] sm:$0xff]  ;;  %v610_v17 = vld [vmem:[%s8059_s23 + $0x8] sm:$0xff]  ;;  %v611_v18 = vld [vmem:[%s8059_s23 + $0x10] sm:$0xff] }
  0x12   : > { %6853 = vmatpush3.msra.mxu0 %v924_v2  ;;  %v688_v8 = vmul.f32 %v8064_v4, %v609_v6  ;;  %v915_v19 = vld [vmem:[%s10536_s5 + $0x20] sm:$0xff]  ;;  %v689_v20 = vmul.f32 %v8064_v4, %v610_v17  ;;  %v690_v22 = vmul.f32 %v8064_v4, %v611_v18  ;;  %v612_v23 = vld [vmem:[%s8059_s23 + $0x18] sm:$0xff]  ;;  %v912_v28 = vld [vmem:[%s10536_s5 + $0x8] sm:$0xff]  ;;  %s6229_s23 = sadd.s32 480, %s8053_s20 }
  0x13   : > { %6854 = vmatprep.subr.mxu0 %v923_v3  ;;  %v613_v24 = vld [vmem:[%s8104_s24] sm:$0xff]  ;;  %v691_v27 = vmul.f32 %v8064_v4, %v612_v23  ;;  %v614_v31 = vld [vmem:[%s8104_s24 + $0x8] sm:$0xff]  ;;  %v615_v32 = vld [vmem:[%s8104_s24 + $0x10] sm:$0xff]  ;;  %s593_s21 = scalar_lea.vmem %s10533_s2, %s6229_s23 }
  0x14   : > { %6855 = vmatpush3.msra.mxu0 %v923_v3  ;;  %v767_v10 = vadd.f32 %v8073_v7, %v688_v8  ;;  %v768_v26 = vadd.f32 %v8073_v7, %v689_v20  ;;  %v769_v29 = vadd.f32 %v8073_v7, %v690_v22  ;;  %v692_v30 = vmul.f32 %v8064_v4, %v613_v24  ;;  %v911_v33 = vld [vmem:[%s10536_s5] sm:$0xff]  ;;  %v2073_v37 = vld [vmem:[%s10538_s7 + $0x78] sm:$0xff]  ;;  %v2072_v42 = vld [vmem:[%s10538_s7 + $0x70] sm:$0xff] }
  0x15   : > { %6856 = vmatprep.subr.mxu0 %v922_v5  ;;  %v770_v35 = vadd.f32 %v8073_v7, %v691_v27  ;;  %v693_v36 = vmul.f32 %v8064_v4, %v614_v31  ;;  %v694_v40 = vmul.f32 %v8064_v4, %v615_v32  ;;  %v616_v41 = vld [vmem:[%s8104_s24 + $0x18] sm:$0xff]  ;;  %6988 = vmatprep.subr.mxu1 %v2073_v37  ;;  %v617_v43 = vld [vmem:[%s8104_s24 + $0x20] sm:$0xff]  ;;  %v2071_v48 = vld [vmem:[%s10538_s7 + $0x68] sm:$0xff] }
  0x16   : > { %6857 = vmatpush3.msra.mxu0 %v922_v5  ;;  %v839_v12 = vmax.f32 %v767_v10, 0.0  ;;  %v840_v34 = vmax.f32 %v768_v26, 0.0  ;;  %v841_v38 = vmax.f32 %v769_v29, 0.0  ;;  %v771_v39 = vadd.f32 %v8073_v7, %v692_v30  ;;  %6989 = vmatpush3.msra.mxu1 %v2073_v37  ;;  %v6140_v44 = vld [vmem:[%s10538_s7 + $0xf8] sm:$0xff]  ;;  %v618_v52 = vld [vmem:[%s8104_s24 + $0x28] sm:$0xff]  ;;  %v6139_v53 = vld [vmem:[%s10538_s7 + $0xf0] sm:$0xff] }
  0x17   : > { %6858 = vmatprep.subr.mxu0 %v921_v9  ;;  %6990 = vmatprep.subr.mxu1 %v2072_v42  ;;  %v842_v45 = vmax.f32 %v770_v35, 0.0  ;;  %v772_v46 = vadd.f32 %v8073_v7, %v693_v36  ;;  %v695_v47 = vmul.f32 %v8064_v4, %v616_v41  ;;  %v773_v50 = vadd.f32 %v8073_v7, %v694_v40  ;;  %v619_v54 = vld [vmem:[%s8104_s24 + $0x30] sm:$0xff]  ;;  %v6138_v55 = vld [vmem:[%s10538_s7 + $0xe8] sm:$0xff]  ;;  %v620_v62 = vld [vmem:[%s8104_s24 + $0x38] sm:$0xff] }
  0x18   : > { %6859 = vmatpush3.msra.mxu0 %v921_v9  ;;  %6880 = vmatprep.mubr.f32.mxu0 %v839_v12  ;;  %v843_v49 = vmax.f32 %v771_v39, 0.0  ;;  %v696_v51 = vmul.f32 %v8064_v4, %v617_v43  ;;  %v697_v58 = vmul.f32 %v8064_v4, %v618_v52  ;;  %v698_v61 = vmul.f32 %v8064_v4, %v619_v54  ;;  %v6137_v63 = vld [vmem:[%s10538_s7 + $0xe0] sm:$0xff]  ;;  %v6136_v1 = vld [vmem:[%s10538_s7 + $0xd8] sm:$0xff]  ;;  %v623_v12 = vld [vmem:[%s8104_s24 + $0x50] sm:$0xff] }
  0x19   : > { %6860 = vmatprep.subr.mxu0 %v920_v11  ;;  %6991 = vmatpush3.msra.mxu1 %v2072_v42  ;;  %v844_v56 = vmax.f32 %v772_v46, 0.0  ;;  %v774_v57 = vadd.f32 %v8073_v7, %v695_v47  ;;  %v845_v59 = vmax.f32 %v773_v50, 0.0  ;;  %v621_v0 = vld [vmem:[%s8104_s24 + $0x40] sm:$0xff]  ;;  %v699_v5 = vmul.f32 %v8064_v4, %v620_v62  ;;  %v2069_v17 = vld [vmem:[%s10538_s7 + $0x58] sm:$0xff]  ;;  %v6134_v23 = vld [vmem:[%s10538_s7 + $0xc8] sm:$0xff] }
  0x1a   : > { %6861 = vmatpush3.msra.mxu0 %v920_v11  ;;  %6992 = vmatprep.subr.mxu1 %v2071_v48  ;;  %v775_v60 = vadd.f32 %v8073_v7, %v696_v51  ;;  %v776_v3 = vadd.f32 %v8073_v7, %v697_v58  ;;  %v2070_v6 = vld [vmem:[%s10538_s7 + $0x60] sm:$0xff]  ;;  %v777_v9 = vadd.f32 %v8073_v7, %v698_v61  ;;  %v622_v11 = vld [vmem:[%s8104_s24 + $0x48] sm:$0xff]  ;;  %v2068_v24 = vld [vmem:[%s10538_s7 + $0x50] sm:$0xff] }
  0x1b   : > { %6862 = vmatprep.subr.mxu0 %v919_v13  ;;  %v846_v2 = vmax.f32 %v774_v57, 0.0  ;;  %v700_v10 = vmul.f32 %v8064_v4, %v621_v0  ;;  %6993 = vmatpush3.msra.mxu1 %v2071_v48  ;;  %v702_v20 = vmul.f32 %v8064_v4, %v623_v12  ;;  %v625_v22 = vld [vmem:[%s8104_s24 + $0x60] sm:$0xff]  ;;  %v626_v31 = vld [vmem:[%s8104_s24 + $0x68] sm:$0xff]  ;;  %v627_v32 = vld [vmem:[%s8104_s24 + $0x70] sm:$0xff] }
  0x1c   : > { %6863 = vmatpush3.msra.mxu0 %v919_v13  ;;  %v847_v8 = vmax.f32 %v775_v60, 0.0  ;;  %6994 = vmatprep.subr.mxu1 %v2070_v6  ;;  %v6135_v13 = vld [vmem:[%s10538_s7 + $0xd0] sm:$0xff]  ;;  %v849_v18 = vmax.f32 %v777_v9, 0.0  ;;  %v704_v30 = vmul.f32 %v8064_v4, %v625_v22  ;;  %v705_v37 = vmul.f32 %v8064_v4, %v626_v31  ;;  %v628_v42 = vld [vmem:[%s8104_s24 + $0x78] sm:$0xff]  ;;  %v2066_v43 = vld [vmem:[%s10538_s7 + $0x40] sm:$0xff] }
  0x1d   : > { %6864 = vmatprep.subr.mxu0 %v918_v14  ;;  %6995 = vmatpush3.msra.mxu1 %v2070_v6  ;;  %v781_v29 = vadd.f32 %v8073_v7, %v702_v20  ;;  %v706_v41 = vmul.f32 %v8064_v4, %v627_v32  ;;  %v707_v48 = vmul.f32 %v8064_v4, %v628_v42  ;;  %v631_v54 = vld [vmem:[%s8104_s24 + $0x90] sm:$0xff]  ;;  %v632_v61 = vld [vmem:[%s8104_s24 + $0x98] sm:$0xff]  ;;  %v633_v62 = vld [vmem:[%s8104_s24 + $0xa0] sm:$0xff] }
  0x1e   : > { %6865 = vmatpush3.msra.mxu0 %v918_v14  ;;  %v848_v14 = vmax.f32 %v776_v3, 0.0  ;;  %6996 = vmatprep.subr.mxu1 %v2069_v17  ;;  %v783_v40 = vadd.f32 %v8073_v7, %v704_v30  ;;  %v784_v47 = vadd.f32 %v8073_v7, %v705_v37  ;;  %v710_v60 = vmul.f32 %v8064_v4, %v631_v54  ;;  %v634_v6 = vld [vmem:[%s8104_s24 + $0xa8] sm:$0xff]  ;;  %v640_v31 = vld [vmem:[%s8104_s24 + $0xd8] sm:$0xff]  ;;  %v641_v32 = vld [vmem:[%s8104_s24 + $0xe0] sm:$0xff] }
  0x1f   : > { %6866 = vmatprep.subr.mxu0 %v917_v15  ;;  %6997 = vmatpush3.msra.mxu1 %v2069_v17  ;;  %v853_v39 = vmax.f32 %v781_v29, 0.0  ;;  %v785_v51 = vadd.f32 %v8073_v7, %v706_v41 }
  0x20   : > { %6867 = vmatpush3.msra.mxu0 %v917_v15  ;;  %v778_v15 = vadd.f32 %v8073_v7, %v699_v5  ;;  %6998 = vmatprep.subr.mxu1 %v2068_v24  ;;  %v855_v50 = vmax.f32 %v783_v40, 0.0  ;;  %v789_v3 = vadd.f32 %v8073_v7, %v710_v60  ;;  %v712_v5 = vmul.f32 %v8064_v4, %v633_v62  ;;  %v643_v40 = vld [vmem:[%s8104_s24 + $0xf0] sm:$0xff] }
  0x21   : > { %6868 = vmatprep.subr.mxu0 %v916_v16  ;;  %6999 = vmatpush3.msra.mxu1 %v2068_v24  ;;  %v857_v58 = vmax.f32 %v785_v51, 0.0  ;;  %v639_v24 = vld [vmem:[%s8104_s24 + $0xd0] sm:$0xff] }
  0x22   : > { %6869 = vmatpush3.msra.mxu0 %v916_v16  ;;  %v701_v16 = vmul.f32 %v8064_v4, %v622_v11  ;;  %v713_v11 = vmul.f32 %v8064_v4, %v634_v6  ;;  %v861_v12 = vmax.f32 %v789_v3, 0.0  ;;  %v718_v30 = vmul.f32 %v8064_v4, %v639_v24  ;;  %v2064_v6 = vld [vmem:[%s10538_s7 + $0x30] sm:$0xff] }
  0x23   : > { %6870 = vmatprep.subr.mxu0 %v915_v19  ;;  %v6127_v24 = vld [vmem:[%s10538_s7 + $0x90] sm:$0xff] }
  0x24   : > { %6871 = vmatpush3.msra.mxu0 %v915_v19  ;;  %v779_v19 = vadd.f32 %v8073_v7, %v700_v10  ;;  %v780_v26 = vadd.f32 %v8073_v7, %v701_v16  ;;  %v637_v16 = vld [vmem:[%s8104_s24 + $0xc0] sm:$0xff]  ;;  %v797_v37 = vadd.f32 %v8073_v7, %v718_v30  ;;  %v6126_v30 = vld [vmem:[%s10538_s7 + $0x88] sm:$0xff] }
  0x25   : > { %6872 = vmatprep.subr.mxu0 %v914_v21  ;;  %v716_v22 = vmul.f32 %v8064_v4, %v637_v16 }
  0x26   : > { %6873 = vmatpush3.msra.mxu0 %v914_v21  ;;  %v624_v21 = vld [vmem:[%s8104_s24 + $0x58] sm:$0xff]  ;;  %v852_v35 = vmax.f32 %v780_v26, 0.0 }
  0x27   : > { %6874 = vmatprep.subr.mxu0 %v913_v25  ;;  %v703_v27 = vmul.f32 %v8064_v4, %v624_v21  ;;  %v795_v29 = vadd.f32 %v8073_v7, %v716_v22 }
  0x28   : > { %6875 = vmatpush3.msra.mxu0 %v913_v25  ;;  %v850_v25 = vmax.f32 %v778_v15, 0.0  ;;  %v636_v15 = vld [vmem:[%s8104_s24 + $0xb8] sm:$0xff] }
  0x29   : > { %6876 = vmatprep.subr.mxu0 %v912_v28  ;;  %v782_v36 = vadd.f32 %v8073_v7, %v703_v27 }
  0x2a   : > { %6877 = vmatpush3.msra.mxu0 %v912_v28  ;;  %v851_v28 = vmax.f32 %v779_v19, 0.0  ;;  %v715_v19 = vmul.f32 %v8064_v4, %v636_v15  ;;  %v6128_v15 = vld [vmem:[%s10538_s7 + $0x98] sm:$0xff] }
  0x2b   : > { %6878 = vmatprep.subr.mxu0 %v911_v33  ;;  %v854_v46 = vmax.f32 %v782_v36, 0.0  ;;  %v867_v36 = vmax.f32 %v795_v29, 0.0 }
  0x2c   : > { %6879 = vmatpush3.msra.mxu0 %v911_v33  ;;  %v6133_v33 = vld [vmem:[%s10538_s7 + $0xc0] sm:$0xff]  ;;  %v794_v26 = vadd.f32 %v8073_v7, %v715_v19 }
  0x2d   : > { %6881 = vmatmul.mubr.f32.vlgmr.msra.gmra.mxu0 %v840_v34  ;;  %7228 = vmatprep.subr.mxu0 %v6140_v44  ;;  %v2067_v34 = vld [vmem:[%s10538_s7 + $0x48] sm:$0xff]  ;;  %v2062_v19 = vld [vmem:[%s10538_s7 + $0x20] sm:$0xff] }
  0x2e   : > { %6883 = vmatprep.mubr.f32.mxu0 %v841_v38  ;;  %7229 = vmatpush3.msra.mxu0 %v6140_v44  ;;  %v6132_v38 = vld [vmem:[%s10538_s7 + $0xb8] sm:$0xff]  ;;  %v629_v44 = vld [vmem:[%s8104_s24 + $0x80] sm:$0xff] }
  0x2f   : > { %7230 = vmatprep.subr.mxu0 %v6139_v53  ;;  %7000 = vmatprep.subr.mxu1 %v2067_v34  ;;  %v708_v52 = vmul.f32 %v8064_v4, %v629_v44  ;;  %v869_v44 = vmax.f32 %v797_v37, 0.0  ;;  %v6125_v37 = vld [vmem:[%s10538_s7 + $0x80] sm:$0xff] }
  0x30   : > { %7231 = vmatpush3.msra.mxu0 %v6139_v53  ;;  %7001 = vmatpush3.msra.mxu1 %v2067_v34  ;;  %v630_v53 = vld [vmem:[%s8104_s24 + $0x88] sm:$0xff] }
  0x31   : > { %6884 = vmatmul.mubr.f32.gmra.mxu0 %v842_v45  ;;  %7232 = vmatprep.subr.mxu0 %v6138_v55  ;;  %v6131_v45 = vld [vmem:[%s10538_s7 + $0xb0] sm:$0xff]  ;;  %v709_v57 = vmul.f32 %v8064_v4, %v630_v53 }
  0x32   : > { %6886 = vmatprep.mubr.f32.mxu0 %v843_v49  ;;  %7233 = vmatpush3.msra.mxu0 %v6138_v55  ;;  %v2065_v49 = vld [vmem:[%s10538_s7 + $0x38] sm:$0xff]  ;;  %v856_v55 = vmax.f32 %v784_v47, 0.0 }
  0x33   : > { %7234 = vmatprep.subr.mxu0 %v6137_v63  ;;  %7002 = vmatprep.subr.mxu1 %v2066_v43  ;;  %v788_v0 = vadd.f32 %v8073_v7, %v709_v57  ;;  %v644_v47 = vld [vmem:[%s8104_s24 + $0xf8] sm:$0xff] }
  0x34   : > { %7235 = vmatpush3.msra.mxu0 %v6137_v63  ;;  %7003 = vmatpush3.msra.mxu1 %v2066_v43  ;;  %v723_v51 = vmul.f32 %v8064_v4, %v644_v47  ;;  %v657_v47 = vld [vmem:[%s8104_s24 + $0x160] sm:$0xff] }
  0x35   : > { %6887 = vmatmul.mubr.f32.gmra.mxu0 %v844_v56  ;;  %7236 = vmatprep.subr.mxu0 %v6136_v1  ;;  %v786_v56 = vadd.f32 %v8073_v7, %v707_v48  ;;  %v860_v9 = vmax.f32 %v788_v0, 0.0  ;;  %v645_v48 = vld [vmem:[%s8104_s24 + $0x100] sm:$0xff] }
  0x36   : > { %6889 = vmatprep.mubr.f32.mxu0 %v845_v59  ;;  %7237 = vmatpush3.msra.mxu0 %v6136_v1  ;;  %v787_v59 = vadd.f32 %v8073_v7, %v708_v52  ;;  %v711_v1 = vmul.f32 %v8064_v4, %v632_v61  ;;  %v724_v54 = vmul.f32 %v8064_v4, %v645_v48  ;;  %v649_v0 = vld [vmem:[%s8104_s24 + $0x120] sm:$0xff]  ;;  %v10545_v48 = vmov 0.0  }
  0x37   : > { %7238 = vmatprep.subr.mxu0 %v6135_v13  ;;  %7004 = vmatprep.subr.mxu1 %v2065_v49  ;;  %v858_v63 = vmax.f32 %v786_v56, 0.0  ;;  %v647_v56 = vld [vmem:[%s8104_s24 + $0x110] sm:$0xff] }
  0x38   : > { %7239 = vmatpush3.msra.mxu0 %v6135_v13  ;;  %7005 = vmatpush3.msra.mxu1 %v2065_v49  ;;  %v790_v10 = vadd.f32 %v8073_v7, %v711_v1  ;;  %v791_v13 = vadd.f32 %v8073_v7, %v712_v5  ;;  %v803_v61 = vadd.f32 %v8073_v7, %v724_v54  ;;  %v6130_v1 = vld [vmem:[%s10538_s7 + $0xa8] sm:$0xff] }
  0x39   : > { %6890 = vmatmul.mubr.f32.gmra.mxu0 %v846_v2  ;;  %7240 = vmatprep.subr.mxu0 %v6134_v23  ;;  %v859_v2 = vmax.f32 %v787_v59, 0.0  ;;  %v726_v62 = vmul.f32 %v8064_v4, %v647_v56  ;;  %v658_v56 = vld [vmem:[%s8104_s24 + $0x168] sm:$0xff] }
  0x3a   : > { %6892 = vmatprep.mubr.f32.mxu0 %v847_v8  ;;  %7241 = vmatpush3.msra.mxu0 %v6134_v23  ;;  %v635_v8 = vld [vmem:[%s8104_s24 + $0xb0] sm:$0xff]  ;;  %v862_v17 = vmax.f32 %v790_v10, 0.0  ;;  %v863_v20 = vmax.f32 %v791_v13, 0.0  ;;  %v638_v23 = vld [vmem:[%s8104_s24 + $0xc8] sm:$0xff]  ;;  %v728_v10 = vmul.f32 %v8064_v4, %v649_v0  ;;  %v660_v0 = vld [vmem:[%s8104_s24 + $0x178] sm:$0xff] }
  0x3b   : > { %7242 = vmatprep.subr.mxu0 %v6133_v33  ;;  %v717_v27 = vmul.f32 %v8064_v4, %v638_v23  ;;  %7006 = vmatprep.subr.mxu1 %v2064_v6  ;;  %v651_v13 = vld [vmem:[%s8104_s24 + $0x130] sm:$0xff]  ;;  %v652_v23 = vld [vmem:[%s8104_s24 + $0x138] sm:$0xff] }
  0x3c   : > { %7243 = vmatpush3.msra.mxu0 %v6133_v33  ;;  %v866_v33 = vmax.f32 %v794_v26, 0.0  ;;  %7007 = vmatpush3.msra.mxu1 %v2064_v6  ;;  %v730_v22 = vmul.f32 %v8064_v4, %v651_v13  ;;  %v2061_v26 = vld [vmem:[%s10538_s7 + $0x18] sm:$0xff]  ;;  %v731_v29 = vmul.f32 %v8064_v4, %v652_v23 }
  0x3d   : > { %6893 = vmatmul.mubr.f32.gmra.mxu0 %v848_v14  ;;  %7244 = vmatprep.subr.mxu0 %v6132_v38  ;;  %v714_v14 = vmul.f32 %v8064_v4, %v635_v8  ;;  %v796_v34 = vadd.f32 %v8073_v7, %v717_v27  ;;  %v875_v8 = vmax.f32 %v803_v61, 0.0 }
  0x3e   : > { %6895 = vmatprep.mubr.f32.mxu0 %v849_v18  ;;  %7245 = vmatpush3.msra.mxu0 %v6132_v38  ;;  %v792_v18 = vadd.f32 %v8073_v7, %v713_v11  ;;  %v720_v38 = vmul.f32 %v8064_v4, %v641_v32  ;;  %v650_v11 = vld [vmem:[%s8104_s24 + $0x128] sm:$0xff] }
  0x3f   : > { %7246 = vmatprep.subr.mxu0 %v6131_v45  ;;  %v793_v21 = vadd.f32 %v8073_v7, %v714_v14  ;;  %v868_v41 = vmax.f32 %v796_v34, 0.0  ;;  %v2063_v14 = vld [vmem:[%s10538_s7 + $0x28] sm:$0xff] }
  0x40   : > { %7247 = vmatpush3.msra.mxu0 %v6131_v45  ;;  %v799_v45 = vadd.f32 %v8073_v7, %v720_v38  ;;  %7008 = vmatprep.subr.mxu1 %v2063_v14  ;;  %v2059_v38 = vld [vmem:[%s10538_s7 + $0x8] sm:$0xff] }
  0x41   : > { %6896 = vmatmul.mubr.f32.gmra.mxu0 %v850_v25  ;;  %v864_v25 = vmax.f32 %v792_v18, 0.0  ;;  %7248 = vmatprep.subr.mxu0 %v6130_v1  ;;  %v729_v18 = vmul.f32 %v8064_v4, %v650_v11  ;;  %v663_v11 = vld [vmem:[%s8104_s24 + $0x190] sm:$0xff] }
  0x42   : > { %6898 = vmatprep.mubr.f32.mxu0 %v851_v28  ;;  %v865_v28 = vmax.f32 %v793_v21, 0.0  ;;  %v871_v52 = vmax.f32 %v799_v45, 0.0  ;;  %7249 = vmatpush3.msra.mxu0 %v6130_v1  ;;  %v807_v21 = vadd.f32 %v8073_v7, %v728_v10  ;;  %v656_v45 = vld [vmem:[%s8104_s24 + $0x158] sm:$0xff]  ;;  %v661_v1 = vld [vmem:[%s8104_s24 + $0x180] sm:$0xff]  ;;  %v662_v10 = vld [vmem:[%s8104_s24 + $0x188] sm:$0xff] }
  0x43   : > { %7009 = vmatpush3.msra.mxu1 %v2063_v14  ;;  %v741_v14 = vmul.f32 %v8064_v4, %v662_v10 }
  0x44   : > { %7010 = vmatprep.subr.mxu1 %v2062_v19  ;;  %v879_v32 = vmax.f32 %v807_v21, 0.0 }
  0x45   : > { %6899 = vmatmul.mubr.f32.gmra.mxu0 %v852_v35  ;;  %v719_v35 = vmul.f32 %v8064_v4, %v640_v31  ;;  %7011 = vmatpush3.msra.mxu1 %v2062_v19  ;;  %v2060_v31 = vld [vmem:[%s10538_s7 + $0x10] sm:$0xff]  ;;  %v665_v19 = vld [vmem:[%s8104_s24 + $0x1a0] sm:$0xff]  ;;  %v820_v21 = vadd.f32 %v8073_v7, %v741_v14  ;;  %v678_v14 = vld [vmem:[%s593_s21 + $0x8] sm:$0xff] }
  0x46   : > { %6901 = vmatprep.mubr.f32.mxu0 %v853_v39  ;;  %v642_v39 = vld [vmem:[%s8104_s24 + $0xe8] sm:$0xff]  ;;  %7012 = vmatprep.subr.mxu1 %v2061_v26 }
  0x47   : > { %v798_v42 = vadd.f32 %v8073_v7, %v719_v35  ;;  %v721_v43 = vmul.f32 %v8064_v4, %v642_v39  ;;  %v654_v35 = vld [vmem:[%s8104_s24 + $0x148] sm:$0xff]  ;;  %7013 = vmatpush3.msra.mxu1 %v2061_v26 }
  0x48   : > { %7014 = vmatprep.subr.mxu1 %v2060_v31  ;;  %v666_v26 = vld [vmem:[%s8104_s24 + $0x1a8] sm:$0xff] }
  0x49   : > { %6902 = vmatmul.mubr.f32.gmra.mxu0 %v854_v46  ;;  %v722_v46 = vmul.f32 %v8064_v4, %v643_v40  ;;  %v870_v49 = vmax.f32 %v798_v42, 0.0  ;;  %v810_v40 = vadd.f32 %v8073_v7, %v731_v29  ;;  %7015 = vmatpush3.msra.mxu1 %v2060_v31 }
  0x4a   : > { %6904 = vmatprep.mubr.f32.mxu0 %v855_v50  ;;  %v800_v50 = vadd.f32 %v8073_v7, %v721_v43  ;;  %7016 = vmatprep.subr.mxu1 %v2059_v38 }
  0x4b   : > { %v801_v53 = vadd.f32 %v8073_v7, %v722_v46  ;;  %v2058_v46 = vld [vmem:[%s10538_s7] sm:$0xff]  ;;  %7017 = vmatpush3.msra.mxu1 %v2059_v38 }
  0x4c   : > { %v872_v57 = vmax.f32 %v800_v50, 0.0  ;;  %v882_v50 = vmax.f32 %v810_v40, 0.0  ;;  %7018 = vmatprep.subr.mxu1 %v2058_v46 }
  0x4d   : > { %6905 = vmatmul.mubr.f32.gmra.mxu0 %v856_v55  ;;  %v646_v55 = vld [vmem:[%s8104_s24 + $0x108] sm:$0xff]  ;;  %v873_v60 = vmax.f32 %v801_v53, 0.0  ;;  %7019 = vmatpush3.msra.mxu1 %v2058_v46 }
  0x4e   : > { %6907 = vmatprep.mubr.f32.mxu0 %v857_v58  ;;  %v802_v58 = vadd.f32 %v8073_v7, %v723_v51  ;;  %v725_v59 = vmul.f32 %v8064_v4, %v646_v55  ;;  %v736_v55 = vmul.f32 %v8064_v4, %v657_v47 }
  0x50   : > { %v804_v3 = vadd.f32 %v8073_v7, %v725_v59 }
  0x51   : > { %6908 = vmatmul.mubr.f32.gmra.mxu0 %v858_v63  ;;  %v648_v63 = vld [vmem:[%s8104_s24 + $0x118] sm:$0xff] }
  0x52   : > { %6910 = vmatprep.mubr.f32.mxu0 %v859_v2  ;;  %v874_v2 = vmax.f32 %v802_v58, 0.0  ;;  %v727_v5 = vmul.f32 %v8064_v4, %v648_v63  ;;  %v876_v16 = vmax.f32 %v804_v3, 0.0 }
  0x55   : > { %6911 = vmatmul.mubr.f32.gmra.mxu0 %v860_v9  ;;  %v805_v9 = vadd.f32 %v8073_v7, %v726_v62  ;;  %v815_v62 = vadd.f32 %v8073_v7, %v736_v55 }
  0x56   : > { %6913 = vmatprep.mubr.f32.mxu0 %v861_v12  ;;  %v6129_v12 = vld [vmem:[%s10538_s7 + $0xa0] sm:$0xff] }
  0x57   : > { %7250 = vmatprep.subr.mxu0 %v6129_v12  ;;  %v887_v6 = vmax.f32 %v815_v62, 0.0 }
  0x58   : > { %7251 = vmatpush3.msra.mxu0 %v6129_v12 }
  0x59   : > { %6914 = vmatmul.mubr.f32.gmra.mxu0 %v862_v17  ;;  %v806_v17 = vadd.f32 %v8073_v7, %v727_v5  ;;  %7252 = vmatprep.subr.mxu0 %v6128_v15  ;;  %v739_v5 = vmul.f32 %v8064_v4, %v660_v0 }
  0x5a   : > { %6916 = vmatprep.mubr.f32.mxu0 %v863_v20  ;;  %v877_v20 = vmax.f32 %v805_v9, 0.0  ;;  %7253 = vmatpush3.msra.mxu0 %v6128_v15  ;;  %v740_v9 = vmul.f32 %v8064_v4, %v661_v1 }
  0x5b   : > { %v878_v27 = vmax.f32 %v806_v17, 0.0  ;;  %7254 = vmatprep.subr.mxu0 %v6127_v24  ;;  %v818_v13 = vadd.f32 %v8073_v7, %v739_v5  ;;  %v742_v17 = vmul.f32 %v8064_v4, %v663_v11  ;;  %v676_v5 = vld [vmem:[%s8104_s24 + $0x1f8] sm:$0xff] }
  0x5c   : > { %7255 = vmatpush3.msra.mxu0 %v6127_v24  ;;  %v755_v10 = vmul.f32 %v8064_v4, %v676_v5  ;;  %v8531_v5 = vld [vmem:[%s10537_s6] ss:$0 sm:$0xff] }
  0x5d   : > { %6917 = vmatmul.mubr.f32.gmra.mxu0 %v864_v25  ;;  %v653_v25 = vld [vmem:[%s8104_s24 + $0x140] sm:$0xff]  ;;  %7256 = vmatprep.subr.mxu0 %v6126_v30  ;;  %v821_v24 = vadd.f32 %v8073_v7, %v742_v17 }
  0x5e   : > { %6919 = vmatprep.mubr.f32.mxu0 %v865_v28  ;;  %v808_v28 = vadd.f32 %v8073_v7, %v729_v18  ;;  %v732_v34 = vmul.f32 %v8064_v4, %v653_v25  ;;  %7257 = vmatpush3.msra.mxu0 %v6126_v30  ;;  %v664_v18 = vld [vmem:[%s8104_s24 + $0x198] sm:$0xff]  ;;  %v744_v25 = vmul.f32 %v8064_v4, %v665_v19 }
  0x5f   : > { %7258 = vmatprep.subr.mxu0 %v6125_v37  ;;  %v745_v30 = vmul.f32 %v8064_v4, %v666_v26  ;;  %v893_v31 = vmax.f32 %v821_v24, 0.0  ;;  %v834_v17 = vadd.f32 %v8073_v7, %v755_v10 }
  0x60   : > { %v880_v39 = vmax.f32 %v808_v28, 0.0  ;;  %v811_v43 = vadd.f32 %v8073_v7, %v732_v34  ;;  %7259 = vmatpush3.msra.mxu0 %v6125_v37  ;;  %v892_v28 = vmax.f32 %v820_v21, 0.0  ;;  %v668_v34 = vld [vmem:[%s8104_s24 + $0x1b8] sm:$0xff] }
  0x61   : > { %6920 = vmatmul.mubr.f32.gmra.mxu0 %v866_v33  ;;  %v809_v33 = vadd.f32 %v8073_v7, %v730_v22  ;;  %v743_v22 = vmul.f32 %v8064_v4, %v664_v18  ;;  %v824_v37 = vadd.f32 %v8073_v7, %v745_v30  ;;  %v747_v38 = vmul.f32 %v8064_v4, %v668_v34  ;;  %v6104_v34 = vld [vmem:[%s10538_s7 + $0x1d8] sm:$0xff] }
  0x62   : > { %6922 = vmatprep.mubr.f32.mxu0 %v867_v36  ;;  %v655_v36 = vld [vmem:[%s8104_s24 + $0x150] sm:$0xff]  ;;  %v883_v53 = vmax.f32 %v811_v43, 0.0  ;;  %v757_v18 = vmul.f32 %v8064_v4, %v678_v14 }
  0x63   : > { %v881_v42 = vmax.f32 %v809_v33, 0.0  ;;  %v822_v29 = vadd.f32 %v8073_v7, %v743_v22  ;;  %v671_v43 = vld [vmem:[%s8104_s24 + $0x1d0] sm:$0xff]  ;;  %v680_v22 = vld [vmem:[%s593_s21 + $0x18] sm:$0xff] }
  0x64   : > { %v836_v24 = vadd.f32 %v8073_v7, %v757_v18 }
  0x65   : > { %6923 = vmatmul.mubr.f32.gmra.mxu0 %v868_v41  ;;  %v733_v41 = vmul.f32 %v8064_v4, %v654_v35  ;;  %v669_v35 = vld [vmem:[%s8104_s24 + $0x1c0] sm:$0xff] }
  0x66   : > { %6925 = vmatprep.mubr.f32.mxu0 %v869_v44  ;;  %v734_v44 = vmul.f32 %v8064_v4, %v655_v36  ;;  %v894_v36 = vmax.f32 %v822_v29, 0.0 }
  0x67   : > { %v812_v51 = vadd.f32 %v8073_v7, %v733_v41  ;;  %v748_v41 = vmul.f32 %v8064_v4, %v669_v35  ;;  %v6103_v35 = vld [vmem:[%s10538_s7 + $0x1d0] sm:$0xff] }
  0x68   : > { %v813_v54 = vadd.f32 %v8073_v7, %v734_v44  ;;  %v896_v44 = vmax.f32 %v824_v37, 0.0  ;;  %v6101_v37 = vld [vmem:[%s10538_s7 + $0x1c0] sm:$0xff] }
  0x69   : > { %6926 = vmatmul.mubr.f32.gmra.mxu0 %v870_v49  ;;  %v8351_v49 = vrot.slane %v10545_v48, 7  ;;  %v884_v58 = vmax.f32 %v812_v51, 0.0  ;;  %v750_v51 = vmul.f32 %v8064_v4, %v671_v43  ;;  %v6169_v43 = vld [vmem:[%s10538_s7 + $0x3e0] sm:$0xff] }
  0x6a   : > { %6928 = vmatprep.mubr.f32.mxu0 %v871_v52  ;;  %v735_v52 = vmul.f32 %v8064_v4, %v656_v45  ;;  %v885_v61 = vmax.f32 %v813_v54, 0.0  ;;  %v826_v45 = vadd.f32 %v8073_v7, %v747_v38  ;;  %v6172_v38 = vld [vmem:[%s10538_s7 + $0x3f8] sm:$0xff] }
  0x6b   : > { %10591 = vst [vmem:[#allocation3_spill] sm:$0xff] %v8351_v49  ;;  %7020 = vmatprep.mubr.f32.mxu1 %v8351_v49  ;;  %7388 = vmatprep.subr.mxu0 %v6172_v38 }
  0x6c   : > { %7021 = vmatmul.mubr.f32.vlgmr.msra.gmra.mxu1 %v8351_v49  ;;  %v814_v59 = vadd.f32 %v8073_v7, %v735_v52  ;;  %v672_v52 = vld [vmem:[%s8104_s24 + $0x1d8] sm:$0xff]  ;;  %v898_v54 = vmax.f32 %v826_v45, 0.0  ;;  %v6167_v45 = vld [vmem:[%s10538_s7 + $0x3d0] sm:$0xff] }
  0x6d   : > { %6929 = vmatmul.mubr.f32.gmra.mxu0 %v872_v57  ;;  %v659_v57 = vld [vmem:[%s8104_s24 + $0x170] sm:$0xff] }
  0x6e   : > { %6931 = vmatprep.mubr.f32.mxu0 %v873_v60  ;;  %v737_v60 = vmul.f32 %v8064_v4, %v658_v56  ;;  %v738_v63 = vmul.f32 %v8064_v4, %v659_v57  ;;  %v751_v56 = vmul.f32 %v8064_v4, %v672_v52  ;;  %v6164_v52 = vld [vmem:[%s10538_s7 + $0x3b8] sm:$0xff] }
  0x70   : > { %v816_v3 = vadd.f32 %v8073_v7, %v737_v60  ;;  %v674_v60 = vld [vmem:[%s8104_s24 + $0x1e8] sm:$0xff] }
  0x71   : > { %6932 = vmatmul.mubr.f32.gmra.mxu0 %v874_v2  ;;  %v886_v2 = vmax.f32 %v814_v59, 0.0  ;;  %v753_v0 = vmul.f32 %v8064_v4, %v674_v60  ;;  %v6159_v60 = vld [vmem:[%s10538_s7 + $0x390] sm:$0xff] }
  0x72   : > { %6934 = vmatprep.mubr.f32.mxu0 %v875_v8  ;;  %v817_v8 = vadd.f32 %v8073_v7, %v738_v63  ;;  %v888_v12 = vmax.f32 %v816_v3, 0.0  ;;  %v830_v63 = vadd.f32 %v8073_v7, %v751_v56  ;;  %v6095_v56 = vld [vmem:[%s10538_s7 + $0x190] sm:$0xff] }
  0x74   : > { %v889_v15 = vmax.f32 %v817_v8, 0.0  ;;  %v902_v8 = vmax.f32 %v830_v63, 0.0  ;;  %v6158_v63 = vld [vmem:[%s10538_s7 + $0x388] sm:$0xff] }
  0x75   : > { %6935 = vmatmul.mubr.f32.gmra.mxu0 %v876_v16  ;;  %v819_v16 = vadd.f32 %v8073_v7, %v740_v9  ;;  %v832_v9 = vadd.f32 %v8073_v7, %v753_v0 }
  0x76   : > { %6937 = vmatprep.mubr.f32.mxu0 %v877_v20  ;;  %v890_v20 = vmax.f32 %v818_v13, 0.0 }
  0x77   : > { %v891_v23 = vmax.f32 %v819_v16, 0.0  ;;  %v904_v16 = vmax.f32 %v832_v9, 0.0 }
  0x79   : > { %6938 = vmatmul.mubr.f32.gmra.mxu0 %v878_v27  ;;  %v667_v27 = vld [vmem:[%s8104_s24 + $0x1b0] sm:$0xff] }
  0x7a   : > { %6940 = vmatprep.mubr.f32.mxu0 %v879_v32  ;;  %v823_v32 = vadd.f32 %v8073_v7, %v744_v25  ;;  %v746_v33 = vmul.f32 %v8064_v4, %v667_v27  ;;  %v759_v25 = vmul.f32 %v8064_v4, %v680_v22 }
  0x7c   : > { %v825_v40 = vadd.f32 %v8073_v7, %v746_v33  ;;  %v838_v29 = vadd.f32 %v8073_v7, %v759_v25  ;;  %v6105_v33 = vld [vmem:[%s10538_s7 + $0x1e0] sm:$0xff] }
  0x7d   : > { %6941 = vmatmul.mubr.f32.gmra.mxu0 %v880_v39  ;;  %v895_v39 = vmax.f32 %v823_v32, 0.0  ;;  %v6108_v32 = vld [vmem:[%s10538_s7 + $0x1f8] sm:$0xff] }
  0x7e   : > { %6943 = vmatprep.mubr.f32.mxu0 %v881_v42  ;;  %v670_v42 = vld [vmem:[%s8104_s24 + $0x1c8] sm:$0xff]  ;;  %v897_v47 = vmax.f32 %v825_v40, 0.0  ;;  %7068 = vmatprep.subr.mxu1 %v6108_v32 }
  0x7f   : > { %v749_v46 = vmul.f32 %v8064_v4, %v670_v42  ;;  %7069 = vmatpush3.msra.mxu1 %v6108_v32  ;;  %v6170_v40 = vld [vmem:[%s10538_s7 + $0x3e8] sm:$0xff]  ;;  %v6099_v42 = vld [vmem:[%s10538_s7 + $0x1b0] sm:$0xff] }
  0x81   : > { %6944 = vmatmul.mubr.f32.gmra.mxu0 %v882_v50  ;;  %v827_v50 = vadd.f32 %v8073_v7, %v748_v41  ;;  %v828_v55 = vadd.f32 %v8073_v7, %v749_v46  ;;  %v6100_v41 = vld [vmem:[%s10538_s7 + $0x1b8] sm:$0xff]  ;;  %v6166_v46 = vld [vmem:[%s10538_s7 + $0x3c8] sm:$0xff] }
  0x82   : > { %6946 = vmatprep.mubr.f32.mxu0 %v883_v53  ;;  %v673_v53 = vld [vmem:[%s8104_s24 + $0x1e0] sm:$0xff] }
  0x83   : > { %v899_v57 = vmax.f32 %v827_v50, 0.0  ;;  %v752_v59 = vmul.f32 %v8064_v4, %v673_v53  ;;  %v900_v62 = vmax.f32 %v828_v55, 0.0  ;;  %v6097_v50 = vld [vmem:[%s10538_s7 + $0x1a0] sm:$0xff]  ;;  %v6163_v53 = vld [vmem:[%s10538_s7 + $0x3b0] sm:$0xff]  ;;  %v6096_v55 = vld [vmem:[%s10538_s7 + $0x198] sm:$0xff] }
  0x85   : > { %6947 = vmatmul.mubr.f32.gmra.mxu0 %v884_v58  ;;  %v829_v58 = vadd.f32 %v8073_v7, %v750_v51  ;;  %v6165_v51 = vld [vmem:[%s10538_s7 + $0x3c0] sm:$0xff] }
  0x86   : > { %6949 = vmatprep.mubr.f32.mxu0 %v885_v61  ;;  %v675_v61 = vld [vmem:[%s8104_s24 + $0x1f0] sm:$0xff] }
  0x87   : > { %v901_v1 = vmax.f32 %v829_v58, 0.0  ;;  %v754_v3 = vmul.f32 %v8064_v4, %v675_v61  ;;  %v6160_v58 = vld [vmem:[%s10538_s7 + $0x398] sm:$0xff]  ;;  %v6094_v61 = vld [vmem:[%s10538_s7 + $0x188] sm:$0xff] }
  0x89   : > { %6950 = vmatmul.mubr.f32.gmra.mxu0 %v886_v2  ;;  %v831_v2 = vadd.f32 %v8073_v7, %v752_v59 }
  0x8a   : > { %6952 = vmatprep.mubr.f32.mxu0 %v887_v6  ;;  %v677_v6 = vld [vmem:[%s593_s21] sm:$0xff] }
  0x8b   : > { %v903_v11 = vmax.f32 %v831_v2, 0.0  ;;  %v756_v13 = vmul.f32 %v8064_v4, %v677_v6  ;;  %v6157_v2 = vld [vmem:[%s10538_s7 + $0x380] sm:$0xff] }
  0x8d   : > { %6953 = vmatmul.mubr.f32.gmra.mxu0 %v888_v12  ;;  %v833_v12 = vadd.f32 %v8073_v7, %v754_v3 }
  0x8e   : > { %6955 = vmatprep.mubr.f32.mxu0 %v889_v15  ;;  %v679_v15 = vld [vmem:[%s593_s21 + $0x10] sm:$0xff] }
  0x8f   : > { %v905_v19 = vmax.f32 %v833_v12, 0.0  ;;  %v758_v21 = vmul.f32 %v8064_v4, %v679_v15  ;;  %v6107_v4 = vld [vmem:[%s10538_s7 + $0x1f0] sm:$0xff] }
  0x90   : > { %7070 = vmatprep.subr.mxu1 %v6107_v4 }
  0x91   : > { %6956 = vmatmul.mubr.f32.gmra.mxu0 %v890_v20  ;;  %v835_v20 = vadd.f32 %v8073_v7, %v756_v13  ;;  %v837_v27 = vadd.f32 %v8073_v7, %v758_v21  ;;  %7071 = vmatpush3.msra.mxu1 %v6107_v4  ;;  %v6106_v7 = vld [vmem:[%s10538_s7 + $0x1e8] sm:$0xff] }
  0x92   : > { %6958 = vmatprep.mubr.f32.mxu0 %v891_v23  ;;  %v906_v23 = vmax.f32 %v834_v17, 0.0  ;;  %7072 = vmatprep.subr.mxu1 %v6106_v7 }
  0x93   : > { %v907_v26 = vmax.f32 %v835_v20, 0.0  ;;  %v909_v30 = vmax.f32 %v837_v27, 0.0  ;;  %7073 = vmatpush3.msra.mxu1 %v6106_v7 }
  0x94   : > { %7074 = vmatprep.subr.mxu1 %v6105_v33 }
  0x95   : > { %6959 = vmatmul.mubr.f32.gmra.mxu0 %v892_v28  ;;  %v908_v28 = vmax.f32 %v836_v24, 0.0  ;;  %7075 = vmatpush3.msra.mxu1 %v6105_v33 }
  0x96   : > { %6961 = vmatprep.mubr.f32.mxu0 %v893_v31  ;;  %v910_v31 = vmax.f32 %v838_v29, 0.0  ;;  %7076 = vmatprep.subr.mxu1 %v6104_v34 }
  0x97   : > { %7077 = vmatpush3.msra.mxu1 %v6104_v34 }
  0x98   : > { %7078 = vmatprep.subr.mxu1 %v6103_v35 }
  0x99   : > { %6962 = vmatmul.mubr.f32.gmra.mxu0 %v894_v36  ;;  %7079 = vmatpush3.msra.mxu1 %v6103_v35  ;;  %v6102_v36 = vld [vmem:[%s10538_s7 + $0x1c8] sm:$0xff] }
  0x9a   : > { %6964 = vmatprep.mubr.f32.mxu0 %v895_v39  ;;  %7080 = vmatprep.subr.mxu1 %v6102_v36  ;;  %v6171_v39 = vld [vmem:[%s10538_s7 + $0x3f0] sm:$0xff] }
  0x9b   : > { %7081 = vmatpush3.msra.mxu1 %v6102_v36 }
  0x9c   : > { %7082 = vmatprep.subr.mxu1 %v6101_v37 }
  0x9d   : > { %6965 = vmatmul.mubr.f32.gmra.mxu0 %v896_v44  ;;  %7083 = vmatpush3.msra.mxu1 %v6101_v37  ;;  %v6168_v44 = vld [vmem:[%s10538_s7 + $0x3d8] sm:$0xff] }
  0x9e   : > { %6967 = vmatprep.mubr.f32.mxu0 %v897_v47  ;;  %7084 = vmatprep.subr.mxu1 %v6100_v41  ;;  %v6098_v47 = vld [vmem:[%s10538_s7 + $0x1a8] sm:$0xff] }
  0x9f   : > { %7085 = vmatpush3.msra.mxu1 %v6100_v41 }
  0xa0   : > { %7086 = vmatprep.subr.mxu1 %v6099_v42 }
  0xa1   : > { %6968 = vmatmul.mubr.f32.gmra.mxu0 %v898_v54  ;;  %7087 = vmatpush3.msra.mxu1 %v6099_v42  ;;  %v6162_v54 = vld [vmem:[%s10538_s7 + $0x3a8] sm:$0xff] }
  0xa2   : > { %6970 = vmatprep.mubr.f32.mxu0 %v899_v57  ;;  %7088 = vmatprep.subr.mxu1 %v6098_v47  ;;  %v6161_v57 = vld [vmem:[%s10538_s7 + $0x3a0] sm:$0xff] }
  0xa3   : > { %7089 = vmatpush3.msra.mxu1 %v6098_v47 }
  0xa4   : > { %7090 = vmatprep.subr.mxu1 %v6097_v50 }
  0xa5   : > { %6971 = vmatmul.mubr.f32.gmra.mxu0 %v900_v62  ;;  %7091 = vmatpush3.msra.mxu1 %v6097_v50 }
  0xa6   : > { %6973 = vmatprep.mubr.f32.mxu0 %v901_v1  ;;  %7092 = vmatprep.subr.mxu1 %v6096_v55  ;;  %v6093_v1 = vld [vmem:[%s10538_s7 + $0x180] sm:$0xff] }
  0xa7   : > { %7093 = vmatpush3.msra.mxu1 %v6096_v55 }
  0xa8   : > { %7094 = vmatprep.subr.mxu1 %v6095_v56 }
  0xa9   : > { %6974 = vmatmul.mubr.f32.gmra.mxu0 %v902_v8  ;;  %7095 = vmatpush3.msra.mxu1 %v6095_v56  ;;  %v8536_v8 = vld [vmem:[%s10538_s7 + $0x378] sm:$0xff] }
  0xaa   : > { %6976 = vmatprep.mubr.f32.mxu0 %v903_v11  ;;  %7096 = vmatprep.subr.mxu1 %v6094_v61 }
  0xab   : > { %7097 = vmatpush3.msra.mxu1 %v6094_v61 }
  0xac   : > { %7098 = vmatprep.subr.mxu1 %v6093_v1 }
  0xad   : > { %6977 = vmatmul.mubr.f32.gmra.mxu0 %v904_v16  ;;  %7099 = vmatpush3.msra.mxu1 %v6093_v1 }
  0xae   : > { %6979 = vmatprep.mubr.f32.mxu0 %v905_v19  ;;  %7148 = vmatprep.subr.mxu1 %v8536_v8 }
  0xb1   : > { %6980 = vmatmul.mubr.f32.gmra.mxu0 %v906_v23 }
  0xb2   : > { %6982 = vmatprep.mubr.f32.mxu0 %v907_v26 }
  0xb5   : > { %6983 = vmatmul.mubr.f32.gmra.mxu0 %v908_v28 }
  0xb6   : > { %6985 = vmatprep.mubr.f32.mxu0 %v909_v30 }
  0xb9   : > { %6986 = vmatmul.mubr.f32.gmra.mxu0 %v910_v31 }
  0xba   : > { %7260 = vmatprep.mubr.f32.mxu0 %v10545_v48 }
  0xbd   : > { %7261 = vmatmul.mubr.f32.vlgmr.msra.gmra.mxu0 %v10545_v48 }
  0xbe   : > { %7389 = vmatpush3.msra.mxu0 %v6172_v38 }
  0xbf   : > { %7390 = vmatprep.subr.mxu0 %v6171_v39 }
  0xc0   : > { %7391 = vmatpush3.msra.mxu0 %v6171_v39 }
  0xc1   : > { %7392 = vmatprep.subr.mxu0 %v6170_v40 }
  0xc2   : > { %7393 = vmatpush3.msra.mxu0 %v6170_v40 }
  0xc3   : > { %7394 = vmatprep.subr.mxu0 %v6169_v43 }
  0xc4   : > { %7395 = vmatpush3.msra.mxu0 %v6169_v43 }
  0xc5   : > { %7396 = vmatprep.subr.mxu0 %v6168_v44 }
  0xc6   : > { %7397 = vmatpush3.msra.mxu0 %v6168_v44 }
  0xc7   : > { %7398 = vmatprep.subr.mxu0 %v6167_v45 }
  0xc8   : > { %7399 = vmatpush3.msra.mxu0 %v6167_v45 }
  0xc9   : > { %7400 = vmatprep.subr.mxu0 %v6166_v46 }
  0xca   : > { %7401 = vmatpush3.msra.mxu0 %v6166_v46 }
  0xcb   : > { %7402 = vmatprep.subr.mxu0 %v6165_v51 }
  0xcc   : > { %7403 = vmatpush3.msra.mxu0 %v6165_v51 }
  0xcd   : > { %7404 = vmatprep.subr.mxu0 %v6164_v52 }
  0xce   : > { %7405 = vmatpush3.msra.mxu0 %v6164_v52 }
  0xcf   : > { %7406 = vmatprep.subr.mxu0 %v6163_v53 }
  0xd0   : > { %7407 = vmatpush3.msra.mxu0 %v6163_v53  ;;  %v8609_v53 = vld [vmem:[%s10538_s7 + $0x2f8] sm:$0xff] }
  0xd1   : > { %7408 = vmatprep.subr.mxu0 %v6162_v54 }
  0xd2   : > { %7409 = vmatpush3.msra.mxu0 %v6162_v54 }
  0xd3   : > { %7410 = vmatprep.subr.mxu0 %v6161_v57 }
  0xd4   : > { %7411 = vmatpush3.msra.mxu0 %v6161_v57 }
  0xd5   : > { %7412 = vmatprep.subr.mxu0 %v6160_v58 }
  0xd6   : > { %7413 = vmatpush3.msra.mxu0 %v6160_v58 }
  0xd7   : > { %7414 = vmatprep.subr.mxu0 %v6159_v60 }
  0xd8   : > { %7415 = vmatpush3.msra.mxu0 %v6159_v60 }
  0xd9   : > { %7416 = vmatprep.subr.mxu0 %v6158_v63 }
  0xda   : > { %7417 = vmatpush3.msra.mxu0 %v6158_v63 }
  0xdb   : > { %7418 = vmatprep.subr.mxu0 %v6157_v2 }
  0xdc   : > { %7419 = vmatpush3.msra.mxu0 %v6157_v2 }
  0xdd   : > { %7548 = vmatprep.subr.mxu0 %v8609_v53 }
  0xed   : > { %v6882_v59 = vpop.f32.mrf.mxu0 }
  0xef   : > { %v1000_v62 = vpop.f32.mrf.mxu0 }
  0xf1   : > { %v6885_v0 = vpop.f32.mrf.mxu0 }
  0xf3   : > { %v1010_v3 = vpop.f32.mrf.mxu0 }
  0xf5   : > { %v6888_v6 = vpop.f32.mrf.mxu0 }
  0xf6   : > { %v1026_v9 = vadd.f32 %v6888_v6, %v8531_v5 }
  0xf7   : > { %v1020_v10 = vpop.f32.mrf.mxu0 }
  0xf8   : > { %v8540_v11 = vmax.f32 %v1026_v9, 0.0 }
  0xf9   : > { %v6891_v12 = vpop.f32.mrf.mxu0 }
  0xfa   : > { %10592 = vst [vmem:[#allocation4_spill] sm:$0xff] %v8540_v11  ;;  %7263 = vmatprep.mubr.f32.mxu0 %v8540_v11  ;;  %v1938_v13 = vrot.slane %v8540_v11, 7 }
  0xfb   : > { %v1030_v14 = vpop.f32.mrf.mxu0 }
  0xfc   : > { %v1031_v15 = vadd.f32 %v8531_v5, %v1030_v14  ;;  %v8547_v16 = vsel %vm1931_vm0, %v8351_v49, %v1938_v13 }
  0xfd   : > { %v6894_v17 = vpop.f32.mrf.mxu0  ;;  %7023 = vmatprep.mubr.f32.mxu1 %v8547_v16 }
  0xfe   : > { %v8550_v18 = vmax.f32 %v1031_v15, 0.0  ;;  %v1046_v19 = vadd.f32 %v6894_v17, %v8531_v5 }
  0xff   : > { %v1040_v20 = vpop.f32.mrf.mxu0 }
 0x100   : > { %10593 = vst [vmem:[#allocation5_spill] sm:$0xff] %v8550_v18  ;;  %v8553_v21 = vmax.f32 %v1046_v19, 0.0  ;;  %7264 = vmatmul.mubr.f32.gmra.mxu0 %v8550_v18  ;;  %v1940_v22 = vrot.slane %v8550_v18, 7 }
 0x101   : > { %v6897_v23 = vpop.f32.mrf.mxu0 }
 0x102   : > { %7266 = vmatprep.mubr.f32.mxu0 %v8553_v21  ;;  %v8559_v24 = vsel %vm1931_vm0, %v1938_v13, %v1940_v22  ;;  %v1943_v25 = vrot.slane %v8553_v21, 7 }
 0x103   : > { %v1050_v26 = vpop.f32.mrf.mxu0  ;;  %7024 = vmatmul.mubr.f32.gmra.mxu1 %v8559_v24 }
 0x104   : > { %v1051_v27 = vadd.f32 %v8531_v5, %v1050_v26  ;;  %v8566_v28 = vsel %vm1931_vm0, %v8351_v49, %v1943_v25 }
 0x105   : > { %v6900_v29 = vpop.f32.mrf.mxu0  ;;  %7026 = vmatprep.mubr.f32.mxu1 %v8566_v28 }
 0x106   : > { %v8569_v30 = vmax.f32 %v1051_v27, 0.0  ;;  %v1066_v31 = vadd.f32 %v6900_v29, %v8531_v5 }
 0x107   : > { %v1060_v32 = vpop.f32.mrf.mxu0 }
 0x108   : > { %v8572_v4 = vmax.f32 %v1066_v31, 0.0  ;;  %7267 = vmatmul.mubr.f32.gmra.mxu0 %v8569_v30  ;;  %v1945_v7 = vrot.slane %v8569_v30, 7 }
 0x109   : > { %v6903_v33 = vpop.f32.mrf.mxu0 }
 0x10a   : > { %7269 = vmatprep.mubr.f32.mxu0 %v8572_v4  ;;  %v8578_v34 = vsel %vm1931_vm0, %v1943_v25, %v1945_v7  ;;  %v1948_v35 = vrot.slane %v8572_v4, 7 }
 0x10b   : > { %v1070_v36 = vpop.f32.mrf.mxu0  ;;  %7027 = vmatmul.mubr.f32.gmra.mxu1 %v8578_v34 }
 0x10c   : > { %v1071_v37 = vadd.f32 %v8531_v5, %v1070_v36  ;;  %v8585_v38 = vsel %vm1931_vm0, %v8351_v49, %v1948_v35 }
 0x10d   : > { %v6906_v39 = vpop.f32.mrf.mxu0  ;;  %7029 = vmatprep.mubr.f32.mxu1 %v8585_v38 }
 0x10e   : > { %v8588_v40 = vmax.f32 %v1071_v37, 0.0  ;;  %v1086_v41 = vadd.f32 %v6906_v39, %v8531_v5 }
 0x10f   : > { %v1080_v42 = vpop.f32.mrf.mxu0 }
 0x110   : > { %v8591_v43 = vmax.f32 %v1086_v41, 0.0  ;;  %7270 = vmatmul.mubr.f32.gmra.mxu0 %v8588_v40  ;;  %v1950_v44 = vrot.slane %v8588_v40, 7 }
 0x111   : > { %v6909_v45 = vpop.f32.mrf.mxu0 }
 0x112   : > { %7272 = vmatprep.mubr.f32.mxu0 %v8591_v43  ;;  %v8597_v46 = vsel %vm1931_vm0, %v1948_v35, %v1950_v44  ;;  %v1953_v47 = vrot.slane %v8591_v43, 7 }
 0x113   : > { %v1090_v50 = vpop.f32.mrf.mxu0  ;;  %7030 = vmatmul.mubr.f32.gmra.mxu1 %v8597_v46 }
 0x114   : > { %v1091_v51 = vadd.f32 %v8531_v5, %v1090_v50  ;;  %v8604_v52 = vsel %vm1931_vm0, %v8351_v49, %v1953_v47 }
 0x115   : > { %v6912_v54 = vpop.f32.mrf.mxu0  ;;  %7032 = vmatprep.mubr.f32.mxu1 %v8604_v52 }
 0x116   : > { %v8613_v55 = vmax.f32 %v1091_v51, 0.0  ;;  %v1106_v56 = vadd.f32 %v6912_v54, %v8531_v5 }
 0x117   : > { %v1100_v57 = vpop.f32.mrf.mxu0 }
 0x118   : > { %v8616_v58 = vmax.f32 %v1106_v56, 0.0  ;;  %7273 = vmatmul.mubr.f32.gmra.mxu0 %v8613_v55  ;;  %v1955_v59 = vrot.slane %v8613_v55, 7 }
 0x119   : > { %v6915_v60 = vpop.f32.mrf.mxu0 }
 0x11a   : > { %7275 = vmatprep.mubr.f32.mxu0 %v8616_v58  ;;  %v8622_v61 = vsel %vm1931_vm0, %v1953_v47, %v1955_v59  ;;  %v1958_v62 = vrot.slane %v8616_v58, 7 }
 0x11b   : > { %v1110_v63 = vpop.f32.mrf.mxu0  ;;  %7033 = vmatmul.mubr.f32.gmra.mxu1 %v8622_v61 }
 0x11c   : > { %v1111_v0 = vadd.f32 %v8531_v5, %v1110_v63  ;;  %v8629_v1 = vsel %vm1931_vm0, %v8351_v49, %v1958_v62 }
 0x11d   : > { %v6918_v2 = vpop.f32.mrf.mxu0  ;;  %7035 = vmatprep.mubr.f32.mxu1 %v8629_v1 }
 0x11e   : > { %v8632_v3 = vmax.f32 %v1111_v0, 0.0  ;;  %v1126_v6 = vadd.f32 %v6918_v2, %v8531_v5 }
 0x11f   : > { %v1120_v9 = vpop.f32.mrf.mxu0 }
 0x120   : > { %v8635_v10 = vmax.f32 %v1126_v6, 0.0  ;;  %7276 = vmatmul.mubr.f32.gmra.mxu0 %v8632_v3  ;;  %v1960_v12 = vrot.slane %v8632_v3, 7 }
 0x121   : > { %v6921_v13 = vpop.f32.mrf.mxu0 }
 0x122   : > { %7278 = vmatprep.mubr.f32.mxu0 %v8635_v10  ;;  %v8641_v14 = vsel %vm1931_vm0, %v1958_v62, %v1960_v12  ;;  %v1963_v15 = vrot.slane %v8635_v10, 7 }
 0x123   : > { %v1130_v17 = vpop.f32.mrf.mxu0  ;;  %7036 = vmatmul.mubr.f32.gmra.mxu1 %v8641_v14 }
 0x124   : > { %v1131_v19 = vadd.f32 %v8531_v5, %v1130_v17  ;;  %v8648_v20 = vsel %vm1931_vm0, %v8351_v49, %v1963_v15 }
 0x125   : > { %v6924_v22 = vpop.f32.mrf.mxu0  ;;  %7038 = vmatprep.mubr.f32.mxu1 %v8648_v20 }
 0x126   : > { %v8651_v23 = vmax.f32 %v1131_v19, 0.0  ;;  %v1146_v25 = vadd.f32 %v6924_v22, %v8531_v5 }
 0x127   : > { %v1140_v26 = vpop.f32.mrf.mxu0 }
 0x128   : > { %v8654_v27 = vmax.f32 %v1146_v25, 0.0  ;;  %7279 = vmatmul.mubr.f32.gmra.mxu0 %v8651_v23  ;;  %v1965_v29 = vrot.slane %v8651_v23, 7 }
 0x129   : > { %v6927_v31 = vpop.f32.mrf.mxu0 }
 0x12a   : > { %7281 = vmatprep.mubr.f32.mxu0 %v8654_v27  ;;  %v8660_v32 = vsel %vm1931_vm0, %v1963_v15, %v1965_v29  ;;  %v1968_v7 = vrot.slane %v8654_v27, 7 }
 0x12b   : > { %v1150_v33 = vpop.f32.mrf.mxu0  ;;  %7039 = vmatmul.mubr.f32.gmra.mxu1 %v8660_v32 }
 0x12c   : > { %v1151_v35 = vadd.f32 %v8531_v5, %v1150_v33  ;;  %v8667_v36 = vsel %vm1931_vm0, %v8351_v49, %v1968_v7 }
 0x12d   : > { %v6930_v37 = vpop.f32.mrf.mxu0  ;;  %7041 = vmatprep.mubr.f32.mxu1 %v8667_v36 }
 0x12e   : > { %v8670_v39 = vmax.f32 %v1151_v35, 0.0  ;;  %v1166_v41 = vadd.f32 %v6930_v37, %v8531_v5 }
 0x12f   : > { %v1160_v42 = vpop.f32.mrf.mxu0 }
 0x130   : > { %v8673_v44 = vmax.f32 %v1166_v41, 0.0  ;;  %7282 = vmatmul.mubr.f32.gmra.mxu0 %v8670_v39  ;;  %v1970_v45 = vrot.slane %v8670_v39, 7 }
 0x131   : > { %v6933_v47 = vpop.f32.mrf.mxu0 }
 0x132   : > { %7284 = vmatprep.mubr.f32.mxu0 %v8673_v44  ;;  %v8679_v50 = vsel %vm1931_vm0, %v1968_v7, %v1970_v45  ;;  %v1973_v51 = vrot.slane %v8673_v44, 7 }
 0x133   : > { %v1170_v54 = vpop.f32.mrf.mxu0  ;;  %7042 = vmatmul.mubr.f32.gmra.mxu1 %v8679_v50 }
 0x134   : > { %v1171_v56 = vadd.f32 %v8531_v5, %v1170_v54  ;;  %v8686_v57 = vsel %vm1931_vm0, %v8351_v49, %v1973_v51 }
 0x135   : > { %v6936_v59 = vpop.f32.mrf.mxu0  ;;  %7044 = vmatprep.mubr.f32.mxu1 %v8686_v57 }
 0x136   : > { %v8689_v60 = vmax.f32 %v1171_v56, 0.0  ;;  %v1186_v62 = vadd.f32 %v6936_v59, %v8531_v5 }
 0x137   : > { %v1180_v63 = vpop.f32.mrf.mxu0 }
 0x138   : > { %v8692_v0 = vmax.f32 %v1186_v62, 0.0  ;;  %7285 = vmatmul.mubr.f32.gmra.mxu0 %v8689_v60  ;;  %v1975_v2 = vrot.slane %v8689_v60, 7 }
 0x139   : > { %v6939_v6 = vpop.f32.mrf.mxu0 }
 0x13a   : > { %7287 = vmatprep.mubr.f32.mxu0 %v8692_v0  ;;  %v8698_v9 = vsel %vm1931_vm0, %v1973_v51, %v1975_v2  ;;  %v1978_v12 = vrot.slane %v8692_v0, 7 }
 0x13b   : > { %v1190_v13 = vpop.f32.mrf.mxu0  ;;  %7045 = vmatmul.mubr.f32.gmra.mxu1 %v8698_v9 }
 0x13c   : > { %v1191_v15 = vadd.f32 %v8531_v5, %v1190_v13  ;;  %v8705_v17 = vsel %vm1931_vm0, %v8351_v49, %v1978_v12 }
 0x13d   : > { %v6942_v19 = vpop.f32.mrf.mxu0  ;;  %7047 = vmatprep.mubr.f32.mxu1 %v8705_v17 }
 0x13e   : > { %v8708_v22 = vmax.f32 %v1191_v15, 0.0  ;;  %v1206_v25 = vadd.f32 %v6942_v19, %v8531_v5 }
 0x13f   : > { %v1200_v26 = vpop.f32.mrf.mxu0 }
 0x140   : > { %v8711_v29 = vmax.f32 %v1206_v25, 0.0  ;;  %7288 = vmatmul.mubr.f32.gmra.mxu0 %v8708_v22  ;;  %v1980_v31 = vrot.slane %v8708_v22, 7 }
 0x141   : > { %v6945_v7 = vpop.f32.mrf.mxu0 }
 0x142   : > { %7290 = vmatprep.mubr.f32.mxu0 %v8711_v29  ;;  %v8717_v33 = vsel %vm1931_vm0, %v1978_v12, %v1980_v31  ;;  %v1983_v35 = vrot.slane %v8711_v29, 7 }
 0x143   : > { %v1210_v37 = vpop.f32.mrf.mxu0  ;;  %7048 = vmatmul.mubr.f32.gmra.mxu1 %v8717_v33 }
 0x144   : > { %v1211_v41 = vadd.f32 %v8531_v5, %v1210_v37  ;;  %v8724_v42 = vsel %vm1931_vm0, %v8351_v49, %v1983_v35 }
 0x145   : > { %v6948_v45 = vpop.f32.mrf.mxu0  ;;  %7050 = vmatprep.mubr.f32.mxu1 %v8724_v42 }
 0x146   : > { %v8727_v47 = vmax.f32 %v1211_v41, 0.0  ;;  %v1226_v51 = vadd.f32 %v6948_v45, %v8531_v5 }
 0x147   : > { %v1220_v54 = vpop.f32.mrf.mxu0 }
 0x148   : > { %v8730_v56 = vmax.f32 %v1226_v51, 0.0  ;;  %7291 = vmatmul.mubr.f32.gmra.mxu0 %v8727_v47  ;;  %v1985_v59 = vrot.slane %v8727_v47, 7 }
 0x149   : > { %v6951_v62 = vpop.f32.mrf.mxu0 }
 0x14a   : > { %7293 = vmatprep.mubr.f32.mxu0 %v8730_v56  ;;  %v8736_v63 = vsel %vm1931_vm0, %v1983_v35, %v1985_v59  ;;  %v1988_v2 = vrot.slane %v8730_v56, 7 }
 0x14b   : > { %v1230_v6 = vpop.f32.mrf.mxu0  ;;  %7051 = vmatmul.mubr.f32.gmra.mxu1 %v8736_v63 }
 0x14c   : > { %v1231_v12 = vadd.f32 %v8531_v5, %v1230_v6  ;;  %v8743_v13 = vsel %vm1931_vm0, %v8351_v49, %v1988_v2 }
 0x14d   : > { %v6954_v15 = vpop.f32.mrf.mxu0  ;;  %7053 = vmatprep.mubr.f32.mxu1 %v8743_v13 }
 0x14e   : > { %v8746_v19 = vmax.f32 %v1231_v12, 0.0  ;;  %v1246_v25 = vadd.f32 %v6954_v15, %v8531_v5 }
 0x14f   : > { %v1240_v26 = vpop.f32.mrf.mxu0 }
 0x150   : > { %v8749_v31 = vmax.f32 %v1246_v25, 0.0  ;;  %7294 = vmatmul.mubr.f32.gmra.mxu0 %v8746_v19  ;;  %v1990_v7 = vrot.slane %v8746_v19, 7 }
 0x151   : > { %v6957_v35 = vpop.f32.mrf.mxu0 }
 0x152   : > { %7296 = vmatprep.mubr.f32.mxu0 %v8749_v31  ;;  %v8755_v37 = vsel %vm1931_vm0, %v1988_v2, %v1990_v7  ;;  %v1993_v41 = vrot.slane %v8749_v31, 7 }
 0x153   : > { %v1250_v45 = vpop.f32.mrf.mxu0  ;;  %7054 = vmatmul.mubr.f32.gmra.mxu1 %v8755_v37 }
 0x154   : > { %v1251_v51 = vadd.f32 %v8531_v5, %v1250_v45  ;;  %v8762_v54 = vsel %vm1931_vm0, %v8351_v49, %v1993_v41 }
 0x155   : > { %v6960_v59 = vpop.f32.mrf.mxu0  ;;  %7056 = vmatprep.mubr.f32.mxu1 %v8762_v54 }
 0x156   : > { %v8765_v62 = vmax.f32 %v1251_v51, 0.0  ;;  %v1266_v6 = vadd.f32 %v6960_v59, %v8531_v5 }
 0x157   : > { %v1260_v2 = vpop.f32.mrf.mxu0 }
 0x158   : > { %v8768_v12 = vmax.f32 %v1266_v6, 0.0  ;;  %7297 = vmatmul.mubr.f32.gmra.mxu0 %v8765_v62  ;;  %v1995_v15 = vrot.slane %v8765_v62, 7 }
 0x159   : > { %v6963_v25 = vpop.f32.mrf.mxu0 }
 0x15a   : > { %7299 = vmatprep.mubr.f32.mxu0 %v8768_v12  ;;  %v8774_v26 = vsel %vm1931_vm0, %v1993_v41, %v1995_v15  ;;  %v1998_v7 = vrot.slane %v8768_v12, 7 }
 0x15b   : > { %10594 = vst [vmem:[#allocation6_spill] sm:$0xff] %v8774_v26  ;;  %v1270_v35 = vpop.f32.mrf.mxu0  ;;  %7057 = vmatmul.mubr.f32.gmra.mxu1 %v8774_v26 }
 0x15c   : > { %v1271_v45 = vadd.f32 %v8531_v5, %v1270_v35  ;;  %v8781_v51 = vsel %vm1931_vm0, %v8351_v49, %v1998_v7 }
 0x15d   : > { %10595 = vst [vmem:[#allocation7_spill] sm:$0xff] %v8781_v51  ;;  %v6966_v59 = vpop.f32.mrf.mxu0  ;;  %7059 = vmatprep.mubr.f32.mxu1 %v8781_v51 }
 0x15e   : > { %v8784_v6 = vmax.f32 %v1271_v45, 0.0  ;;  %v1286_v2 = vadd.f32 %v6966_v59, %v8531_v5 }
 0x15f   : > { %v1280_v41 = vpop.f32.mrf.mxu0 }
 0x160   : > { %v8787_v15 = vmax.f32 %v1286_v2, 0.0  ;;  %7300 = vmatmul.mubr.f32.gmra.mxu0 %v8784_v6  ;;  %v2000_v25 = vrot.slane %v8784_v6, 7 }
 0x161   : > { %v6969_v48 = vpop.f32.mrf.mxu0 }
 0x162   : > { %7302 = vmatprep.mubr.f32.mxu0 %v8787_v15  ;;  %v8793_v35 = vsel %vm1931_vm0, %v1998_v7, %v2000_v25  ;;  %v2003_v11 = vrot.slane %v8787_v15, 7 }
 0x163   : > { %10596 = vst [vmem:[#allocation8_spill] sm:$0xff] %v8793_v35  ;;  %v1290_v18 = vpop.f32.mrf.mxu0  ;;  %7060 = vmatmul.mubr.f32.gmra.mxu1 %v8793_v35 }
 0x164   : > { %v1291_v45 = vadd.f32 %v8531_v5, %v1290_v18  ;;  %v8800_v59 = vsel %vm1931_vm0, %v8351_v49, %v2003_v11 }
 0x165   : > { %10597 = vst [vmem:[#allocation9_spill] sm:$0xff] %v8800_v59  ;;  %v6972_v2 = vpop.f32.mrf.mxu0  ;;  %7062 = vmatprep.mubr.f32.mxu1 %v8800_v59 }
 0x166   : > { %v8803_v48 = vmax.f32 %v1291_v45, 0.0  ;;  %v1306_v41 = vadd.f32 %v6972_v2, %v8531_v5 }
 0x167   : > { %v1300_v7 = vpop.f32.mrf.mxu0 }
 0x168   : > { %v8806_v25 = vmax.f32 %v1306_v41, 0.0  ;;  %7303 = vmatmul.mubr.f32.gmra.mxu0 %v8803_v48  ;;  %v2005_v35 = vrot.slane %v8803_v48, 7 }
 0x169   : > { %v6975_v51 = vpop.f32.mrf.mxu0 }
 0x16a   : > { %10598 = vst [vmem:[#allocation10_spill] sm:$0xff] %v8806_v25  ;;  %7305 = vmatprep.mubr.f32.mxu0 %v8806_v25  ;;  %v8812_v18 = vsel %vm1931_vm0, %v2003_v11, %v2005_v35  ;;  %v2008_v26 = vrot.slane %v8806_v25, 7 }
 0x16b   : > { %10599 = vst [vmem:[#allocation11_spill] sm:$0xff] %v8812_v18  ;;  %v1310_v59 = vpop.f32.mrf.mxu0  ;;  %7063 = vmatmul.mubr.f32.gmra.mxu1 %v8812_v18 }
 0x16c   : > { %v1311_v45 = vadd.f32 %v8531_v5, %v1310_v59  ;;  %v8819_v2 = vsel %vm1931_vm0, %v8351_v49, %v2008_v26  ;;  %v6203_v49 = vld [vmem:[%s10538_s7 + $0x2f0] sm:$0xff] }
 0x16d   : > { %10600 = vst [vmem:[#allocation12_spill] sm:$0xff] %v8819_v2  ;;  %7065 = vmatprep.mubr.f32.mxu1 %v8819_v2  ;;  %v8822_v41 = vpop.f32.mrf.mxu0 }
 0x16e   : > { %v8824_v51 = vmax.f32 %v1311_v45, 0.0 }
 0x16f   : > { %v1320_v7 = vpop.f32.mrf.mxu0 }
 0x170   : > { %10601 = vst [vmem:[#allocation13_spill] sm:$0xff] %v8824_v51  ;;  %7306 = vmatmul.mubr.f32.gmra.mxu0 %v8824_v51  ;;  %v2010_v11 = vrot.slane %v8824_v51, 7 }
 0x171   : > { %7420 = vmatprep.mubr.f32.mxu0 %v8553_v21  ;;  %v6981_v35 = vpop.f32.mrf.mxu0 }
 0x172   : > { %v8830_v59 = vsel %vm1931_vm0, %v2008_v26, %v2010_v11  ;;  %v6123_v26 = vld [vmem:[%s10538_s7 + $0x370] sm:$0xff]  ;;  %v6118_v35 = vld [vmem:[%s10538_s7 + $0x348] sm:$0xff] }
 0x173   : > { %10602 = vst [vmem:[#allocation14_spill] sm:$0xff] %v8830_v59  ;;  %7066 = vmatmul.mubr.f32.gmra.mxu1 %v8830_v59  ;;  %v8836_v2 = vpop.f32.mrf.mxu0  ;;  %v6119_v11 = vld [vmem:[%s10538_s7 + $0x350] sm:$0xff] }
 0x174   : > { %7100 = vmatprep.mubr.f32.mxu1 %v8547_v16  ;;  %7421 = vmatmul.mubr.f32.vlgmr.msra.gmra.mxu0 %v8569_v30  ;;  %v6122_v16 = vld [vmem:[%s10538_s7 + $0x368] sm:$0xff] }
 0x175   : > { %7423 = vmatprep.mubr.f32.mxu0 %v8572_v4  ;;  %7549 = vmatpush3.msra.mxu0 %v8609_v53  ;;  %v6984_v45 = vpop.f32.mrf.mxu0 }
 0x176   : > { %7550 = vmatprep.subr.mxu0 %v6203_v49  ;;  %v6117_v45 = vld [vmem:[%s10538_s7 + $0x340] sm:$0xff] }
 0x177   : > { %7101 = vmatmul.mubr.f32.vlgmr.msra.gmra.mxu1 %v8559_v24  ;;  %7551 = vmatpush3.msra.mxu0 %v6203_v49  ;;  %v1340_v7 = vpop.f32.mrf.mxu0  ;;  %v6121_v49 = vld [vmem:[%s10538_s7 + $0x360] sm:$0xff]  ;;  %v6120_v24 = vld [vmem:[%s10538_s7 + $0x358] sm:$0xff] }
 0x178   : > { %7149 = vmatpush3.msra.mxu1 %v8536_v8  ;;  %7103 = vmatprep.mubr.f32.mxu1 %v8566_v28  ;;  %v6202_v7 = vld [vmem:[%s10538_s7 + $0x2e8] sm:$0xff] }
 0x179   : > { %7424 = vmatmul.mubr.f32.gmra.mxu0 %v8588_v40  ;;  %7150 = vmatprep.subr.mxu1 %v6123_v26  ;;  %v6987_v53 = vpop.f32.mrf.mxu0 }
 0x17a   : > { %7426 = vmatprep.mubr.f32.mxu0 %v8591_v43  ;;  %7151 = vmatpush3.msra.mxu1 %v6123_v26  ;;  %v6116_v26 = vld [vmem:[%s10538_s7 + $0x338] sm:$0xff]  ;;  %v6201_v53 = vld [vmem:[%s10538_s7 + $0x2e0] sm:$0xff] }
 0x17b   : > { %7104 = vmatmul.mubr.f32.gmra.mxu1 %v8578_v34  ;;  %7152 = vmatprep.subr.mxu1 %v6122_v16  ;;  %v1350_v8 = vpop.f32.mrf.mxu0 }
 0x17c   : > { %7106 = vmatprep.mubr.f32.mxu1 %v8585_v38  ;;  %7153 = vmatpush3.msra.mxu1 %v6122_v16  ;;  %v6115_v16 = vld [vmem:[%s10538_s7 + $0x330] sm:$0xff]  ;;  %v6114_v8 = vld [vmem:[%s10538_s7 + $0x328] sm:$0xff] }
 0x17d   : > { %7427 = vmatmul.mubr.f32.gmra.mxu0 %v8613_v55  ;;  %7154 = vmatprep.subr.mxu1 %v6121_v49 }
 0x17e   : > { %7429 = vmatprep.mubr.f32.mxu0 %v8616_v58  ;;  %7155 = vmatpush3.msra.mxu1 %v6121_v49  ;;  %v6200_v49 = vld [vmem:[%s10538_s7 + $0x2d8] sm:$0xff] }
 0x17f   : > { %7107 = vmatmul.mubr.f32.gmra.mxu1 %v8597_v46  ;;  %7156 = vmatprep.subr.mxu1 %v6120_v24 }
 0x180   : > { %7109 = vmatprep.mubr.f32.mxu1 %v8604_v52  ;;  %7157 = vmatpush3.msra.mxu1 %v6120_v24  ;;  %v6199_v24 = vld [vmem:[%s10538_s7 + $0x2d0] sm:$0xff] }
 0x181   : > { %7430 = vmatmul.mubr.f32.gmra.mxu0 %v8632_v3  ;;  %7158 = vmatprep.subr.mxu1 %v6119_v11 }
 0x182   : > { %7432 = vmatprep.mubr.f32.mxu0 %v8635_v10  ;;  %7159 = vmatpush3.msra.mxu1 %v6119_v11  ;;  %v6198_v11 = vld [vmem:[%s10538_s7 + $0x2c8] sm:$0xff] }
 0x183   : > { %7110 = vmatmul.mubr.f32.gmra.mxu1 %v8622_v61  ;;  %7160 = vmatprep.subr.mxu1 %v6118_v35 }
 0x184   : > { %7112 = vmatprep.mubr.f32.mxu1 %v8629_v1  ;;  %7161 = vmatpush3.msra.mxu1 %v6118_v35  ;;  %v6113_v35 = vld [vmem:[%s10538_s7 + $0x320] sm:$0xff] }
 0x185   : > { %7433 = vmatmul.mubr.f32.gmra.mxu0 %v8651_v23  ;;  %7162 = vmatprep.subr.mxu1 %v6117_v45 }
 0x186   : > { %7435 = vmatprep.mubr.f32.mxu0 %v8654_v27  ;;  %7163 = vmatpush3.msra.mxu1 %v6117_v45  ;;  %v6197_v45 = vld [vmem:[%s10538_s7 + $0x2c0] sm:$0xff] }
 0x187   : > { %7113 = vmatmul.mubr.f32.gmra.mxu1 %v8641_v14  ;;  %7164 = vmatprep.subr.mxu1 %v6116_v26 }
 0x188   : > { %7115 = vmatprep.mubr.f32.mxu1 %v8648_v20  ;;  %7165 = vmatpush3.msra.mxu1 %v6116_v26  ;;  %v6196_v26 = vld [vmem:[%s10538_s7 + $0x2b8] sm:$0xff] }
 0x189   : > { %7436 = vmatmul.mubr.f32.gmra.mxu0 %v8670_v39  ;;  %7552 = vmatprep.subr.mxu0 %v6202_v7 }
 0x18a   : > { %7438 = vmatprep.mubr.f32.mxu0 %v8673_v44  ;;  %7553 = vmatpush3.msra.mxu0 %v6202_v7  ;;  %v6112_v7 = vld [vmem:[%s10538_s7 + $0x318] sm:$0xff] }
 0x18b   : > { %7116 = vmatmul.mubr.f32.gmra.mxu1 %v8660_v32  ;;  %7166 = vmatprep.subr.mxu1 %v6115_v16 }
 0x18c   : > { %7118 = vmatprep.mubr.f32.mxu1 %v8667_v36  ;;  %7554 = vmatprep.subr.mxu0 %v6201_v53 }
 0x18d   : > { %7439 = vmatmul.mubr.f32.gmra.mxu0 %v8689_v60  ;;  %7167 = vmatpush3.msra.mxu1 %v6115_v16  ;;  %v6195_v16 = vld [vmem:[%s10538_s7 + $0x2b0] sm:$0xff] }
 0x18e   : > { %7441 = vmatprep.mubr.f32.mxu0 %v8692_v0  ;;  %7555 = vmatpush3.msra.mxu0 %v6201_v53  ;;  %v6194_v53 = vld [vmem:[%s10538_s7 + $0x2a8] sm:$0xff] }
 0x18f   : > { %7119 = vmatmul.mubr.f32.gmra.mxu1 %v8679_v50  ;;  %7556 = vmatprep.subr.mxu0 %v6200_v49 }
 0x190   : > { %7121 = vmatprep.mubr.f32.mxu1 %v8686_v57  ;;  %7557 = vmatpush3.msra.mxu0 %v6200_v49  ;;  %v6111_v49 = vld [vmem:[%s10538_s7 + $0x310] sm:$0xff] }
 0x191   : > { %7442 = vmatmul.mubr.f32.gmra.mxu0 %v8708_v22  ;;  %7168 = vmatprep.subr.mxu1 %v6114_v8 }
 0x192   : > { %7444 = vmatprep.mubr.f32.mxu0 %v8711_v29  ;;  %7558 = vmatprep.subr.mxu0 %v6199_v24 }
 0x193   : > { %7122 = vmatmul.mubr.f32.gmra.mxu1 %v8698_v9  ;;  %7559 = vmatpush3.msra.mxu0 %v6199_v24  ;;  %v1326_v24 = vadd.f32 %v8822_v41, %v8531_v5  ;;  %v1331_v41 = vadd.f32 %v8531_v5, %v8836_v2  ;;  %v6190_v2 = vld [vmem:[%s10538_s7 + $0x288] sm:$0xff] }
 0x194   : > { %7124 = vmatprep.mubr.f32.mxu1 %v8705_v17  ;;  %7169 = vmatpush3.msra.mxu1 %v6114_v8  ;;  %v6193_v8 = vld [vmem:[%s10538_s7 + $0x2a0] sm:$0xff] }
 0x195   : > { %7445 = vmatmul.mubr.f32.gmra.mxu0 %v8727_v47  ;;  %7560 = vmatprep.subr.mxu0 %v6198_v11  ;;  %v8978_v5 = vmax.f32 %v1331_v41, 0.0  ;;  %v10609_v41 = vld [vmem:[#allocation5_spill] sm:$0xff] }
 0x196   : > { %7447 = vmatprep.mubr.f32.mxu0 %v8730_v56  ;;  %7561 = vmatpush3.msra.mxu0 %v6198_v11  ;;  %v10603_v11 = vld [vmem:[#allocation6_spill] sm:$0xff] }
 0x197   : > { %7125 = vmatmul.mubr.f32.gmra.mxu1 %v8717_v33  ;;  %7170 = vmatprep.subr.mxu1 %v6113_v35 }
 0x198   : > { %7127 = vmatprep.mubr.f32.mxu1 %v8724_v42  ;;  %7562 = vmatprep.subr.mxu0 %v6197_v45 }
 0x199   : > { %7448 = vmatmul.mubr.f32.gmra.mxu0 %v8746_v19  ;;  %7171 = vmatpush3.msra.mxu1 %v6113_v35  ;;  %v10604_v35 = vld [vmem:[#allocation7_spill] sm:$0xff] }
 0x19a   : > { %7450 = vmatprep.mubr.f32.mxu0 %v8749_v31  ;;  %7563 = vmatpush3.msra.mxu0 %v6197_v45  ;;  %v6192_v45 = vld [vmem:[%s10538_s7 + $0x298] sm:$0xff] }
 0x19b   : > { %7128 = vmatmul.mubr.f32.gmra.mxu1 %v8736_v63  ;;  %7564 = vmatprep.subr.mxu0 %v6196_v26 }
 0x19c   : > { %7130 = vmatprep.mubr.f32.mxu1 %v8743_v13  ;;  %7565 = vmatpush3.msra.mxu0 %v6196_v26  ;;  %v8964_v26 = vmax.f32 %v1326_v24, 0.0  ;;  %v10608_v24 = vld [vmem:[#allocation12_spill] sm:$0xff] }
 0x19d   : > { %7451 = vmatmul.mubr.f32.gmra.mxu0 %v8765_v62  ;;  %7172 = vmatprep.subr.mxu1 %v6112_v7 }
 0x19e   : > { %7453 = vmatprep.mubr.f32.mxu0 %v8768_v12  ;;  %7566 = vmatprep.subr.mxu0 %v6195_v16  ;;  %10605 = vst [vmem:[#allocation6_spill] sm:$0xff] %v8964_v26 }
 0x19f   : > { %7131 = vmatmul.mubr.f32.gmra.mxu1 %v8755_v37  ;;  %7567 = vmatpush3.msra.mxu0 %v6195_v16  ;;  %v10606_v16 = vld [vmem:[#allocation8_spill] sm:$0xff] }
 0x1a0   : > { %7133 = vmatprep.mubr.f32.mxu1 %v8762_v54  ;;  %7173 = vmatpush3.msra.mxu1 %v6112_v7  ;;  %v6110_v7 = vld [vmem:[%s10538_s7 + $0x308] sm:$0xff] }
 0x1a1   : > { %7454 = vmatmul.mubr.f32.gmra.mxu0 %v8784_v6  ;;  %7568 = vmatprep.subr.mxu0 %v6194_v53 }
 0x1a2   : > { %7456 = vmatprep.mubr.f32.mxu0 %v8787_v15  ;;  %7569 = vmatpush3.msra.mxu0 %v6194_v53  ;;  %v6191_v53 = vld [vmem:[%s10538_s7 + $0x290] sm:$0xff] }
 0x1a3   : > { %7134 = vmatmul.mubr.f32.gmra.mxu1 %v10603_v11  ;;  %7174 = vmatprep.subr.mxu1 %v6111_v49 }
 0x1a4   : > { %7136 = vmatprep.mubr.f32.mxu1 %v10604_v35  ;;  %7570 = vmatprep.subr.mxu0 %v6193_v8 }
 0x1a5   : > { %7457 = vmatmul.mubr.f32.gmra.mxu0 %v8803_v48  ;;  %7175 = vmatpush3.msra.mxu1 %v6111_v49  ;;  %v10607_v49 = vld [vmem:[#allocation9_spill] sm:$0xff] }
 0x1a6   : > { %7459 = vmatprep.mubr.f32.mxu0 %v8806_v25  ;;  %7571 = vmatpush3.msra.mxu0 %v6193_v8  ;;  %v2013_v8 = vrot.slane %v8964_v26, 7  ;;  %v4046_v25 = vrot.slane %v10609_v41, 1 }
 0x1a7   : > { %7137 = vmatmul.mubr.f32.gmra.mxu1 %v10606_v16  ;;  %7572 = vmatprep.subr.mxu0 %v6192_v45 }
 0x1a8   : > { %7139 = vmatprep.mubr.f32.mxu1 %v10607_v49  ;;  %7573 = vmatpush3.msra.mxu0 %v6192_v45  ;;  %v6109_v45 = vld [vmem:[%s10538_s7 + $0x300] sm:$0xff] }
 0x1a9   : > { %7460 = vmatmul.mubr.f32.gmra.mxu0 %v8824_v51  ;;  %7176 = vmatprep.subr.mxu1 %v6110_v7  ;;  %v6189_v51 = vld [vmem:[%s10538_s7 + $0x280] sm:$0xff] }
 0x1aa   : > { %7462 = vmatprep.mubr.f32.mxu0 %v8964_v26  ;;  %7574 = vmatprep.subr.mxu0 %v6191_v53 }
 0x1ab   : > { %7140 = vmatmul.mubr.f32.gmra.mxu1 %v8812_v18  ;;  %7575 = vmatpush3.msra.mxu0 %v6191_v53  ;;  %v10610_v18 = vmov 0.0   ;;  %v2015_v53 = vrot.slane %v8978_v5, 7 }
 0x1ac   : > { %7142 = vmatprep.mubr.f32.mxu1 %v10608_v24  ;;  %7177 = vmatpush3.msra.mxu1 %v6110_v7  ;;  %v10611_v7 = vld [vmem:[#allocation3_spill] sm:$0xff]  ;;  %v10613_v24 = vld [vmem:[#allocation4_spill] sm:$0xff]  ;;  %v9004_v41 = vrot.slane %v10610_v18, 1 }
 0x1ad   : > { %7463 = vmatmul.mubr.f32.gmra.mxu0 %v8978_v5  ;;  %7576 = vmatprep.subr.mxu0 %v6190_v2  ;;  %v9000_v26 = vsel %vm1931_vm0, %v10611_v7, %v2013_v8  ;;  %v4045_v49 = vrot.slane %v10613_v24, 1  ;;  %v4051_v7 = vrot.slane %v8569_v30, 1  ;;  %v9017_v24 = vsel %vm1931_vm0, %v2013_v8, %v2015_v53 }
 0x1ae   : > { %7465 = vmatprep.mubr.f32.mxu0 %v10610_v18  ;;  %7577 = vmatpush3.msra.mxu0 %v6190_v2  ;;  %10612 = vst [vmem:[#allocation7_spill] sm:$0xff] %v9000_v26  ;;  %10614 = vst [vmem:[#allocation8_spill] sm:$0xff] %v9004_v41  ;;  %v6156_v2 = vld [vmem:[%s10538_s7 + $0x278] sm:$0xff]  ;;  %v4056_v8 = vrot.slane %v8588_v40, 1  ;;  %v4060_v53 = vrot.slane %v8591_v43, 1 }
 0x1af   : > { %7143 = vmatmul.mubr.f32.gmra.mxu1 %v8830_v59  ;;  %7178 = vmatprep.subr.mxu1 %v6109_v45  ;;  %v9012_v59 = vsel %vm4039_vm1, %v4045_v49, %v4046_v25 }
 0x1b0   : > { %7145 = vmatprep.mubr.f32.mxu1 %v9000_v26  ;;  %7578 = vmatprep.subr.mxu0 %v6189_v51  ;;  %v4050_v26 = vrot.slane %v8553_v21, 1 }
 0x1b1   : > { %7466 = vmatmul.mubr.f32.gmra.mxu0 %v10610_v18  ;;  %7179 = vmatpush3.msra.mxu1 %v6109_v45  ;;  %v9024_v18 = vsel %vm4039_vm1, %v4046_v25, %v9004_v41  ;;  %v9040_v25 = vsel %vm4039_vm1, %v4051_v7, %v9004_v41 }
 0x1b2   : > { %7580 = vmatprep.mubr.f32.mxu0 %v9012_v59  ;;  %7579 = vmatpush3.msra.mxu0 %v6189_v51  ;;  %v9028_v49 = vsel %vm4039_vm1, %v4050_v26, %v4051_v7  ;;  %v6155_v51 = vld [vmem:[%s10538_s7 + $0x270] sm:$0xff]  ;;  %v6154_v26 = vld [vmem:[%s10538_s7 + $0x268] sm:$0xff]  ;;  %v9059_v7 = vsel %vm4039_vm1, %v4056_v8, %v9004_v41 }
 0x1b3   : > { %7146 = vmatmul.mubr.f32.gmra.mxu1 %v9017_v24  ;;  %7308 = vmatprep.subr.mxu1 %v6156_v2 }
 0x1b4   : > { %7180 = vmatprep.mubr.f32.mxu1 %v8566_v28  ;;  %v4055_v28 = vrot.slane %v8572_v4, 1 }
 0x1b5   : > { %7581 = vmatmul.mubr.f32.vlgmr.msra.gmra.mxu0 %v9024_v18 }
 0x1b6   : > { %7583 = vmatprep.mubr.f32.mxu0 %v9028_v49  ;;  %v9047_v45 = vsel %vm4039_vm1, %v4055_v28, %v4056_v8  ;;  %v4065_v8 = vrot.slane %v8616_v58, 1 }
 0x1b7   : > { %7181 = vmatmul.mubr.f32.vlgmr.msra.gmra.mxu1 %v8578_v34  ;;  %v4061_v34 = vrot.slane %v8613_v55, 1 }
 0x1b8   : > { %7309 = vmatpush3.msra.mxu1 %v6156_v2  ;;  %7183 = vmatprep.mubr.f32.mxu1 %v8585_v38  ;;  %v6153_v38 = vld [vmem:[%s10538_s7 + $0x260] sm:$0xff]  ;;  %v6152_v2 = vld [vmem:[%s10538_s7 + $0x258] sm:$0xff] }
 0x1b9   : > { %7584 = vmatmul.mubr.f32.gmra.mxu0 %v9040_v25  ;;  %7310 = vmatprep.subr.mxu1 %v6155_v51  ;;  %v9078_v28 = vsel %vm4039_vm1, %v4061_v34, %v9004_v41 }
 0x1ba   : > { %7586 = vmatprep.mubr.f32.mxu0 %v9047_v45  ;;  %7311 = vmatpush3.msra.mxu1 %v6155_v51  ;;  %v9066_v51 = vsel %vm4039_vm1, %v4060_v53, %v4061_v34  ;;  %v4070_v34 = vrot.slane %v8635_v10, 1 }
 0x1bb   : > { %7184 = vmatmul.mubr.f32.gmra.mxu1 %v8597_v46  ;;  %7312 = vmatprep.subr.mxu1 %v6154_v26  ;;  %v4066_v46 = vrot.slane %v8632_v3, 1 }
 0x1bc   : > { %7186 = vmatprep.mubr.f32.mxu1 %v8604_v52  ;;  %7313 = vmatpush3.msra.mxu1 %v6154_v26  ;;  %v6151_v52 = vld [vmem:[%s10538_s7 + $0x250] sm:$0xff]  ;;  %v6150_v26 = vld [vmem:[%s10538_s7 + $0x248] sm:$0xff] }
 0x1bd   : > { %7587 = vmatmul.mubr.f32.gmra.mxu0 %v9059_v7  ;;  %7314 = vmatprep.subr.mxu1 %v6153_v38  ;;  %v9097_v53 = vsel %vm4039_vm1, %v4066_v46, %v9004_v41 }
 0x1be   : > { %7589 = vmatprep.mubr.f32.mxu0 %v9066_v51  ;;  %7315 = vmatpush3.msra.mxu1 %v6153_v38  ;;  %v9085_v38 = vsel %vm4039_vm1, %v4065_v8, %v4066_v46  ;;  %v4075_v46 = vrot.slane %v8654_v27, 1 }
 0x1bf   : > { %7187 = vmatmul.mubr.f32.gmra.mxu1 %v8622_v61  ;;  %7316 = vmatprep.subr.mxu1 %v6152_v2  ;;  %v4071_v61 = vrot.slane %v8651_v23, 1 }
 0x1c0   : > { %7189 = vmatprep.mubr.f32.mxu1 %v8629_v1  ;;  %7317 = vmatpush3.msra.mxu1 %v6152_v2  ;;  %v6149_v1 = vld [vmem:[%s10538_s7 + $0x240] sm:$0xff]  ;;  %v6148_v2 = vld [vmem:[%s10538_s7 + $0x238] sm:$0xff] }
 0x1c1   : > { %7590 = vmatmul.mubr.f32.gmra.mxu0 %v9078_v28  ;;  %7318 = vmatprep.subr.mxu1 %v6151_v52  ;;  %v9116_v8 = vsel %vm4039_vm1, %v4071_v61, %v9004_v41 }
 0x1c2   : > { %7592 = vmatprep.mubr.f32.mxu0 %v9085_v38  ;;  %7319 = vmatpush3.msra.mxu1 %v6151_v52  ;;  %v9104_v52 = vsel %vm4039_vm1, %v4070_v34, %v4071_v61  ;;  %v4080_v61 = vrot.slane %v8673_v44, 1 }
 0x1c3   : > { %7190 = vmatmul.mubr.f32.gmra.mxu1 %v8641_v14  ;;  %7320 = vmatprep.subr.mxu1 %v6150_v26  ;;  %v4076_v14 = vrot.slane %v8670_v39, 1 }
 0x1c4   : > { %7192 = vmatprep.mubr.f32.mxu1 %v8648_v20  ;;  %7321 = vmatpush3.msra.mxu1 %v6150_v26  ;;  %v6147_v20 = vld [vmem:[%s10538_s7 + $0x230] sm:$0xff]  ;;  %v6146_v26 = vld [vmem:[%s10538_s7 + $0x228] sm:$0xff] }
 0x1c5   : > { %7593 = vmatmul.mubr.f32.gmra.mxu0 %v9097_v53  ;;  %7322 = vmatprep.subr.mxu1 %v6149_v1  ;;  %v9135_v34 = vsel %vm4039_vm1, %v4076_v14, %v9004_v41 }
 0x1c6   : > { %7595 = vmatprep.mubr.f32.mxu0 %v9104_v52  ;;  %7323 = vmatpush3.msra.mxu1 %v6149_v1  ;;  %v9123_v1 = vsel %vm4039_vm1, %v4075_v46, %v4076_v14  ;;  %v4085_v14 = vrot.slane %v8692_v0, 1 }
 0x1c7   : > { %7193 = vmatmul.mubr.f32.gmra.mxu1 %v8660_v32  ;;  %7324 = vmatprep.subr.mxu1 %v6148_v2  ;;  %v4081_v32 = vrot.slane %v8689_v60, 1 }
 0x1c8   : > { %7195 = vmatprep.mubr.f32.mxu1 %v8667_v36  ;;  %7325 = vmatpush3.msra.mxu1 %v6148_v2  ;;  %v6145_v36 = vld [vmem:[%s10538_s7 + $0x220] sm:$0xff]  ;;  %v6144_v2 = vld [vmem:[%s10538_s7 + $0x218] sm:$0xff] }
 0x1c9   : > { %7596 = vmatmul.mubr.f32.gmra.mxu0 %v9116_v8  ;;  %7326 = vmatprep.subr.mxu1 %v6147_v20  ;;  %v9154_v46 = vsel %vm4039_vm1, %v4081_v32, %v9004_v41 }
 0x1ca   : > { %7598 = vmatprep.mubr.f32.mxu0 %v9123_v1  ;;  %7327 = vmatpush3.msra.mxu1 %v6147_v20  ;;  %v9142_v20 = vsel %vm4039_vm1, %v4080_v61, %v4081_v32  ;;  %v4090_v32 = vrot.slane %v8711_v29, 1 }
 0x1cb   : > { %7196 = vmatmul.mubr.f32.gmra.mxu1 %v8679_v50  ;;  %7328 = vmatprep.subr.mxu1 %v6146_v26  ;;  %v4086_v50 = vrot.slane %v8708_v22, 1 }
 0x1cc   : > { %7198 = vmatprep.mubr.f32.mxu1 %v8686_v57  ;;  %7329 = vmatpush3.msra.mxu1 %v6146_v26  ;;  %v6143_v57 = vld [vmem:[%s10538_s7 + $0x210] sm:$0xff]  ;;  %v6142_v26 = vld [vmem:[%s10538_s7 + $0x208] sm:$0xff] }
 0x1cd   : > { %7599 = vmatmul.mubr.f32.gmra.mxu0 %v9135_v34  ;;  %7330 = vmatprep.subr.mxu1 %v6145_v36  ;;  %v9173_v61 = vsel %vm4039_vm1, %v4086_v50, %v9004_v41 }
 0x1ce   : > { %7601 = vmatprep.mubr.f32.mxu0 %v9142_v20  ;;  %7331 = vmatpush3.msra.mxu1 %v6145_v36  ;;  %v9161_v36 = vsel %vm4039_vm1, %v4085_v14, %v4086_v50  ;;  %v4095_v50 = vrot.slane %v8730_v56, 1 }
 0x1cf   : > { %7199 = vmatmul.mubr.f32.gmra.mxu1 %v8698_v9  ;;  %7332 = vmatprep.subr.mxu1 %v6144_v2  ;;  %v4091_v9 = vrot.slane %v8727_v47, 1 }
 0x1d0   : > { %7201 = vmatprep.mubr.f32.mxu1 %v8705_v17  ;;  %7333 = vmatpush3.msra.mxu1 %v6144_v2  ;;  %v6141_v17 = vld [vmem:[%s10538_s7 + $0x200] sm:$0xff]  ;;  %v9178_v2 = vld [vmem:[%s10538_s7 + $0x178] sm:$0xff] }
 0x1d1   : > { %7602 = vmatmul.mubr.f32.gmra.mxu0 %v9154_v46  ;;  %7334 = vmatprep.subr.mxu1 %v6143_v57  ;;  %v9194_v14 = vsel %vm4039_vm1, %v4091_v9, %v9004_v41 }
 0x1d2   : > { %7604 = vmatprep.mubr.f32.mxu0 %v9161_v36  ;;  %7335 = vmatpush3.msra.mxu1 %v6143_v57  ;;  %v9182_v57 = vsel %vm4039_vm1, %v4090_v32, %v4091_v9  ;;  %v4100_v32 = vrot.slane %v8749_v31, 1 }
 0x1d3   : > { %7202 = vmatmul.mubr.f32.gmra.mxu1 %v8717_v33  ;;  %7336 = vmatprep.subr.mxu1 %v6142_v26  ;;  %v4096_v33 = vrot.slane %v8746_v19, 1 }
 0x1d4   : > { %7204 = vmatprep.mubr.f32.mxu1 %v8724_v42  ;;  %7337 = vmatpush3.msra.mxu1 %v6142_v26  ;;  %v9186_v42 = vpop.f32.mrf.mxu1 }
 0x1d5   : > { %7605 = vmatmul.mubr.f32.gmra.mxu0 %v9173_v61  ;;  %7338 = vmatprep.subr.mxu1 %v6141_v17  ;;  %10615 = vst [vmem:[#allocation15_spill] sm:$0xff] %v9186_v42  ;;  %v9198_v26 = vsel %vm4039_vm1, %v4095_v50, %v4096_v33  ;;  %v4106_v50 = vrot.slane %v8784_v6, 1 }
 0x1d6   : > { %7607 = vmatprep.mubr.f32.mxu0 %v9182_v57  ;;  %7339 = vmatpush3.msra.mxu1 %v6141_v17  ;;  %10616 = vst [vmem:[#allocation16_spill] sm:$0xff] %v9198_v26  ;;  %v4101_v17 = vrot.slane %v8765_v62, 1 }
 0x1d7   : > { %7205 = vmatmul.mubr.f32.gmra.mxu1 %v8736_v63  ;;  %7468 = vmatprep.subr.mxu1 %v9178_v2  ;;  %v9202_v63 = vpop.f32.mrf.mxu1 }
 0x1d8   : > { %7207 = vmatprep.mubr.f32.mxu1 %v8743_v13  ;;  %10617 = vst [vmem:[#allocation17_spill] sm:$0xff] %v9202_v63  ;;  %v9209_v13 = vsel %vm4039_vm1, %v4096_v33, %v9004_v41  ;;  %v9213_v9 = vsel %vm4039_vm1, %v4100_v32, %v4101_v17  ;;  %v4111_v32 = vrot.slane %v8803_v48, 1 }
 0x1d9   : > { %7608 = vmatmul.mubr.f32.gmra.mxu0 %v9194_v14  ;;  %10618 = vst [vmem:[#allocation18_spill] sm:$0xff] %v9209_v13  ;;  %10619 = vst [vmem:[#allocation19_spill] sm:$0xff] %v9213_v9  ;;  %v9217_v63 = vpop.f32.mrf.mxu1 }
 0x1da   : > { %7610 = vmatprep.mubr.f32.mxu0 %v9198_v26  ;;  %10620 = vst [vmem:[#allocation20_spill] sm:$0xff] %v9217_v63  ;;  %v10637_v26 = vld [vmem:[#allocation7_spill] sm:$0xff] }
 0x1db   : > { %7208 = vmatmul.mubr.f32.gmra.mxu1 %v8755_v37  ;;  %v4105_v37 = vrot.slane %v8768_v12, 1  ;;  %v9232_v63 = vpop.f32.mrf.mxu1 }
 0x1dc   : > { %7210 = vmatprep.mubr.f32.mxu1 %v8762_v54  ;;  %v9224_v54 = vsel %vm4039_vm1, %v4101_v17, %v9004_v41  ;;  %10623 = vst [vmem:[#allocation23_spill] sm:$0xff] %v9232_v63  ;;  %v9239_v17 = vsel %vm4039_vm1, %v4106_v50, %v9004_v41  ;;  %v10630_v63 = vld [vmem:[#allocation10_spill] sm:$0xff] }
 0x1dd   : > { %7611 = vmatmul.mubr.f32.gmra.mxu0 %v9209_v13  ;;  %10621 = vst [vmem:[#allocation21_spill] sm:$0xff] %v9224_v54  ;;  %v9228_v33 = vsel %vm4039_vm1, %v4105_v37, %v4106_v50  ;;  %v9241_v42 = vpop.f32.mrf.mxu1  ;;  %v9254_v50 = vsel %vm4039_vm1, %v4111_v32, %v9004_v41 }
 0x1de   : > { %7613 = vmatprep.mubr.f32.mxu0 %v9213_v9  ;;  %10622 = vst [vmem:[#allocation22_spill] sm:$0xff] %v9228_v33  ;;  %10626 = vst [vmem:[#allocation24_spill] sm:$0xff] %v9241_v42  ;;  %v4115_v9 = vrot.slane %v10630_v63, 1 }
 0x1df   : > { %7211 = vmatmul.mubr.f32.gmra.mxu1 %v10603_v11  ;;  %v4110_v11 = vrot.slane %v8787_v15, 1  ;;  %v9256_v42 = vpop.f32.mrf.mxu1 }
 0x1e0   : > { %7213 = vmatprep.mubr.f32.mxu1 %v10604_v35  ;;  %v10624_v35 = vld [vmem:[#allocation9_spill] sm:$0xff] }
 0x1e1   : > { %7614 = vmatmul.mubr.f32.gmra.mxu0 %v9224_v54  ;;  %10625 = vst [vmem:[#allocation9_spill] sm:$0xff] %v9239_v17  ;;  %v9245_v37 = vsel %vm4039_vm1, %v4110_v11, %v4111_v32 }
 0x1e2   : > { %7616 = vmatprep.mubr.f32.mxu0 %v9228_v33  ;;  %10627 = vst [vmem:[#allocation25_spill] sm:$0xff] %v9245_v37  ;;  %v10628_v33 = vld [vmem:[#allocation13_spill] sm:$0xff] }
 0x1e3   : > { %7214 = vmatmul.mubr.f32.gmra.mxu1 %v10606_v16  ;;  %v4116_v54 = vrot.slane %v10628_v33, 1  ;;  %v10629_v16 = vld [vmem:[#allocation11_spill] sm:$0xff]  ;;  %10632 = vst [vmem:[#allocation13_spill] sm:$0xff] %v9256_v42 }
 0x1e4   : > { %7216 = vmatprep.mubr.f32.mxu1 %v10624_v35  ;;  %v10631_v35 = vld [vmem:[#allocation12_spill] sm:$0xff] }
 0x1e5   : > { %7617 = vmatmul.mubr.f32.gmra.mxu0 %v9239_v17  ;;  %v9260_v11 = vsel %vm4039_vm1, %v4115_v9, %v4116_v54  ;;  %v10634_v17 = vld [vmem:[#allocation6_spill] sm:$0xff]  ;;  %v9271_v32 = vsel %vm4039_vm1, %v4116_v54, %v9004_v41 }
 0x1e6   : > { %7619 = vmatprep.mubr.f32.mxu0 %v9245_v37  ;;  %10633 = vst [vmem:[#allocation11_spill] sm:$0xff] %v9260_v11  ;;  %v4120_v13 = vrot.slane %v10634_v17, 1  ;;  %v4121_v37 = vrot.slane %v8978_v5, 1 }
 0x1e7   : > { %7217 = vmatmul.mubr.f32.gmra.mxu1 %v10629_v16  ;;  %v9265_v16 = vpop.f32.mrf.mxu1 }
 0x1e8   : > { %7219 = vmatprep.mubr.f32.mxu1 %v10631_v35  ;;  %10635 = vst [vmem:[#allocation10_spill] sm:$0xff] %v9265_v16  ;;  %v10636_v35 = vld [vmem:[#allocation14_spill] sm:$0xff]  ;;  %v9275_v9 = vsel %vm4039_vm1, %v4120_v13, %v4121_v37  ;;  %v10641_v13 = vld [vmem:[#allocation4_spill] sm:$0xff] }
 0x1e9   : > { %7620 = vmatmul.mubr.f32.gmra.mxu0 %v9254_v50  ;;  %10638 = vst [vmem:[#allocation12_spill] sm:$0xff] %v9275_v9  ;;  %v9278_v42 = vpop.f32.mrf.mxu1 }
 0x1ea   : > { %7622 = vmatprep.mubr.f32.mxu0 %v9260_v11 }
 0x1eb   : > { %7220 = vmatmul.mubr.f32.gmra.mxu1 %v10636_v35  ;;  %v9283_v35 = vsel %vm4039_vm1, %v4121_v37, %v9004_v41  ;;  %v9286_v16 = vpop.f32.mrf.mxu1  ;;  %v10642_v37 = vld [vmem:[#allocation5_spill] sm:$0xff] }
 0x1ec   : > { %7222 = vmatprep.mubr.f32.mxu1 %v10637_v26  ;;  %10639 = vst [vmem:[#allocation6_spill] sm:$0xff] %v9283_v35  ;;  %v10640_v26 = vld [vmem:[#allocation3_spill] sm:$0xff] }
 0x1ed   : > { %7623 = vmatmul.mubr.f32.gmra.mxu0 %v9271_v32  ;;  %v9291_v54 = vpop.f32.mrf.mxu1 }
 0x1ee   : > { %7625 = vmatprep.mubr.f32.mxu0 %v9275_v9 }
 0x1ef   : > { %7223 = vmatmul.mubr.f32.gmra.mxu1 %v9017_v24  ;;  %v6187_v24 = vld [vmem:[%s10538_s7 + $0x170] sm:$0xff]  ;;  %v9296_v9 = vpop.f32.mrf.mxu1 }
 0x1f0   : > { %7225 = vmatprep.mubr.f32.mxu1 %v10640_v26 }
 0x1f1   : > { %7626 = vmatmul.mubr.f32.gmra.mxu0 %v9283_v35  ;;  %v9307_v35 = vpop.f32.mrf.mxu1 }
 0x1f3   : > { %7226 = vmatmul.mubr.f32.gmra.mxu1 %v10640_v26  ;;  %v6186_v26 = vld [vmem:[%s10538_s7 + $0x168] sm:$0xff] }
 0x1f4   : > { %7340 = vmatprep.mubr.f32.mxu1 %v10641_v13  ;;  %v6185_v13 = vld [vmem:[%s10538_s7 + $0x160] sm:$0xff] }
 0x1f7   : > { %7341 = vmatmul.mubr.f32.vlgmr.msra.gmra.mxu1 %v10642_v37  ;;  %v6181_v37 = vld [vmem:[%s10538_s7 + $0x140] sm:$0xff] }
 0x1f8   : > { %7469 = vmatpush3.msra.mxu1 %v9178_v2  ;;  %7343 = vmatprep.mubr.f32.mxu1 %v8553_v21  ;;  %v6184_v21 = vld [vmem:[%s10538_s7 + $0x158] sm:$0xff]  ;;  %v9314_v2 = vpop.f32.mrf.mxu1 }
 0x1f9   : > { %7470 = vmatprep.subr.mxu1 %v6187_v24 }
 0x1fa   : > { %7471 = vmatpush3.msra.mxu1 %v6187_v24  ;;  %v6183_v24 = vld [vmem:[%s10538_s7 + $0x150] sm:$0xff] }
 0x1fb   : > { %7344 = vmatmul.mubr.f32.gmra.mxu1 %v8569_v30  ;;  %7472 = vmatprep.subr.mxu1 %v6186_v26  ;;  %v6182_v30 = vld [vmem:[%s10538_s7 + $0x148] sm:$0xff] }
 0x1fc   : > { %7346 = vmatprep.mubr.f32.mxu1 %v8572_v4  ;;  %7473 = vmatpush3.msra.mxu1 %v6186_v26  ;;  %v9324_v4 = vpop.f32.mrf.mxu1 }
 0x1fd   : > { %7474 = vmatprep.subr.mxu1 %v6185_v13 }
 0x1fe   : > { %7475 = vmatpush3.msra.mxu1 %v6185_v13  ;;  %v9329_v26 = vpop.f32.mrf.mxu1 }
 0x1ff   : > { %7347 = vmatmul.mubr.f32.gmra.mxu1 %v8588_v40  ;;  %7476 = vmatprep.subr.mxu1 %v6184_v21  ;;  %v6180_v40 = vld [vmem:[%s10538_s7 + $0x138] sm:$0xff] }
 0x200   : > { %7349 = vmatprep.mubr.f32.mxu1 %v8591_v43  ;;  %7477 = vmatpush3.msra.mxu1 %v6184_v21  ;;  %v6179_v43 = vld [vmem:[%s10538_s7 + $0x130] sm:$0xff]  ;;  %v9339_v13 = vpop.f32.mrf.mxu1  ;;  %v6177_v21 = vld [vmem:[%s10538_s7 + $0x120] sm:$0xff] }
 0x201   : > { %7478 = vmatprep.subr.mxu1 %v6183_v24 }
 0x202   : > { %7479 = vmatpush3.msra.mxu1 %v6183_v24  ;;  %v6175_v24 = vld [vmem:[%s10538_s7 + $0x110] sm:$0xff] }
 0x203   : > { %7350 = vmatmul.mubr.f32.gmra.mxu1 %v8613_v55  ;;  %7480 = vmatprep.subr.mxu1 %v6182_v30  ;;  %v6178_v55 = vld [vmem:[%s10538_s7 + $0x128] sm:$0xff] }
 0x204   : > { %7352 = vmatprep.mubr.f32.mxu1 %v8616_v58  ;;  %7481 = vmatpush3.msra.mxu1 %v6182_v30  ;;  %v9346_v58 = vpop.f32.mrf.mxu1 }
 0x205   : > { %7482 = vmatprep.subr.mxu1 %v6181_v37 }
 0x206   : > { %7483 = vmatpush3.msra.mxu1 %v6181_v37  ;;  %v9371_v37 = vpop.f32.mrf.mxu0 }
 0x207   : > { %7353 = vmatmul.mubr.f32.gmra.mxu1 %v8632_v3  ;;  %7484 = vmatprep.subr.mxu1 %v6180_v40  ;;  %v6176_v3 = vld [vmem:[%s10538_s7 + $0x118] sm:$0xff]  ;;  %10644 = vst [vmem:[#allocation7_spill] sm:$0xff] %v9371_v37 }
 0x208   : > { %7355 = vmatprep.mubr.f32.mxu1 %v8635_v10  ;;  %7485 = vmatpush3.msra.mxu1 %v6180_v40  ;;  %v9356_v10 = vpop.f32.mrf.mxu1 }
 0x209   : > { %7486 = vmatprep.subr.mxu1 %v6179_v43  ;;  %10643 = vst [vmem:[#allocation14_spill] sm:$0xff] %v9356_v10 }
 0x20a   : > { %7487 = vmatpush3.msra.mxu1 %v6179_v43  ;;  %v9361_v30 = vpop.f32.mrf.mxu1  ;;  %v9382_v43 = vpop.f32.mrf.mxu0 }
 0x20b   : > { %7356 = vmatmul.mubr.f32.gmra.mxu1 %v8651_v23  ;;  %7488 = vmatprep.subr.mxu1 %v6178_v55  ;;  %v6174_v23 = vld [vmem:[%s10538_s7 + $0x108] sm:$0xff]  ;;  %10647 = vst [vmem:[#allocation5_spill] sm:$0xff] %v9382_v43 }
 0x20c   : > { %7358 = vmatprep.mubr.f32.mxu1 %v8654_v27  ;;  %7489 = vmatpush3.msra.mxu1 %v6178_v55  ;;  %v6173_v27 = vld [vmem:[%s10538_s7 + $0x100] sm:$0xff]  ;;  %v9373_v40 = vpop.f32.mrf.mxu1  ;;  %v9388_v55 = vpop.f32.mrf.mxu0 }
 0x20d   : > { %7490 = vmatprep.subr.mxu1 %v6177_v21  ;;  %10645 = vst [vmem:[#allocation3_spill] sm:$0xff] %v9373_v40  ;;  %10649 = vst [vmem:[#allocation27_spill] sm:$0xff] %v9388_v55 }
 0x20e   : > { %7491 = vmatpush3.msra.mxu1 %v6177_v21  ;;  %v9394_v21 = vpop.f32.mrf.mxu0 }
 0x20f   : > { %7359 = vmatmul.mubr.f32.gmra.mxu1 %v8670_v39  ;;  %7492 = vmatprep.subr.mxu1 %v6176_v3  ;;  %v6220_v39 = vld [vmem:[%s10538_s7 + $0x478] sm:$0xff]  ;;  %10651 = vst [vmem:[#allocation29_spill] sm:$0xff] %v9394_v21 }
 0x210   : > { %7361 = vmatprep.mubr.f32.mxu1 %v8673_v44  ;;  %7493 = vmatpush3.msra.mxu1 %v6176_v3  ;;  %v9380_v44 = vpop.f32.mrf.mxu1 }
 0x211   : > { %7494 = vmatprep.subr.mxu1 %v6175_v24  ;;  %10646 = vst [vmem:[#allocation4_spill] sm:$0xff] %v9380_v44  ;;  %v10693_v44 = vld [vmem:[#allocation22_spill] sm:$0xff] }
 0x212   : > { %7495 = vmatpush3.msra.mxu1 %v6175_v24 }
 0x213   : > { %7362 = vmatmul.mubr.f32.gmra.mxu1 %v8689_v60  ;;  %7496 = vmatprep.subr.mxu1 %v6174_v23  ;;  %v9386_v60 = vpop.f32.mrf.mxu1 }
 0x214   : > { %7364 = vmatprep.mubr.f32.mxu1 %v8692_v0  ;;  %7497 = vmatpush3.msra.mxu1 %v6174_v23  ;;  %10648 = vst [vmem:[#allocation26_spill] sm:$0xff] %v9386_v60 }
 0x215   : > { %7498 = vmatprep.subr.mxu1 %v6173_v27  ;;  %v9390_v0 = vpop.f32.mrf.mxu1 }
 0x216   : > { %7499 = vmatpush3.msra.mxu1 %v6173_v27  ;;  %10650 = vst [vmem:[#allocation28_spill] sm:$0xff] %v9390_v0  ;;  %v10688_v0 = vld [vmem:[#allocation19_spill] sm:$0xff] }
 0x217   : > { %7365 = vmatmul.mubr.f32.gmra.mxu1 %v8708_v22  ;;  %7628 = vmatprep.subr.mxu1 %v6220_v39  ;;  %v9396_v3 = vpop.f32.mrf.mxu1  ;;  %v9400_v22 = vpop.f32.mrf.mxu0 }
 0x218   : > { %7367 = vmatprep.mubr.f32.mxu1 %v8711_v29  ;;  %10652 = vst [vmem:[#allocation30_spill] sm:$0xff] %v9396_v3  ;;  %10653 = vst [vmem:[#allocation31_spill] sm:$0xff] %v9400_v22 }
 0x219   : > { %v9406_v24 = vpop.f32.mrf.mxu0 }
 0x21a   : > { %10655 = vst [vmem:[#allocation33_spill] sm:$0xff] %v9406_v24 }
 0x21b   : > { %7368 = vmatmul.mubr.f32.gmra.mxu1 %v8727_v47  ;;  %v9402_v29 = vpop.f32.mrf.mxu1 }
 0x21c   : > { %7370 = vmatprep.mubr.f32.mxu1 %v8730_v56  ;;  %10654 = vst [vmem:[#allocation32_spill] sm:$0xff] %v9402_v29  ;;  %v9410_v56 = vpop.f32.mrf.mxu0  ;;  %v5455_v29 = vld [vmem:[%s10543_s12 + $0x70] sm:$0xff] }
 0x21d   : > { %v9408_v47 = vpop.f32.mrf.mxu1  ;;  %10657 = vst [vmem:[#allocation35_spill] sm:$0xff] %v9410_v56 }
 0x21e   : > { %10656 = vst [vmem:[#allocation34_spill] sm:$0xff] %v9408_v47  ;;  %v6217_v47 = vld [vmem:[%s10538_s7 + $0x460] sm:$0xff] }
 0x21f   : > { %7371 = vmatmul.mubr.f32.gmra.mxu1 %v8746_v19  ;;  %v9416_v19 = vpop.f32.mrf.mxu0 }
 0x220   : > { %7373 = vmatprep.mubr.f32.mxu1 %v8749_v31  ;;  %10659 = vst [vmem:[#allocation37_spill] sm:$0xff] %v9416_v19 }
 0x223   : > { %7374 = vmatmul.mubr.f32.gmra.mxu1 %v8765_v62  ;;  %v9412_v23 = vpop.f32.mrf.mxu1  ;;  %v9422_v62 = vpop.f32.mrf.mxu0 }
 0x224   : > { %7376 = vmatprep.mubr.f32.mxu1 %v8768_v12  ;;  %10658 = vst [vmem:[#allocation36_spill] sm:$0xff] %v9412_v23  ;;  %10661 = vst [vmem:[#allocation39_spill] sm:$0xff] %v9422_v62 }
 0x225   : > { %v9418_v31 = vpop.f32.mrf.mxu1  ;;  %v9428_v27 = vpop.f32.mrf.mxu0 }
 0x226   : > { %10660 = vst [vmem:[#allocation38_spill] sm:$0xff] %v9418_v31  ;;  %10663 = vst [vmem:[#allocation41_spill] sm:$0xff] %v9428_v27 }
 0x227   : > { %7377 = vmatmul.mubr.f32.gmra.mxu1 %v8784_v6 }
 0x228   : > { %7379 = vmatprep.mubr.f32.mxu1 %v8787_v15  ;;  %v9432_v15 = vpop.f32.mrf.mxu0 }
 0x229   : > { %10664 = vst [vmem:[#allocation42_spill] sm:$0xff] %v9432_v15 }
 0x22b   : > { %7380 = vmatmul.mubr.f32.gmra.mxu1 %v8803_v48  ;;  %v9424_v12 = vpop.f32.mrf.mxu1 }
 0x22c   : > { %7382 = vmatprep.mubr.f32.mxu1 %v10630_v63  ;;  %10662 = vst [vmem:[#allocation40_spill] sm:$0xff] %v9424_v12  ;;  %v6219_v63 = vld [vmem:[%s10538_s7 + $0x470] sm:$0xff] }
 0x22d   : > { %v9430_v6 = vpop.f32.mrf.mxu1 }
 0x22f   : > { %7383 = vmatmul.mubr.f32.gmra.mxu1 %v10628_v33  ;;  %v9443_v33 = vpop.f32.mrf.mxu0 }
 0x230   : > { %7385 = vmatprep.mubr.f32.mxu1 %v10634_v17  ;;  %10665 = vst [vmem:[#allocation43_spill] sm:$0xff] %v9443_v33 }
 0x231   : > { %v9452_v43 = vpop.f32.mrf.mxu0 }
 0x232   : > { %10666 = vst [vmem:[#allocation44_spill] sm:$0xff] %v9452_v43 }
 0x233   : > { %v9434_v21 = vpop.f32.mrf.mxu1  ;;  %7386 = vmatmul.mubr.f32.gmra.mxu1 %v8978_v5  ;;  %v6218_v5 = vld [vmem:[%s10538_s7 + $0x468] sm:$0xff] }
 0x234   : > { %7500 = vmatprep.mubr.f32.mxu1 %v9004_v41 }
 0x235   : > { %v9438_v48 = vpop.f32.mrf.mxu1 }
 0x237   : > { %v9445_v17 = vpop.f32.mrf.mxu1  ;;  %7501 = vmatmul.mubr.f32.vlgmr.msra.gmra.mxu1 %v9004_v41 }
 0x238   : > { %7629 = vmatpush3.msra.mxu1 %v6220_v39  ;;  %7503 = vmatprep.mubr.f32.mxu1 %v9012_v59  ;;  %v6216_v59 = vld [vmem:[%s10538_s7 + $0x458] sm:$0xff]  ;;  %v9466_v39 = vpop.f32.mrf.mxu0 }
 0x239   : > { %v9454_v31 = vpop.f32.mrf.mxu1  ;;  %7630 = vmatprep.subr.mxu1 %v6219_v63  ;;  %10667 = vst [vmem:[#allocation45_spill] sm:$0xff] %v9466_v39 }
 0x23a   : > { %7631 = vmatpush3.msra.mxu1 %v6219_v63  ;;  %v6215_v63 = vld [vmem:[%s10538_s7 + $0x450] sm:$0xff]  ;;  %v9473_v40 = vpop.f32.mrf.mxu0 }
 0x23b   : > { %v9459_v3 = vpop.f32.mrf.mxu1  ;;  %7504 = vmatmul.mubr.f32.gmra.mxu1 %v9024_v18  ;;  %7632 = vmatprep.subr.mxu1 %v6218_v5  ;;  %10668 = vst [vmem:[#allocation46_spill] sm:$0xff] %v9473_v40 }
 0x23c   : > { %7506 = vmatprep.mubr.f32.mxu1 %v9028_v49  ;;  %7633 = vmatpush3.msra.mxu1 %v6218_v5  ;;  %v6214_v5 = vld [vmem:[%s10538_s7 + $0x448] sm:$0xff]  ;;  %v9487_v40 = vpop.f32.mrf.mxu0 }
 0x23d   : > { %v9468_v60 = vpop.f32.mrf.mxu1  ;;  %7634 = vmatprep.subr.mxu1 %v6217_v47  ;;  %10669 = vst [vmem:[#allocation47_spill] sm:$0xff] %v9487_v40  ;;  %v6211_v40 = vld [vmem:[%s10538_s7 + $0x430] sm:$0xff] }
 0x23e   : > { %7635 = vmatpush3.msra.mxu1 %v6217_v47  ;;  %v6213_v47 = vld [vmem:[%s10538_s7 + $0x440] sm:$0xff]  ;;  %v9496_v43 = vpop.f32.mrf.mxu0 }
 0x23f   : > { %v9475_v18 = vpop.f32.mrf.mxu1  ;;  %7507 = vmatmul.mubr.f32.gmra.mxu1 %v9040_v25  ;;  %7636 = vmatprep.subr.mxu1 %v6216_v59  ;;  %10670 = vst [vmem:[#allocation48_spill] sm:$0xff] %v9496_v43 }
 0x240   : > { %7509 = vmatprep.mubr.f32.mxu1 %v9047_v45  ;;  %7637 = vmatpush3.msra.mxu1 %v6216_v59  ;;  %v6212_v59 = vld [vmem:[%s10538_s7 + $0x438] sm:$0xff]  ;;  %v9510_v43 = vpop.f32.mrf.mxu0 }
 0x241   : > { %v9482_v10 = vpop.f32.mrf.mxu1  ;;  %7638 = vmatprep.subr.mxu1 %v6215_v63  ;;  %10671 = vst [vmem:[#allocation49_spill] sm:$0xff] %v9510_v43 }
 0x242   : > { %7639 = vmatpush3.msra.mxu1 %v6215_v63  ;;  %v9517_v27 = vpop.f32.mrf.mxu0 }
 0x243   : > { %v9489_v39 = vpop.f32.mrf.mxu1  ;;  %7510 = vmatmul.mubr.f32.gmra.mxu1 %v9059_v7  ;;  %7640 = vmatprep.subr.mxu1 %v6214_v5  ;;  %10672 = vst [vmem:[#allocation50_spill] sm:$0xff] %v9517_v27 }
 0x244   : > { %7512 = vmatprep.mubr.f32.mxu1 %v9066_v51  ;;  %7641 = vmatpush3.msra.mxu1 %v6214_v5  ;;  %v6210_v5 = vld [vmem:[%s10538_s7 + $0x428] sm:$0xff]  ;;  %v9531_v27 = vpop.f32.mrf.mxu0 }
 0x245   : > { %v9498_v63 = vpop.f32.mrf.mxu1  ;;  %7642 = vmatprep.subr.mxu1 %v6213_v47  ;;  %10673 = vst [vmem:[#allocation51_spill] sm:$0xff] %v9531_v27  ;;  %v6205_v27 = vld [vmem:[%s10538_s7 + $0x400] sm:$0xff] }
 0x246   : > { %7643 = vmatpush3.msra.mxu1 %v6213_v47  ;;  %v6209_v47 = vld [vmem:[%s10538_s7 + $0x420] sm:$0xff]  ;;  %v9540_v56 = vpop.f32.mrf.mxu0 }
 0x247   : > { %v9503_v33 = vpop.f32.mrf.mxu1  ;;  %7513 = vmatmul.mubr.f32.gmra.mxu1 %v9078_v28  ;;  %7644 = vmatprep.subr.mxu1 %v6212_v59  ;;  %10674 = vst [vmem:[#allocation52_spill] sm:$0xff] %v9540_v56 }
 0x248   : > { %7515 = vmatprep.mubr.f32.mxu1 %v9085_v38  ;;  %7645 = vmatpush3.msra.mxu1 %v6212_v59  ;;  %v6208_v59 = vld [vmem:[%s10538_s7 + $0x418] sm:$0xff] }
 0x249   : > { %v9512_v15 = vpop.f32.mrf.mxu1  ;;  %7646 = vmatprep.subr.mxu1 %v6211_v40 }
 0x24a   : > { %7647 = vmatpush3.msra.mxu1 %v6211_v40  ;;  %v6207_v40 = vld [vmem:[%s10538_s7 + $0x410] sm:$0xff] }
 0x24b   : > { %v9519_v62 = vpop.f32.mrf.mxu1  ;;  %7516 = vmatmul.mubr.f32.gmra.mxu1 %v9097_v53  ;;  %7648 = vmatprep.subr.mxu1 %v6210_v5 }
 0x24c   : > { %7518 = vmatprep.mubr.f32.mxu1 %v9104_v52  ;;  %7649 = vmatpush3.msra.mxu1 %v6210_v5  ;;  %v6206_v5 = vld [vmem:[%s10538_s7 + $0x408] sm:$0xff] }
 0x24d   : > { %v9526_v43 = vpop.f32.mrf.mxu1  ;;  %7650 = vmatprep.subr.mxu1 %v6209_v47 }
 0x24e   : > { %7651 = vmatpush3.msra.mxu1 %v6209_v47 }
 0x24f   : > { %v9533_v19 = vpop.f32.mrf.mxu1  ;;  %7519 = vmatmul.mubr.f32.gmra.mxu1 %v9116_v8  ;;  %7652 = vmatprep.subr.mxu1 %v6208_v59 }
 0x250   : > { %7521 = vmatprep.mubr.f32.mxu1 %v9123_v1  ;;  %7653 = vmatpush3.msra.mxu1 %v6208_v59  ;;  %v9551_v59 = vpop.f32.mrf.mxu0 }
 0x251   : > { %v9542_v47 = vpop.f32.mrf.mxu1  ;;  %7654 = vmatprep.subr.mxu1 %v6207_v40  ;;  %10675 = vst [vmem:[#allocation53_spill] sm:$0xff] %v9551_v59  ;;  %v10682_v59 = vld [vmem:[#allocation16_spill] sm:$0xff] }
 0x252   : > { %7655 = vmatpush3.msra.mxu1 %v6207_v40  ;;  %v9555_v56 = vpop.f32.mrf.mxu0 }
 0x253   : > { %v9547_v24 = vpop.f32.mrf.mxu1  ;;  %7522 = vmatmul.mubr.f32.gmra.mxu1 %v9135_v34  ;;  %7656 = vmatprep.subr.mxu1 %v6206_v5  ;;  %10676 = vst [vmem:[#allocation54_spill] sm:$0xff] %v9555_v56 }
 0x254   : > { %7524 = vmatprep.mubr.f32.mxu1 %v9142_v20  ;;  %7657 = vmatpush3.msra.mxu1 %v6206_v5  ;;  %v9563_v37 = vpop.f32.mrf.mxu0 }
 0x255   : > { %v9553_v22 = vpop.f32.mrf.mxu1  ;;  %7658 = vmatprep.subr.mxu1 %v6205_v27  ;;  %10678 = vst [vmem:[#allocation56_spill] sm:$0xff] %v9563_v37  ;;  %v5456_v37 = vld [vmem:[%s10543_s12 + $0x78] sm:$0xff] }
 0x256   : > { %7659 = vmatpush3.msra.mxu1 %v6205_v27  ;;  %v9569_v5 = vpop.f32.mrf.mxu0  ;;  %7708 = vmatprep.subr.mxu0 %v5456_v37 }
 0x257   : > { %v9557_v40 = vpop.f32.mrf.mxu1  ;;  %7525 = vmatmul.mubr.f32.gmra.mxu1 %v9154_v46  ;;  %10679 = vst [vmem:[#allocation57_spill] sm:$0xff] %v9569_v5  ;;  %7709 = vmatpush3.msra.mxu0 %v5456_v37  ;;  %v10692_v37 = vld [vmem:[#allocation21_spill] sm:$0xff] }
 0x258   : > { %7527 = vmatprep.mubr.f32.mxu1 %v9161_v36  ;;  %v9577_v12 = vpop.f32.mrf.mxu0  ;;  %7710 = vmatprep.subr.mxu0 %v5455_v29 }
 0x259   : > { %v9561_v55 = vpop.f32.mrf.mxu1  ;;  %10683 = vst [vmem:[#allocation16_spill] sm:$0xff] %v9577_v12  ;;  %7711 = vmatpush3.msra.mxu0 %v5455_v29 }
 0x25a   : > { %10677 = vst [vmem:[#allocation55_spill] sm:$0xff] %v9561_v55  ;;  %v9584_v23 = vpop.f32.mrf.mxu0 }
 0x25b   : > { %v9565_v41 = vpop.f32.mrf.mxu1  ;;  %7528 = vmatmul.mubr.f32.gmra.mxu1 %v9173_v61  ;;  %10685 = vst [vmem:[#allocation61_spill] sm:$0xff] %v9584_v23 }
 0x25c   : > { %7530 = vmatprep.mubr.f32.mxu1 %v9182_v57  ;;  %v9598_v23 = vpop.f32.mrf.mxu0 }
 0x25d   : > { %v9571_v27 = vpop.f32.mrf.mxu1  ;;  %10690 = vst [vmem:[#allocation19_spill] sm:$0xff] %v9598_v23  ;;  %v5452_v23 = vld [vmem:[%s10543_s12 + $0x58] sm:$0xff] }
 0x25e   : > { %10680 = vst [vmem:[#allocation58_spill] sm:$0xff] %v9571_v27  ;;  %v10687_v27 = vld [vmem:[#allocation18_spill] sm:$0xff]  ;;  %v9607_v29 = vpop.f32.mrf.mxu0 }
 0x25f   : > { %v9573_v56 = vpop.f32.mrf.mxu1  ;;  %7531 = vmatmul.mubr.f32.gmra.mxu1 %v9194_v14  ;;  %10694 = vst [vmem:[#allocation64_spill] sm:$0xff] %v9607_v29 }
 0x260   : > { %10681 = vst [vmem:[#allocation59_spill] sm:$0xff] %v9573_v56  ;;  %7533 = vmatprep.mubr.f32.mxu1 %v10682_v59  ;;  %v5453_v56 = vld [vmem:[%s10543_s12 + $0x60] sm:$0xff]  ;;  %v9621_v29 = vpop.f32.mrf.mxu0 }
 0x261   : > { %v9579_v55 = vpop.f32.mrf.mxu1 }
 0x262   : > { %10684 = vst [vmem:[#allocation60_spill] sm:$0xff] %v9579_v55  ;;  %v5454_v55 = vld [vmem:[%s10543_s12 + $0x68] sm:$0xff] }
 0x263   : > { %v9586_v5 = vpop.f32.mrf.mxu1  ;;  %7534 = vmatmul.mubr.f32.gmra.mxu1 %v10687_v27  ;;  %7712 = vmatprep.subr.mxu0 %v5454_v55 }
 0x264   : > { %10686 = vst [vmem:[#allocation62_spill] sm:$0xff] %v9586_v5  ;;  %7536 = vmatprep.mubr.f32.mxu1 %v10688_v0  ;;  %7713 = vmatpush3.msra.mxu0 %v5454_v55  ;;  %v10697_v55 = vld [vmem:[#allocation9_spill] sm:$0xff] }
 0x265   : > { %v9593_v12 = vpop.f32.mrf.mxu1  ;;  %7714 = vmatprep.subr.mxu0 %v5453_v56  ;;  %10699 = vst [vmem:[#allocation9_spill] sm:$0xff] %v9621_v29  ;;  %v5448_v29 = vld [vmem:[%s10543_s12 + $0x38] sm:$0xff] }
 0x266   : > { %10689 = vst [vmem:[#allocation18_spill] sm:$0xff] %v9593_v12  ;;  %7715 = vmatpush3.msra.mxu0 %v5453_v56 }
 0x267   : > { %v9600_v5 = vpop.f32.mrf.mxu1  ;;  %7537 = vmatmul.mubr.f32.gmra.mxu1 %v10692_v37  ;;  %7716 = vmatprep.subr.mxu0 %v5452_v23  ;;  %v10698_v37 = vld [vmem:[#allocation25_spill] sm:$0xff] }
 0x268   : > { %10691 = vst [vmem:[#allocation63_spill] sm:$0xff] %v9600_v5  ;;  %7539 = vmatprep.mubr.f32.mxu1 %v10693_v44  ;;  %7717 = vmatpush3.msra.mxu0 %v5452_v23  ;;  %v5451_v44 = vld [vmem:[%s10543_s12 + $0x50] sm:$0xff] }
 0x269   : > { %v9609_v12 = vpop.f32.mrf.mxu1  ;;  %7718 = vmatprep.subr.mxu0 %v5451_v44 }
 0x26a   : > { %10695 = vst [vmem:[#allocation65_spill] sm:$0xff] %v9609_v12  ;;  %7719 = vmatpush3.msra.mxu0 %v5451_v44  ;;  %v5450_v12 = vld [vmem:[%s10543_s12 + $0x48] sm:$0xff] }
 0x26b   : > { %v9614_v5 = vpop.f32.mrf.mxu1  ;;  %7540 = vmatmul.mubr.f32.gmra.mxu1 %v10697_v55  ;;  %7720 = vmatprep.subr.mxu0 %v5450_v12 }
 0x26c   : > { %10696 = vst [vmem:[#allocation66_spill] sm:$0xff] %v9614_v5  ;;  %7542 = vmatprep.mubr.f32.mxu1 %v10698_v37  ;;  %v9628_v5 = vpop.f32.mrf.mxu0  ;;  %7721 = vmatpush3.msra.mxu0 %v5450_v12  ;;  %v5449_v37 = vld [vmem:[%s10543_s12 + $0x40] sm:$0xff] }
 0x26d   : > { %v9623_v56 = vpop.f32.mrf.mxu1  ;;  %10701 = vst [vmem:[#allocation68_spill] sm:$0xff] %v9628_v5  ;;  %7722 = vmatprep.subr.mxu0 %v5449_v37 }
 0x26e   : > { %10700 = vst [vmem:[#allocation67_spill] sm:$0xff] %v9623_v56  ;;  %7723 = vmatpush3.msra.mxu0 %v5449_v37  ;;  %v9643_v56 = vpop.f32.mrf.mxu0 }
 0x26f   : > { %v9630_v23 = vpop.f32.mrf.mxu1  ;;  %7543 = vmatmul.mubr.f32.gmra.mxu1 %v9254_v50  ;;  %7724 = vmatprep.subr.mxu0 %v5448_v29  ;;  %10704 = vst [vmem:[#allocation71_spill] sm:$0xff] %v9643_v56 }
 0x270   : > { %10702 = vst [vmem:[#allocation69_spill] sm:$0xff] %v9630_v23  ;;  %7545 = vmatprep.mubr.f32.mxu1 %v9260_v11  ;;  %7725 = vmatpush3.msra.mxu0 %v5448_v29  ;;  %v5447_v23 = vld [vmem:[%s10543_s12 + $0x30] sm:$0xff] }
 0x271   : > { %v2554_v44 = vpop.f32.mrf.mxu1  ;;  %7726 = vmatprep.subr.mxu0 %v5447_v23 }
 0x272   : > { %v9641_v5 = vadd.f32 %v2554_v44, %v9430_v6  ;;  %7727 = vmatpush3.msra.mxu0 %v5447_v23  ;;  %v5446_v6 = vld [vmem:[%s10543_s12 + $0x28] sm:$0xff]  ;;  %v10706_v44 = vld [vmem:[#allocation15_spill] sm:$0xff]  ;;  %v10708_v23 = vld [vmem:[#allocation17_spill] sm:$0xff] }
 0x273   : > { %v7147_v12 = vpop.f32.mrf.mxu1  ;;  %7546 = vmatmul.mubr.f32.gmra.mxu1 %v9271_v32  ;;  %v2606_v56 = vadd.f32 %v9445_v17, %v10706_v44  ;;  %7728 = vmatprep.subr.mxu0 %v5446_v6  ;;  %v5299_v44 = vld [vmem:[%s8104_s24 + $0x8] sm:$0xff] }
 0x274   : > { %10703 = vst [vmem:[#allocation70_spill] sm:$0xff] %v9641_v5  ;;  %v9650_v37 = vadd.f32 %v7147_v12, %v9434_v21  ;;  %7660 = vmatprep.mubr.f32.mxu1 %v9028_v49  ;;  %v9661_v5 = vpop.f32.mrf.mxu0  ;;  %7729 = vmatpush3.msra.mxu0 %v5446_v6  ;;  %v5445_v49 = vld [vmem:[%s10543_s12 + $0x20] sm:$0xff]  ;;  %v2605_v12 = vadd.f32 %v9454_v31, %v10708_v23 }
 0x275   : > { %v2564_v11 = vpop.f32.mrf.mxu1  ;;  %10707 = vst [vmem:[#allocation15_spill] sm:$0xff] %v9661_v5  ;;  %7730 = vmatprep.subr.mxu0 %v5445_v49  ;;  %v9683_v31 = vld [vmem:[%s10541_s10] ss:$0 sm:$0xff] }
 0x276   : > { %10705 = vst [vmem:[#allocation72_spill] sm:$0xff] %v9650_v37  ;;  %v9659_v29 = vadd.f32 %v2564_v11, %v9438_v48  ;;  %7731 = vmatpush3.msra.mxu0 %v5445_v49  ;;  %v10709_v48 = vld [vmem:[#allocation20_spill] sm:$0xff]  ;;  %v5300_v49 = vld [vmem:[%s8104_s24 + $0x10] sm:$0xff]  ;;  %v10712_v23 = vld [vmem:[#allocation23_spill] sm:$0xff] }
 0x277   : > { %v7182_v21 = vpop.f32.mrf.mxu1  ;;  %7661 = vmatmul.mubr.f32.vlgmr.msra.gmra.mxu1 %v9040_v25  ;;  %v5444_v25 = vld [vmem:[%s10543_s12 + $0x18] sm:$0xff]  ;;  %v2608_v17 = vadd.f32 %v9459_v3, %v10709_v48  ;;  %v5338_v3 = vmul.f32 %v9683_v31, %v5299_v44  ;;  %v5442_v44 = vld [vmem:[%s10543_s12 + $0x8] sm:$0xff] }
 0x278   : > { %v9669_v37 = vadd.f32 %v7182_v21, %v2606_v56  ;;  %7663 = vmatprep.mubr.f32.mxu1 %v9047_v45  ;;  %7732 = vmatprep.subr.mxu0 %v5444_v25  ;;  %v9685_v45 = vpop.f32.mrf.mxu0  ;;  %v5443_v21 = vld [vmem:[%s10543_s12 + $0x10] sm:$0xff] }
 0x279   : > { %v2752_v11 = vpop.f32.mrf.mxu1  ;;  %10711 = vst [vmem:[#allocation20_spill] sm:$0xff] %v9685_v45  ;;  %7733 = vmatpush3.msra.mxu0 %v5444_v25  ;;  %v5339_v25 = vmul.f32 %v9683_v31, %v5300_v49  ;;  %v5301_v45 = vld [vmem:[%s8104_s24 + $0x28] sm:$0xff] }
 0x27a   : > { %v9677_v6 = vadd.f32 %v2752_v11, %v2605_v12  ;;  %v2607_v12 = vadd.f32 %v9468_v60, %v10712_v23  ;;  %7734 = vmatprep.subr.mxu0 %v5443_v21  ;;  %v9714_v5 = vpop.f32.mrf.mxu0 }
 0x27b   : > { %v7185_v56 = vpop.f32.mrf.mxu1  ;;  %7664 = vmatmul.mubr.f32.gmra.mxu1 %v9059_v7  ;;  %v9701_v7 = vld [vmem:[%s10542_s11] ss:$0 sm:$0xff]  ;;  %7735 = vmatpush3.msra.mxu0 %v5443_v21 }
 0x27c   : > { %10710 = vst [vmem:[#allocation17_spill] sm:$0xff] %v9677_v6  ;;  %v9695_v11 = vadd.f32 %v7185_v56, %v2608_v17  ;;  %7666 = vmatprep.mubr.f32.mxu1 %v9066_v51  ;;  %v5377_v60 = vadd.f32 %v9701_v7, %v5338_v3  ;;  %v10713_v17 = vld [vmem:[#allocation24_spill] sm:$0xff]  ;;  %7736 = vmatprep.subr.mxu0 %v5442_v44  ;;  %v5441_v21 = vld [vmem:[%s10543_s12] sm:$0xff] }
 0x27d   : > { %v2762_v48 = vpop.f32.mrf.mxu1  ;;  %v2610_v51 = vadd.f32 %v9475_v18, %v10713_v17  ;;  %v5378_v23 = vadd.f32 %v9701_v7, %v5339_v25  ;;  %10715 = vst [vmem:[#allocation24_spill] sm:$0xff] %v9714_v5  ;;  %7737 = vmatpush3.msra.mxu0 %v5442_v44  ;;  %v5340_v6 = vmul.f32 %v9683_v31, %v5301_v45  ;;  %v5302_v18 = vld [vmem:[%s8104_s24 + $0x30] sm:$0xff]  ;;  %v10717_v45 = vld [vmem:[#allocation10_spill] sm:$0xff] }
 0x27e   : > { %v9710_v56 = vadd.f32 %v2762_v48, %v2607_v12  ;;  %v5409_v3 = vmax.f32 %v5377_v60, 0.0  ;;  %v10716_v12 = vld [vmem:[#allocation13_spill] sm:$0xff]  ;;  %7738 = vmatprep.subr.mxu0 %v5441_v21  ;;  %v2612_v5 = vadd.f32 %v9489_v39, %v10717_v45 }
 0x27f   : > { %v7188_v49 = vpop.f32.mrf.mxu1  ;;  %7667 = vmatmul.mubr.f32.gmra.mxu1 %v9078_v28  ;;  %v2609_v48 = vadd.f32 %v9482_v10, %v10716_v12  ;;  %v5410_v17 = vmax.f32 %v5378_v23, 0.0  ;;  %v5341_v28 = vmul.f32 %v9683_v31, %v5302_v18  ;;  %7739 = vmatpush3.msra.mxu0 %v5441_v21  ;;  %v5379_v60 = vadd.f32 %v9701_v7, %v5340_v6  ;;  %v5306_v45 = vld [vmem:[%s8104_s24 + $0x70] sm:$0xff] }
 0x280   : > { %10714 = vst [vmem:[#allocation23_spill] sm:$0xff] %v9710_v56  ;;  %v9724_v25 = vadd.f32 %v7188_v49, %v2610_v51  ;;  %7669 = vmatprep.mubr.f32.mxu1 %v9085_v38  ;;  %7740 = vmatprep.mubr.f32.mxu0 %v5409_v3  ;;  %v5303_v51 = vld [vmem:[%s8104_s24 + $0x48] sm:$0xff]  ;;  %v9735_v38 = vpop.f32.mrf.mxu0  ;;  %v5304_v3 = vld [vmem:[%s8104_s24 + $0x50] sm:$0xff]  ;;  %v2611_v6 = vadd.f32 %v9498_v63, %v9278_v42 }
 0x281   : > { %v2772_v44 = vpop.f32.mrf.mxu1  ;;  %7741 = vmatmul.mubr.f32.vlgmr.msra.gmra.mxu0 %v5410_v17  ;;  %v5380_v10 = vadd.f32 %v9701_v7, %v5341_v28  ;;  %v5411_v49 = vmax.f32 %v5379_v60, 0.0  ;;  %v5342_v21 = vmul.f32 %v9683_v31, %v5303_v51  ;;  %v5343_v12 = vmul.f32 %v9683_v31, %v5304_v3  ;;  %v5305_v63 = vld [vmem:[%s8104_s24 + $0x68] sm:$0xff] }
 0x282   : > { %v9731_v56 = vadd.f32 %v2772_v44, %v2609_v48  ;;  %v2614_v17 = vadd.f32 %v9503_v33, %v9286_v16  ;;  %v5344_v60 = vmul.f32 %v9683_v31, %v5305_v63  ;;  %v5345_v51 = vmul.f32 %v9683_v31, %v5306_v45  ;;  %v5310_v45 = vld [vmem:[%s8104_s24 + $0xb0] sm:$0xff] }
 0x283   : > { %v7191_v23 = vpop.f32.mrf.mxu1  ;;  %7670 = vmatmul.mubr.f32.gmra.mxu1 %v9097_v53  ;;  %v5412_v18 = vmax.f32 %v5380_v10, 0.0  ;;  %7743 = vmatprep.mubr.f32.mxu0 %v5411_v49  ;;  %v5381_v53 = vadd.f32 %v9701_v7, %v5342_v21  ;;  %v5382_v42 = vadd.f32 %v9701_v7, %v5343_v12  ;;  %v2613_v10 = vadd.f32 %v9512_v15, %v9291_v54  ;;  %v5307_v15 = vld [vmem:[%s8104_s24 + $0x88] sm:$0xff]  ;;  %v5308_v12 = vld [vmem:[%s8104_s24 + $0x90] sm:$0xff] }
 0x284   : > { %v9742_v39 = vadd.f32 %v7191_v23, %v2612_v5  ;;  %7672 = vmatprep.mubr.f32.mxu1 %v9104_v52  ;;  %v9753_v5 = vpop.f32.mrf.mxu0  ;;  %v2616_v49 = vadd.f32 %v9519_v62, %v9296_v9  ;;  %v5384_v54 = vadd.f32 %v9701_v7, %v5345_v51 }
 0x285   : > { %v2782_v48 = vpop.f32.mrf.mxu1  ;;  %7744 = vmatmul.mubr.f32.gmra.mxu0 %v5412_v18  ;;  %v5413_v44 = vmax.f32 %v5381_v53, 0.0  ;;  %v5414_v33 = vmax.f32 %v5382_v42, 0.0  ;;  %v5346_v18 = vmul.f32 %v9683_v31, %v5307_v15  ;;  %v5347_v53 = vmul.f32 %v9683_v31, %v5308_v12 }
 0x286   : > { %v9749_v28 = vadd.f32 %v2782_v48, %v2611_v6  ;;  %v9771_v3 = vpop.f32.mrf.mxu0  ;;  %v2615_v48 = vadd.f32 %v9526_v43, %v9307_v35  ;;  %v5416_v62 = vmax.f32 %v5384_v54, 0.0  ;;  %v2618_v42 = vadd.f32 %v9533_v19, %v9314_v2  ;;  %v5309_v43 = vld [vmem:[%s8104_s24 + $0xa8] sm:$0xff] }
 0x287   : > { %v7194_v52 = vpop.f32.mrf.mxu1  ;;  %7673 = vmatmul.mubr.f32.gmra.mxu1 %v9116_v8  ;;  %7746 = vmatprep.mubr.f32.mxu0 %v5413_v44  ;;  %v5383_v8 = vadd.f32 %v9701_v7, %v5344_v60  ;;  %v5386_v35 = vadd.f32 %v9701_v7, %v5347_v53  ;;  %v5348_v60 = vmul.f32 %v9683_v31, %v5309_v43 }
 0x288   : > { %v9760_v16 = vadd.f32 %v7194_v52, %v2614_v17  ;;  %7675 = vmatprep.mubr.f32.mxu1 %v9123_v1  ;;  %v9789_v52 = vpop.f32.mrf.mxu0 }
 0x289   : > { %v2792_v23 = vpop.f32.mrf.mxu1  ;;  %7747 = vmatmul.mubr.f32.gmra.mxu0 %v5414_v33  ;;  %v5415_v6 = vmax.f32 %v5383_v8, 0.0  ;;  %v5418_v19 = vmax.f32 %v5386_v35, 0.0  ;;  %v5349_v33 = vmul.f32 %v9683_v31, %v5310_v45 }
 0x28a   : > { %v9767_v21 = vadd.f32 %v2792_v23, %v2613_v10  ;;  %v2617_v10 = vadd.f32 %v9542_v47, %v9324_v4  ;;  %v2620_v23 = vadd.f32 %v9547_v24, %v9329_v26  ;;  %v5311_v47 = vld [vmem:[%s8104_s24 + $0xc8] sm:$0xff] }
 0x28b   : > { %v7197_v1 = vpop.f32.mrf.mxu1  ;;  %7676 = vmatmul.mubr.f32.gmra.mxu1 %v9135_v34  ;;  %7749 = vmatprep.mubr.f32.mxu0 %v5415_v6  ;;  %v5385_v34 = vadd.f32 %v9701_v7, %v5346_v18  ;;  %v5388_v4 = vadd.f32 %v9701_v7, %v5349_v33  ;;  %v5350_v15 = vmul.f32 %v9683_v31, %v5311_v47  ;;  %v10718_v47 = vld [vmem:[#allocation4_spill] sm:$0xff] }
 0x28c   : > { %v9778_v9 = vadd.f32 %v7197_v1, %v2616_v49  ;;  %7678 = vmatprep.mubr.f32.mxu1 %v9142_v20  ;;  %v9807_v49 = vpop.f32.mrf.mxu0  ;;  %v5312_v1 = vld [vmem:[%s8104_s24 + $0xd0] sm:$0xff]  ;;  %v2619_v6 = vadd.f32 %v9553_v22, %v9339_v13  ;;  %v5313_v22 = vld [vmem:[%s8104_s24 + $0xe8] sm:$0xff] }
 0x28d   : > { %v2802_v17 = vpop.f32.mrf.mxu1  ;;  %7750 = vmatmul.mubr.f32.gmra.mxu0 %v5416_v62  ;;  %v5417_v44 = vmax.f32 %v5385_v34, 0.0  ;;  %v5420_v24 = vmax.f32 %v5388_v4, 0.0  ;;  %v5351_v18 = vmul.f32 %v9683_v31, %v5312_v1  ;;  %v5352_v34 = vmul.f32 %v9683_v31, %v5313_v22  ;;  %v5296_v22 = vld [vmem:[%s10540_s9 + $0x68] sm:$0xff] }
 0x28e   : > { %v9785_v63 = vadd.f32 %v2802_v17, %v2615_v48  ;;  %v2622_v48 = vadd.f32 %v9557_v40, %v9346_v58  ;;  %v9825_v53 = vpop.f32.mrf.mxu0  ;;  %v5298_v58 = vld [vmem:[%s10540_s9 + $0x78] sm:$0xff] }
 0x28f   : > { %v7200_v20 = vpop.f32.mrf.mxu1  ;;  %7679 = vmatmul.mubr.f32.gmra.mxu1 %v9154_v46  ;;  %7752 = vmatprep.mubr.f32.mxu0 %v5417_v44  ;;  %v5387_v46 = vadd.f32 %v9701_v7, %v5348_v60  ;;  %v5390_v13 = vadd.f32 %v9701_v7, %v5351_v18  ;;  %v2624_v44 = vadd.f32 %v9565_v41, %v9361_v30  ;;  %v5315_v60 = vld [vmem:[%s8104_s24 + $0x108] sm:$0xff]  ;;  %v5297_v41 = vld [vmem:[%s10540_s9 + $0x70] sm:$0xff] }
 0x290   : > { %v9796_v2 = vadd.f32 %v7200_v20, %v2618_v42  ;;  %7681 = vmatprep.mubr.f32.mxu1 %v9161_v36  ;;  %v5314_v42 = vld [vmem:[%s8104_s24 + $0xf0] sm:$0xff]  ;;  %7868 = vmatprep.subr.mxu1 %v5298_v58  ;;  %v9844_v45 = vpop.f32.mrf.mxu0  ;;  %v5354_v33 = vmul.f32 %v9683_v31, %v5315_v60 }
 0x291   : > { %v2812_v51 = vpop.f32.mrf.mxu1  ;;  %7753 = vmatmul.mubr.f32.gmra.mxu0 %v5418_v19  ;;  %v5419_v54 = vmax.f32 %v5387_v46, 0.0  ;;  %v5422_v40 = vmax.f32 %v5390_v13, 0.0  ;;  %v5353_v43 = vmul.f32 %v9683_v31, %v5314_v42  ;;  %7884 = vmatpush3.msra.mxu1 %v5298_v58  ;;  %v10721_v13 = vld [vmem:[#allocation22_spill] sm:$0xff] }
 0x292   : > { %v9803_v8 = vadd.f32 %v2812_v51, %v2617_v10  ;;  %v5316_v51 = vld [vmem:[%s8104_s24 + $0x110] sm:$0xff]  ;;  %7788 = vmatprep.subr.mxu0 %v5298_v58  ;;  %7869 = vmatprep.subr.mxu1 %v5297_v41  ;;  %v5393_v4 = vadd.f32 %v9701_v7, %v5354_v33  ;;  %v9863_v1 = vpop.f32.mrf.mxu0 }
 0x293   : > { %v7203_v36 = vpop.f32.mrf.mxu1  ;;  %7682 = vmatmul.mubr.f32.gmra.mxu1 %v9173_v61  ;;  %7755 = vmatprep.mubr.f32.mxu0 %v5419_v54  ;;  %v5389_v61 = vadd.f32 %v9701_v7, %v5350_v15  ;;  %v5317_v15 = vld [vmem:[%s8104_s24 + $0x128] sm:$0xff]  ;;  %v5320_v33 = vld [vmem:[%s8104_s24 + $0x150] sm:$0xff] }
 0x294   : > { %v9814_v26 = vadd.f32 %v7203_v36, %v2620_v23  ;;  %7684 = vmatprep.mubr.f32.mxu1 %v9182_v57  ;;  %v5355_v23 = vmul.f32 %v9683_v31, %v5316_v51  ;;  %7789 = vmatpush3.msra.mxu0 %v5298_v58  ;;  %v10719_v36 = vld [vmem:[#allocation59_spill] sm:$0xff]  ;;  %v5425_v18 = vmax.f32 %v5393_v4, 0.0  ;;  %v10722_v58 = vld [vmem:[#allocation28_spill] sm:$0xff]  ;;  %v5359_v4 = vmul.f32 %v9683_v31, %v5320_v33 }
 0x295   : > { %v2822_v12 = vpop.f32.mrf.mxu1  ;;  %7756 = vmatmul.mubr.f32.gmra.mxu0 %v5420_v24  ;;  %v5421_v17 = vmax.f32 %v5389_v61, 0.0  ;;  %v2626_v54 = vadd.f32 %v10719_v36, %v10718_v47  ;;  %7885 = vmatpush3.msra.mxu1 %v5297_v41  ;;  %v10720_v24 = vld [vmem:[#allocation21_spill] sm:$0xff]  ;;  %v10725_v36 = vld [vmem:[#allocation32_spill] sm:$0xff] }
 0x296   : > { %v9821_v62 = vadd.f32 %v2822_v12, %v2619_v6  ;;  %7790 = vmatprep.subr.mxu0 %v5297_v41  ;;  %v5356_v12 = vmul.f32 %v9683_v31, %v5317_v15  ;;  %v5318_v61 = vld [vmem:[%s8104_s24 + $0x130] sm:$0xff]  ;;  %7870 = vmatprep.subr.mxu1 %v5296_v22  ;;  %v5398_v15 = vadd.f32 %v9701_v7, %v5359_v4 }
 0x297   : > { %v7206_v57 = vpop.f32.mrf.mxu1  ;;  %7685 = vmatmul.mubr.f32.gmra.mxu1 %v9194_v14  ;;  %7758 = vmatprep.mubr.f32.mxu0 %v5421_v17  ;;  %v5391_v14 = vadd.f32 %v9701_v7, %v5352_v34  ;;  %v5357_v17 = vmul.f32 %v9683_v31, %v5318_v61  ;;  %v5324_v4 = vld [vmem:[%s8104_s24 + $0x190] sm:$0xff] }
 0x298   : > { %v9830_v35 = vadd.f32 %v7206_v57, %v2622_v48  ;;  %7687 = vmatprep.mubr.f32.mxu1 %v10682_v59  ;;  %v5392_v59 = vadd.f32 %v9701_v7, %v5353_v43  ;;  %7791 = vmatpush3.msra.mxu0 %v5297_v41  ;;  %v5395_v42 = vadd.f32 %v9701_v7, %v5356_v12  ;;  %v10724_v41 = vld [vmem:[#allocation25_spill] sm:$0xff] }
 0x299   : > { %v9837_v20 = vpop.f32.mrf.mxu1  ;;  %7759 = vmatmul.mubr.f32.gmra.mxu0 %v5422_v40  ;;  %v5423_v19 = vmax.f32 %v5391_v14, 0.0  ;;  %v10723_v40 = vld [vmem:[#allocation62_spill] sm:$0xff]  ;;  %7886 = vmatpush3.msra.mxu1 %v5296_v22  ;;  %v5396_v14 = vadd.f32 %v9701_v7, %v5357_v17 }
 0x29a   : > { %v5424_v30 = vmax.f32 %v5392_v59, 0.0  ;;  %v2628_v43 = vadd.f32 %v10723_v40, %v10722_v58  ;;  %v9882_v59 = vpop.f32.mrf.mxu0  ;;  %7792 = vmatprep.subr.mxu0 %v5296_v22  ;;  %v5294_v17 = vld [vmem:[%s10540_s9 + $0x58] sm:$0xff] }
 0x29b   : > { %v7209_v10 = vpop.f32.mrf.mxu1  ;;  %7688 = vmatmul.mubr.f32.gmra.mxu1 %v10687_v27  ;;  %7761 = vmatprep.mubr.f32.mxu0 %v5423_v19 }
 0x29c   : > { %v9849_v46 = vadd.f32 %v7209_v10, %v2624_v44  ;;  %7690 = vmatprep.mubr.f32.mxu1 %v10688_v0  ;;  %v5394_v0 = vadd.f32 %v9701_v7, %v5355_v23  ;;  %v5319_v44 = vld [vmem:[%s8104_s24 + $0x148] sm:$0xff]  ;;  %v5427_v10 = vmax.f32 %v5395_v42, 0.0  ;;  %v5428_v23 = vmax.f32 %v5396_v14, 0.0  ;;  %7793 = vmatpush3.msra.mxu0 %v5296_v22  ;;  %v10729_v14 = vld [vmem:[#allocation66_spill] sm:$0xff] }
 0x29d   : > { %v9856_v27 = vpop.f32.mrf.mxu1  ;;  %7762 = vmatmul.mubr.f32.gmra.mxu0 %v5424_v30  ;;  %v5358_v19 = vmul.f32 %v9683_v31, %v5319_v44  ;;  %v5295_v30 = vld [vmem:[%s10540_s9 + $0x60] sm:$0xff]  ;;  %v5430_v42 = vmax.f32 %v5398_v15, 0.0 }
 0x29e   : > { %v5426_v57 = vmax.f32 %v5394_v0, 0.0  ;;  %7764 = vmatprep.mubr.f32.mxu0 %v5425_v18  ;;  %7871 = vmatprep.subr.mxu1 %v5295_v30 }
 0x29f   : > { %v7212_v6 = vpop.f32.mrf.mxu1  ;;  %7691 = vmatmul.mubr.f32.gmra.mxu1 %v10720_v24  ;;  %v5397_v47 = vadd.f32 %v9701_v7, %v5358_v19  ;;  %v9901_v24 = vpop.f32.mrf.mxu0  ;;  %7794 = vmatprep.subr.mxu0 %v5295_v30 }
 0x2a0   : > { %v9868_v48 = vadd.f32 %v7212_v6, %v2626_v54  ;;  %7693 = vmatprep.mubr.f32.mxu1 %v10721_v13  ;;  %v10726_v54 = vld [vmem:[#allocation63_spill] sm:$0xff]  ;;  %7887 = vmatpush3.msra.mxu1 %v5295_v30  ;;  %v5321_v6 = vld [vmem:[%s8104_s24 + $0x168] sm:$0xff]  ;;  %v5322_v13 = vld [vmem:[%s8104_s24 + $0x170] sm:$0xff] }
 0x2a1   : > { %v9875_v34 = vpop.f32.mrf.mxu1  ;;  %7765 = vmatmul.mubr.f32.gmra.mxu0 %v5426_v57  ;;  %v2630_v0 = vadd.f32 %v10726_v54, %v10725_v36  ;;  %v5429_v12 = vmax.f32 %v5397_v47, 0.0  ;;  %v5360_v61 = vmul.f32 %v9683_v31, %v5321_v6  ;;  %v10727_v57 = vld [vmem:[#allocation11_spill] sm:$0xff]  ;;  %v5361_v58 = vmul.f32 %v9683_v31, %v5322_v13  ;;  %7872 = vmatprep.subr.mxu1 %v5294_v17  ;;  %v9920_v19 = vpop.f32.mrf.mxu0  ;;  %v10730_v36 = vld [vmem:[#allocation12_spill] sm:$0xff] }
 0x2a2   : > { %7767 = vmatprep.mubr.f32.mxu0 %v5427_v10  ;;  %7795 = vmatpush3.msra.mxu0 %v5295_v30  ;;  %v5323_v10 = vld [vmem:[%s8104_s24 + $0x188] sm:$0xff] }
 0x2a3   : > { %v7215_v60 = vpop.f32.mrf.mxu1  ;;  %7694 = vmatmul.mubr.f32.gmra.mxu1 %v10697_v55  ;;  %7796 = vmatprep.subr.mxu0 %v5294_v17  ;;  %v10731_v6 = vld [vmem:[#allocation40_spill] sm:$0xff] }
 0x2a4   : > { %v9887_v51 = vadd.f32 %v7215_v60, %v2628_v43  ;;  %7696 = vmatprep.mubr.f32.mxu1 %v10724_v41  ;;  %v10728_v43 = vld [vmem:[#allocation36_spill] sm:$0xff]  ;;  %v5400_v60 = vadd.f32 %v9701_v7, %v5361_v58  ;;  %7797 = vmatpush3.msra.mxu0 %v5294_v17  ;;  %v5293_v41 = vld [vmem:[%s10540_s9 + $0x50] sm:$0xff]  ;;  %v10734_v58 = vld [vmem:[#allocation6_spill] sm:$0xff] }
 0x2a5   : > { %v9894_v55 = vpop.f32.mrf.mxu1  ;;  %7768 = vmatmul.mubr.f32.gmra.mxu0 %v5428_v23  ;;  %v2632_v44 = vadd.f32 %v10729_v14, %v10728_v43  ;;  %v5362_v23 = vmul.f32 %v9683_v31, %v5323_v10  ;;  %7888 = vmatpush3.msra.mxu1 %v5294_v17  ;;  %v9942_v17 = vpop.f32.mrf.mxu0  ;;  %v5326_v14 = vld [vmem:[%s8104_s24 + $0x1b0] sm:$0xff]  ;;  %v5291_v10 = vld [vmem:[%s10540_s9 + $0x40] sm:$0xff] }
 0x2a6   : > { %7770 = vmatprep.mubr.f32.mxu0 %v5429_v12  ;;  %v5432_v54 = vmax.f32 %v5400_v60, 0.0  ;;  %7798 = vmatprep.subr.mxu0 %v5293_v41  ;;  %10733 = vst [vmem:[#allocation13_spill] sm:$0xff] %v9942_v17  ;;  %v10735_v60 = vld [vmem:[#allocation8_spill] sm:$0xff] }
 0x2a7   : > { %v7218_v18 = vpop.f32.mrf.mxu1  ;;  %7697 = vmatmul.mubr.f32.gmra.mxu1 %v9254_v50  ;;  %v5399_v50 = vadd.f32 %v9701_v7, %v5360_v61  ;;  %7873 = vmatprep.subr.mxu1 %v5293_v41  ;;  %v5292_v61 = vld [vmem:[%s10540_s9 + $0x48] sm:$0xff] }
 0x2a8   : > { %v9906_v22 = vadd.f32 %v7218_v18, %v2630_v0  ;;  %7699 = vmatprep.mubr.f32.mxu1 %v10727_v57  ;;  %v5363_v0 = vmul.f32 %v9683_v31, %v5324_v4  ;;  %v10732_v18 = vld [vmem:[#allocation69_spill] sm:$0xff]  ;;  %7799 = vmatpush3.msra.mxu0 %v5293_v41  ;;  %v5325_v57 = vld [vmem:[%s8104_s24 + $0x1a8] sm:$0xff] }
 0x2a9   : > { %v9913_v40 = vpop.f32.mrf.mxu1  ;;  %7771 = vmatmul.mubr.f32.gmra.mxu0 %v5430_v42  ;;  %v5431_v30 = vmax.f32 %v5399_v50, 0.0  ;;  %v2634_v12 = vadd.f32 %v10732_v18, %v10731_v6  ;;  %v5364_v43 = vmul.f32 %v9683_v31, %v5325_v57  ;;  %7889 = vmatpush3.msra.mxu1 %v5293_v41  ;;  %v5290_v41 = vld [vmem:[%s10540_s9 + $0x38] sm:$0xff] }
 0x2aa   : > { %v5402_v13 = vadd.f32 %v9701_v7, %v5363_v0  ;;  %7800 = vmatprep.subr.mxu0 %v5292_v61  ;;  %7874 = vmatprep.subr.mxu1 %v5292_v61  ;;  %v9962_v0 = vpop.f32.mrf.mxu0 }
 0x2ab   : > { %v7221_v33 = vpop.f32.mrf.mxu1  ;;  %7700 = vmatmul.mubr.f32.gmra.mxu1 %v9271_v32  ;;  %7773 = vmatprep.mubr.f32.mxu0 %v5431_v30  ;;  %v5401_v32 = vadd.f32 %v9701_v7, %v5362_v23  ;;  %v5403_v4 = vadd.f32 %v9701_v7, %v5364_v43  ;;  %10736 = vst [vmem:[#allocation10_spill] sm:$0xff] %v9962_v0  ;;  %v10833_v0 = vld [vmem:[#allocation17_spill] sm:$0xff] }
 0x2ac   : > { %v9928_v47 = vadd.f32 %v7221_v33, %v2632_v44  ;;  %7702 = vmatprep.mubr.f32.mxu1 %v10730_v36  ;;  %v5365_v33 = vmul.f32 %v9683_v31, %v5326_v14  ;;  %v5434_v23 = vmax.f32 %v5402_v13, 0.0  ;;  %7801 = vmatpush3.msra.mxu0 %v5292_v61  ;;  %v10737_v13 = vld [vmem:[#allocation72_spill] sm:$0xff] }
 0x2ad   : > { %v9932_v15 = vpop.f32.mrf.mxu1  ;;  %7774 = vmatmul.mubr.f32.gmra.mxu0 %v5432_v54  ;;  %v5433_v50 = vmax.f32 %v5401_v32, 0.0  ;;  %v5327_v54 = vld [vmem:[%s8104_s24 + $0x1c8] sm:$0xff]  ;;  %7802 = vmatprep.subr.mxu0 %v5291_v10  ;;  %v5435_v6 = vmax.f32 %v5403_v4, 0.0 }
 0x2ae   : > { %v5404_v36 = vadd.f32 %v9701_v7, %v5365_v33  ;;  %v5366_v18 = vmul.f32 %v9683_v31, %v5327_v54  ;;  %7803 = vmatpush3.msra.mxu0 %v5291_v10  ;;  %7890 = vmatpush3.msra.mxu1 %v5292_v61  ;;  %v5288_v61 = vld [vmem:[%s10540_s9 + $0x28] sm:$0xff] }
 0x2af   : > { %v7224_v42 = vpop.f32.mrf.mxu1  ;;  %7703 = vmatmul.mubr.f32.gmra.mxu1 %v10734_v58  ;;  %7776 = vmatprep.mubr.f32.mxu0 %v5433_v50  ;;  %v5329_v54 = vld [vmem:[%s8104_s24 + $0x1e8] sm:$0xff] }
 0x2b0   : > { %v9947_v44 = vadd.f32 %v7224_v42, %v2634_v12  ;;  %7705 = vmatprep.mubr.f32.mxu1 %v10735_v60  ;;  %v5328_v12 = vld [vmem:[%s8104_s24 + $0x1d0] sm:$0xff]  ;;  %7804 = vmatprep.subr.mxu0 %v5290_v41  ;;  %v5436_v43 = vmax.f32 %v5404_v36, 0.0  ;;  %v5405_v14 = vadd.f32 %v9701_v7, %v5366_v18  ;;  %v5368_v18 = vmul.f32 %v9683_v31, %v5329_v54  ;;  %v10740_v54 = vld [vmem:[#allocation27_spill] sm:$0xff] }
 0x2b1   : > { %v9954_v30 = vpop.f32.mrf.mxu1  ;;  %v5289_v42 = vld [vmem:[%s10540_s9 + $0x30] sm:$0xff]  ;;  %v5367_v58 = vmul.f32 %v9683_v31, %v5328_v12  ;;  %7777 = vmatmul.mubr.f32.gmra.mxu0 %v5434_v23  ;;  %7875 = vmatprep.subr.mxu1 %v5291_v10 }
 0x2b2   : > { %7805 = vmatpush3.msra.mxu0 %v5290_v41  ;;  %7779 = vmatprep.mubr.f32.mxu0 %v5435_v6  ;;  %v5437_v36 = vmax.f32 %v5405_v14, 0.0  ;;  %v5330_v12 = vld [vmem:[%s8104_s24 + $0x1f0] sm:$0xff]  ;;  %v5407_v14 = vadd.f32 %v9701_v7, %v5368_v18  ;;  %s10470_s24 = scalar_lea.vmem %s10544_s13, %s6230_s17 }
 0x2b3   : > { %v7227_v32 = vpop.f32.mrf.mxu1  ;;  %7706 = vmatmul.mubr.f32.gmra.mxu1 %v10735_v60  ;;  %v10738_v60 = vld [vmem:[#allocation7_spill] sm:$0xff]  ;;  %v5406_v4 = vadd.f32 %v9701_v7, %v5367_v58  ;;  %7806 = vmatprep.subr.mxu0 %v5289_v42  ;;  %v5369_v6 = vmul.f32 %v9683_v31, %v5330_v12 }
 0x2b4   : > { %v9968_v57 = vadd.f32 %v7227_v32, %v10737_v13  ;;  %v3282_v33 = vadd.f32 %v10738_v60, %v9669_v37  ;;  %v9984_v32 = vpop.f32.mrf.mxu0  ;;  %7807 = vmatpush3.msra.mxu0 %v5289_v42  ;;  %7891 = vmatpush3.msra.mxu1 %v5291_v10  ;;  %v5287_v37 = vld [vmem:[%s10540_s9 + $0x20] sm:$0xff]  ;;  %v5286_v10 = vld [vmem:[%s10540_s9 + $0x18] sm:$0xff] }
 0x2b5   : > { %v9974_v50 = vpop.f32.mrf.mxu1  ;;  %10739 = vst [vmem:[#allocation4_spill] sm:$0xff] %v9984_v32  ;;  %7780 = vmatmul.mubr.f32.gmra.mxu0 %v5436_v43  ;;  %7808 = vmatprep.subr.mxu0 %v5288_v61  ;;  %v5438_v60 = vmax.f32 %v5406_v4, 0.0  ;;  %v3284_v32 = vadd.f32 %v10740_v54, %v9695_v11  ;;  %v5439_v43 = vmax.f32 %v5407_v14, 0.0  ;;  %v5285_v11 = vld [vmem:[%s10540_s9 + $0x10] sm:$0xff] }
 0x2b6   : > { %7809 = vmatpush3.msra.mxu0 %v5288_v61  ;;  %7782 = vmatprep.mubr.f32.mxu0 %v5437_v36 }
 0x2b7   : > { %v7342_v23 = vpop.f32.mrf.mxu1  ;;  %7810 = vmatprep.subr.mxu0 %v5287_v37  ;;  %7876 = vmatprep.subr.mxu1 %v5290_v41 }
 0x2b8   : > { %v9988_v13 = vadd.f32 %v7342_v23, %v3282_v33  ;;  %v5408_v33 = vadd.f32 %v9701_v7, %v5369_v6  ;;  %v10003_v23 = vpop.f32.mrf.mxu0  ;;  %7811 = vmatpush3.msra.mxu0 %v5287_v37  ;;  %7892 = vmatpush3.msra.mxu1 %v5290_v41  ;;  %v10742_v7 = vld [vmem:[#allocation31_spill] sm:$0xff] }
 0x2b9   : > { %v9994_v58 = vpop.f32.mrf.mxu1  ;;  %10741 = vst [vmem:[#allocation59_spill] sm:$0xff] %v10003_v23  ;;  %7783 = vmatmul.mubr.f32.gmra.mxu0 %v5438_v60  ;;  %7812 = vmatprep.subr.mxu0 %v5286_v10  ;;  %v3286_v12 = vadd.f32 %v10742_v7, %v9724_v25  ;;  %v10744_v60 = vld [vmem:[#allocation33_spill] sm:$0xff]  ;;  %v5283_v25 = vld [vmem:[%s10540_s9] sm:$0xff] }
 0x2ba   : > { %v5440_v18 = vmax.f32 %v5408_v33, 0.0  ;;  %7813 = vmatpush3.msra.mxu0 %v5286_v10  ;;  %7785 = vmatprep.mubr.f32.mxu0 %v5439_v43  ;;  %v10017_v6 = vpop.f32.mrf.mxu0  ;;  %v3285_v54 = vadd.f32 %v10744_v60, %v9731_v56  ;;  %v10745_v43 = vld [vmem:[#allocation35_spill] sm:$0xff] }
 0x2bb   : > { %v7345_v31 = vpop.f32.mrf.mxu1  ;;  %10743 = vst [vmem:[#allocation21_spill] sm:$0xff] %v10017_v6  ;;  %7814 = vmatprep.subr.mxu0 %v5285_v11  ;;  %7877 = vmatprep.subr.mxu1 %v5289_v42  ;;  %v3288_v7 = vadd.f32 %v10745_v43, %v9742_v39  ;;  %v10748_v39 = vld [vmem:[#allocation39_spill] sm:$0xff] }
 0x2bc   : > { %v10005_v4 = vadd.f32 %v7345_v31, %v3284_v32  ;;  %v5284_v32 = vld [vmem:[%s10540_s9 + $0x8] sm:$0xff]  ;;  %7815 = vmatpush3.msra.mxu0 %v5285_v11  ;;  %7893 = vmatpush3.msra.mxu1 %v5289_v42  ;;  %v10747_v42 = vld [vmem:[#allocation37_spill] sm:$0xff] }
 0x2bd   : > { %v10010_v36 = vpop.f32.mrf.mxu1  ;;  %7786 = vmatmul.mubr.f32.gmra.mxu0 %v5440_v18  ;;  %7816 = vmatprep.subr.mxu0 %v5284_v32  ;;  %v3287_v60 = vadd.f32 %v10747_v42, %v9749_v28 }
 0x2be   : > { %7817 = vmatpush3.msra.mxu0 %v5284_v32  ;;  %7878 = vmatprep.subr.mxu1 %v5288_v61 }
 0x2bf   : > { %v7348_v41 = vpop.f32.mrf.mxu1  ;;  %7818 = vmatprep.subr.mxu0 %v5283_v25  ;;  %7894 = vmatpush3.msra.mxu1 %v5288_v61 }
 0x2c0   : > { %v10019_v14 = vadd.f32 %v7348_v41, %v3286_v12  ;;  %v10030_v12 = vpop.f32.mrf.mxu0  ;;  %7819 = vmatpush3.msra.mxu0 %v5283_v25  ;;  %7879 = vmatprep.subr.mxu1 %v5287_v37 }
 0x2c1   : > { %v3448_v33 = vpop.f32.mrf.mxu1  ;;  %10746 = vst [vmem:[#allocation22_spill] sm:$0xff] %v10030_v12  ;;  %7895 = vmatpush3.msra.mxu1 %v5287_v37  ;;  %v10751_v37 = vld [vmem:[#allocation42_spill] sm:$0xff] }
 0x2c2   : > { %v10026_v31 = vadd.f32 %v3448_v33, %v3285_v54  ;;  %v3290_v33 = vadd.f32 %v10748_v39, %v9760_v16  ;;  %7880 = vmatprep.subr.mxu1 %v5286_v10  ;;  %v10040_v43 = vpop.f32.mrf.mxu0 }
 0x2c3   : > { %v7351_v41 = vpop.f32.mrf.mxu1  ;;  %10749 = vst [vmem:[#allocation28_spill] sm:$0xff] %v10040_v43  ;;  %7896 = vmatpush3.msra.mxu1 %v5286_v10  ;;  %v10753_v10 = vld [vmem:[#allocation43_spill] sm:$0xff]  ;;  %v10764_v43 = vld [vmem:[#allocation58_spill] sm:$0xff] }
 0x2c4   : > { %v10032_v56 = vadd.f32 %v7351_v41, %v3288_v7  ;;  %v10750_v7 = vld [vmem:[#allocation41_spill] sm:$0xff]  ;;  %7881 = vmatprep.subr.mxu1 %v5285_v11  ;;  %v10050_v16 = vpop.f32.mrf.mxu0 }
 0x2c5   : > { %v3458_v18 = vpop.f32.mrf.mxu1  ;;  %v3289_v41 = vadd.f32 %v10750_v7, %v9767_v21  ;;  %7897 = vmatpush3.msra.mxu1 %v5285_v11  ;;  %10752 = vst [vmem:[#allocation62_spill] sm:$0xff] %v10050_v16  ;;  %v10754_v11 = vld [vmem:[#allocation44_spill] sm:$0xff]  ;;  %v10758_v16 = vld [vmem:[#allocation55_spill] sm:$0xff] }
 0x2c6   : > { %v10036_v54 = vadd.f32 %v3458_v18, %v3287_v60  ;;  %v3292_v60 = vadd.f32 %v10751_v37, %v9778_v9  ;;  %7882 = vmatprep.subr.mxu1 %v5284_v32  ;;  %v3294_v7 = vadd.f32 %v10754_v11, %v9796_v2 }
 0x2c7   : > { %v7354_v12 = vpop.f32.mrf.mxu1  ;;  %7898 = vmatpush3.msra.mxu1 %v5284_v32  ;;  %v10756_v32 = vld [vmem:[#allocation45_spill] sm:$0xff] }
 0x2c8   : > { %v10042_v61 = vadd.f32 %v7354_v12, %v3290_v33  ;;  %v3291_v12 = vadd.f32 %v10753_v10, %v9785_v63  ;;  %7883 = vmatprep.subr.mxu1 %v5283_v25  ;;  %v3293_v37 = vadd.f32 %v10756_v32, %v9803_v8  ;;  %v10763_v32 = vld [vmem:[#allocation3_spill] sm:$0xff] }
 0x2c9   : > { %v3468_v28 = vpop.f32.mrf.mxu1  ;;  %7899 = vmatpush3.msra.mxu1 %v5283_v25  ;;  %v10759_v25 = vld [vmem:[#allocation46_spill] sm:$0xff]  ;;  %v2623_v6 = vadd.f32 %v10764_v43, %v10763_v32 }
 0x2ca   : > { %v10046_v42 = vadd.f32 %v3468_v28, %v3289_v41  ;;  %v10060_v41 = vpop.f32.mrf.mxu0  ;;  %v10773_v43 = vld [vmem:[#allocation50_spill] sm:$0xff] }
 0x2cb   : > { %v7357_v18 = vpop.f32.mrf.mxu1  ;;  %10755 = vst [vmem:[#allocation25_spill] sm:$0xff] %v10060_v41 }
 0x2cc   : > { %v10052_v39 = vadd.f32 %v7357_v18, %v3292_v60  ;;  %v10757_v18 = vld [vmem:[#allocation14_spill] sm:$0xff] }
 0x2cd   : > { %v3478_v21 = vpop.f32.mrf.mxu1  ;;  %v2621_v63 = vadd.f32 %v10758_v16, %v10757_v18 }
 0x2ce   : > { %v10056_v33 = vadd.f32 %v3478_v21, %v3291_v12  ;;  %v3296_v12 = vadd.f32 %v10759_v25, %v9814_v26  ;;  %v10072_v21 = vpop.f32.mrf.mxu0  ;;  %v2961_v25 = vadd.f32 %v9856_v27, %v2623_v6  ;;  %v10776_v27 = vld [vmem:[#allocation51_spill] sm:$0xff] }
 0x2cf   : > { %v7360_v9 = vpop.f32.mrf.mxu1  ;;  %10760 = vst [vmem:[#allocation32_spill] sm:$0xff] %v10072_v21  ;;  %v2959_v11 = vadd.f32 %v9837_v20, %v2621_v63  ;;  %v10769_v63 = vld [vmem:[#allocation49_spill] sm:$0xff] }
 0x2d0   : > { %v10062_v28 = vadd.f32 %v7360_v9, %v3294_v7  ;;  %v10762_v7 = vld [vmem:[#allocation47_spill] sm:$0xff]  ;;  %v10085_v26 = vpop.f32.mrf.mxu0  ;;  %v3299_v6 = vadd.f32 %v10776_v27, %v2961_v25  ;;  %v10784_v25 = vld [vmem:[#allocation34_spill] sm:$0xff] }
 0x2d1   : > { %v3488_v60 = vpop.f32.mrf.mxu1  ;;  %v3295_v9 = vadd.f32 %v10762_v7, %v9821_v62  ;;  %10767 = vst [vmem:[#allocation36_spill] sm:$0xff] %v10085_v26  ;;  %v10770_v62 = vld [vmem:[#allocation26_spill] sm:$0xff]  ;;  %v10771_v7 = vld [vmem:[#allocation60_spill] sm:$0xff] }
 0x2d2   : > { %v10068_v10 = vadd.f32 %v3488_v60, %v3293_v37  ;;  %v10766_v37 = vld [vmem:[#allocation48_spill] sm:$0xff]  ;;  %v2625_v21 = vadd.f32 %v10771_v7, %v10770_v62 }
 0x2d3   : > { %v7363_v2 = vpop.f32.mrf.mxu1  ;;  %v3298_v60 = vadd.f32 %v10766_v37, %v9830_v35 }
 0x2d4   : > { %v10075_v41 = vadd.f32 %v7363_v2, %v3296_v12  ;;  %v3297_v12 = vadd.f32 %v10769_v63, %v2959_v11  ;;  %v2963_v32 = vadd.f32 %v9875_v34, %v2625_v21  ;;  %v10777_v11 = vld [vmem:[#allocation30_spill] sm:$0xff]  ;;  %v10783_v34 = vld [vmem:[#allocation53_spill] sm:$0xff] }
 0x2d5   : > { %v3498_v8 = vpop.f32.mrf.mxu1 }
 0x2d6   : > { %10761 = vst [vmem:[#allocation63_spill] sm:$0xff] %v10075_v41  ;;  %v10081_v16 = vadd.f32 %v3498_v8, %v3295_v9  ;;  %v3300_v9 = vadd.f32 %v10773_v43, %v9849_v46  ;;  %v10097_v8 = vpop.f32.mrf.mxu0  ;;  %v3301_v21 = vadd.f32 %v10783_v34, %v2963_v32  ;;  %v10791_v32 = vld [vmem:[#allocation38_spill] sm:$0xff] }
 0x2d7   : > { %v7366_v18 = vpop.f32.mrf.mxu1  ;;  %10774 = vst [vmem:[#allocation40_spill] sm:$0xff] %v10097_v8 }
 0x2d8   : > { %10765 = vst [vmem:[#allocation11_spill] sm:$0xff] %v10081_v16  ;;  %v10088_v20 = vadd.f32 %v7366_v18, %v3298_v60  ;;  %v10778_v18 = vld [vmem:[#allocation18_spill] sm:$0xff]  ;;  %v10109_v62 = vpop.f32.mrf.mxu0 }
 0x2d9   : > { %v3508_v2 = vpop.f32.mrf.mxu1  ;;  %v2627_v63 = vadd.f32 %v10778_v18, %v10777_v11  ;;  %10781 = vst [vmem:[#allocation8_spill] sm:$0xff] %v10109_v62 }
 0x2da   : > { %10768 = vst [vmem:[#allocation66_spill] sm:$0xff] %v10088_v20  ;;  %v10093_v23 = vadd.f32 %v3508_v2, %v3297_v12  ;;  %v10780_v12 = vld [vmem:[#allocation52_spill] sm:$0xff]  ;;  %v10121_v11 = vpop.f32.mrf.mxu0 }
 0x2db   : > { %v7369_v35 = vpop.f32.mrf.mxu1  ;;  %v3302_v2 = vadd.f32 %v10780_v12, %v9868_v48  ;;  %v2965_v7 = vadd.f32 %v9894_v55, %v2627_v63  ;;  %10788 = vst [vmem:[#allocation27_spill] sm:$0xff] %v10121_v11  ;;  %v10790_v55 = vld [vmem:[#allocation56_spill] sm:$0xff] }
 0x2dc   : > { %10772 = vst [vmem:[#allocation12_spill] sm:$0xff] %v10093_v23  ;;  %v10100_v37 = vadd.f32 %v7369_v35, %v3300_v9  ;;  %v10785_v35 = vld [vmem:[#allocation65_spill] sm:$0xff] }
 0x2dd   : > { %v3518_v60 = vpop.f32.mrf.mxu1  ;;  %v2629_v27 = vadd.f32 %v10785_v35, %v10784_v25  ;;  %v3303_v63 = vadd.f32 %v10790_v55, %v2965_v7  ;;  %v10133_v25 = vpop.f32.mrf.mxu0 }
 0x2de   : > { %10775 = vst [vmem:[#allocation69_spill] sm:$0xff] %v10100_v37  ;;  %v10105_v26 = vadd.f32 %v3518_v60, %v3299_v6  ;;  %v10787_v6 = vld [vmem:[#allocation54_spill] sm:$0xff]  ;;  %10795 = vst [vmem:[#allocation35_spill] sm:$0xff] %v10133_v25 }
 0x2df   : > { %v7372_v46 = vpop.f32.mrf.mxu1  ;;  %v3304_v60 = vadd.f32 %v10787_v6, %v9887_v51  ;;  %v2967_v18 = vadd.f32 %v9913_v40, %v2629_v27  ;;  %v10797_v40 = vld [vmem:[#allocation16_spill] sm:$0xff] }
 0x2e0   : > { %10779 = vst [vmem:[#allocation6_spill] sm:$0xff] %v10105_v26  ;;  %v10112_v43 = vadd.f32 %v7372_v46, %v3302_v2  ;;  %v10792_v46 = vld [vmem:[#allocation67_spill] sm:$0xff] }
 0x2e1   : > { %v3528_v9 = vpop.f32.mrf.mxu1  ;;  %v2631_v34 = vadd.f32 %v10792_v46, %v10791_v32  ;;  %v3305_v27 = vadd.f32 %v10797_v40, %v2967_v18  ;;  %v10801_v32 = vld [vmem:[#allocation70_spill] sm:$0xff]  ;;  %v10805_v18 = vld [vmem:[#allocation64_spill] sm:$0xff] }
 0x2e2   : > { %10782 = vst [vmem:[#allocation72_spill] sm:$0xff] %v10112_v43  ;;  %v10117_v8 = vadd.f32 %v3528_v9, %v3301_v21  ;;  %v10794_v21 = vld [vmem:[#allocation57_spill] sm:$0xff] }
 0x2e3   : > { %v7375_v48 = vpop.f32.mrf.mxu1  ;;  %v3306_v9 = vadd.f32 %v10794_v21, %v9906_v22  ;;  %v2969_v35 = vadd.f32 %v9932_v15, %v2631_v34  ;;  %v2971_v22 = vadd.f32 %v9954_v30, %v10801_v32  ;;  %v10803_v21 = vld [vmem:[#allocation19_spill] sm:$0xff] }
 0x2e4   : > { %10786 = vst [vmem:[#allocation7_spill] sm:$0xff] %v10117_v8  ;;  %v10124_v12 = vadd.f32 %v7375_v48, %v3304_v60  ;;  %v10799_v48 = vld [vmem:[#allocation61_spill] sm:$0xff] }
 0x2e5   : > { %v3538_v2 = vpop.f32.mrf.mxu1  ;;  %v3308_v55 = vadd.f32 %v10799_v48, %v9928_v47  ;;  %v3307_v15 = vadd.f32 %v10803_v21, %v2969_v35  ;;  %v2973_v47 = vadd.f32 %v9974_v50, %v9659_v29  ;;  %v10808_v48 = vld [vmem:[#allocation9_spill] sm:$0xff]  ;;  %v10810_v35 = vld [vmem:[#allocation68_spill] sm:$0xff] }
 0x2e6   : > { %10789 = vst [vmem:[#allocation31_spill] sm:$0xff] %v10124_v12  ;;  %v10129_v62 = vadd.f32 %v3538_v2, %v3303_v63  ;;  %v10143_v63 = vpop.f32.mrf.mxu0  ;;  %v3309_v30 = vadd.f32 %v10808_v48, %v2971_v22  ;;  %v3312_v32 = vadd.f32 %v10810_v35, %v9968_v57 }
 0x2e7   : > { %v7378_v51 = vpop.f32.mrf.mxu1  ;;  %10800 = vst [vmem:[#allocation41_spill] sm:$0xff] %v10143_v63 }
 0x2e8   : > { %10793 = vst [vmem:[#allocation33_spill] sm:$0xff] %v10129_v62  ;;  %v10136_v6 = vadd.f32 %v7378_v51, %v3306_v9  ;;  %v3310_v51 = vadd.f32 %v10805_v18, %v9947_v44  ;;  %v10154_v40 = vpop.f32.mrf.mxu0 }
 0x2e9   : > { %v3548_v60 = vpop.f32.mrf.mxu1  ;;  %10806 = vst [vmem:[#allocation44_spill] sm:$0xff] %v10154_v40 }
 0x2ea   : > { %10796 = vst [vmem:[#allocation37_spill] sm:$0xff] %v10136_v6  ;;  %v10139_v7 = vadd.f32 %v3548_v60, %v3305_v27  ;;  %v10165_v21 = vpop.f32.mrf.mxu0 }
 0x2eb   : > { %v7381_v2 = vpop.f32.mrf.mxu1  ;;  %10811 = vst [vmem:[#allocation55_spill] sm:$0xff] %v10165_v21 }
 0x2ec   : > { %10798 = vst [vmem:[#allocation39_spill] sm:$0xff] %v10139_v7  ;;  %v10147_v46 = vadd.f32 %v7381_v2, %v3308_v55  ;;  %v7582_v29 = vpop.f32.mrf.mxu0 }
 0x2ed   : > { %v3558_v34 = vpop.f32.mrf.mxu1 }
 0x2ee   : > { %10802 = vst [vmem:[#allocation42_spill] sm:$0xff] %v10147_v46  ;;  %v10150_v9 = vadd.f32 %v3558_v34, %v3307_v15  ;;  %v10813_v34 = vld [vmem:[#allocation71_spill] sm:$0xff]  ;;  %v10172_v22 = vpop.f32.mrf.mxu0 }
 0x2ef   : > { %v7384_v27 = vpop.f32.mrf.mxu1  ;;  %v3311_v18 = vadd.f32 %v10813_v34, %v2973_v47 }
 0x2f0   : > { %10804 = vst [vmem:[#allocation43_spill] sm:$0xff] %v10150_v9  ;;  %v10158_v60 = vadd.f32 %v7384_v27, %v3310_v51 }
 0x2f1   : > { %v3568_v55 = vpop.f32.mrf.mxu1 }
 0x2f2   : > { %10807 = vst [vmem:[#allocation45_spill] sm:$0xff] %v10158_v60  ;;  %v10161_v2 = vadd.f32 %v3568_v55, %v3309_v30  ;;  %v10174_v30 = vpop.f32.mrf.mxu0 }
 0x2f3   : > { %v7387_v15 = vpop.f32.mrf.mxu1 }
 0x2f4   : > { %10809 = vst [vmem:[#allocation14_spill] sm:$0xff] %v10161_v2  ;;  %v10167_v44 = vadd.f32 %v7387_v15, %v3312_v32  ;;  %v10178_v35 = vpop.f32.mrf.mxu0 }
 0x2f5   : > { %v3578_v40 = vpop.f32.mrf.mxu1 }
 0x2f6   : > { %10812 = vst [vmem:[#allocation46_spill] sm:$0xff] %v10167_v44  ;;  %v10170_v63 = vadd.f32 %v3578_v40, %v3311_v18  ;;  %v10184_v40 = vpop.f32.mrf.mxu0 }
 0x2f7   : > { %v7502_v50 = vpop.f32.mrf.mxu1 }
 0x2f8   : > { %10814 = vst [vmem:[#allocation47_spill] sm:$0xff] %v10170_v63  ;;  %v10190_v18 = vpop.f32.mrf.mxu0 }
 0x2f9   : > { %v4249_v51 = vpop.f32.mrf.mxu1 }
 0x2fa   : > { %v10196_v44 = vpop.f32.mrf.mxu0 }
 0x2fb   : > { %v7505_v27 = vpop.f32.mrf.mxu1 }
 0x2fc   : > { %v10202_v60 = vpop.f32.mrf.mxu0 }
 0x2fd   : > { %v4259_v48 = vpop.f32.mrf.mxu1 }
 0x2fe   : > { %v10208_v46 = vpop.f32.mrf.mxu0 }
 0x2ff   : > { %v7508_v57 = vpop.f32.mrf.mxu1 }
 0x300   : > { %v10214_v62 = vpop.f32.mrf.mxu0 }
 0x301   : > { %v10176_v55 = vpop.f32.mrf.mxu1 }
 0x302   : > { %v10220_v43 = vpop.f32.mrf.mxu0 }
 0x303   : > { %v10180_v32 = vpop.f32.mrf.mxu1  ;;  %10822 = vst [vmem:[#allocation51_spill] sm:$0xff] %v10220_v43 }
 0x304   : > { %v10226_v23 = vpop.f32.mrf.mxu0 }
 0x305   : > { %v10182_v47 = vpop.f32.mrf.mxu1  ;;  %10825 = vst [vmem:[#allocation52_spill] sm:$0xff] %v10226_v23 }
 0x307   : > { %v10186_v15 = vpop.f32.mrf.mxu1 }
 0x309   : > { %v10188_v34 = vpop.f32.mrf.mxu1 }
 0x30b   : > { %v10192_v21 = vpop.f32.mrf.mxu1 }
 0x30d   : > { %v10194_v63 = vpop.f32.mrf.mxu1 }
 0x30f   : > { %v10198_v2 = vpop.f32.mrf.mxu1 }
 0x311   : > { %v10200_v25 = vpop.f32.mrf.mxu1 }
 0x312   : > { %10815 = vst [vmem:[#allocation3_spill] sm:$0xff] %v10200_v25  ;;  %v10839_v25 = vld [vmem:[#allocation29_spill] sm:$0xff] }
 0x313   : > { %v10204_v11 = vpop.f32.mrf.mxu1 }
 0x314   : > { %10816 = vst [vmem:[#allocation58_spill] sm:$0xff] %v10204_v11 }
 0x315   : > { %v10206_v9 = vpop.f32.mrf.mxu1 }
 0x316   : > { %10817 = vst [vmem:[#allocation48_spill] sm:$0xff] %v10206_v9 }
 0x317   : > { %v10210_v7 = vpop.f32.mrf.mxu1 }
 0x318   : > { %10818 = vst [vmem:[#allocation49_spill] sm:$0xff] %v10210_v7  ;;  %v10232_v7 = vpop.f32.mrf.mxu0 }
 0x319   : > { %v10212_v6 = vpop.f32.mrf.mxu1  ;;  %10828 = vst [vmem:[#allocation65_spill] sm:$0xff] %v10232_v7  ;;  %v10838_v7 = vld [vmem:[#allocation23_spill] sm:$0xff] }
 0x31a   : > { %10819 = vst [vmem:[#allocation26_spill] sm:$0xff] %v10212_v6 }
 0x31b   : > { %v10216_v12 = vpop.f32.mrf.mxu1 }
 0x31c   : > { %10820 = vst [vmem:[#allocation60_spill] sm:$0xff] %v10216_v12  ;;  %v10238_v12 = vpop.f32.mrf.mxu0 }
 0x31d   : > { %v10218_v8 = vpop.f32.mrf.mxu1  ;;  %10831 = vst [vmem:[#allocation38_spill] sm:$0xff] %v10238_v12 }
 0x31e   : > { %10821 = vst [vmem:[#allocation50_spill] sm:$0xff] %v10218_v8 }
 0x31f   : > { %v10222_v26 = vpop.f32.mrf.mxu1 }
 0x320   : > { %10823 = vst [vmem:[#allocation30_spill] sm:$0xff] %v10222_v26  ;;  %v10834_v26 = vld [vmem:[#allocation5_spill] sm:$0xff] }
 0x321   : > { %v10224_v37 = vpop.f32.mrf.mxu1  ;;  %v3281_v16 = vadd.f32 %v10834_v26, %v10833_v0  ;;  %v10841_v0 = vld [vmem:[#allocation20_spill] sm:$0xff] }
 0x322   : > { %10824 = vst [vmem:[#allocation18_spill] sm:$0xff] %v10224_v37 }
 0x323   : > { %v10228_v9 = vpop.f32.mrf.mxu1  ;;  %v3619_v23 = vadd.f32 %v9994_v58, %v3281_v16 }
 0x324   : > { %10826 = vst [vmem:[#allocation53_spill] sm:$0xff] %v10228_v9  ;;  %v10247_v9 = vpop.f32.mrf.mxu0 }
 0x325   : > { %v10230_v20 = vpop.f32.mrf.mxu1  ;;  %10836 = vst [vmem:[#allocation16_spill] sm:$0xff] %v10247_v9  ;;  %v3957_v26 = vadd.f32 %v10841_v0, %v3619_v23  ;;  %v3962_v23 = vadd.f32 %v9753_v5, %v10019_v14  ;;  %v3964_v5 = vadd.f32 %v9789_v52, %v10032_v56 }
 0x326   : > { %10827 = vst [vmem:[#allocation34_spill] sm:$0xff] %v10230_v20 }
 0x327   : > { %v10234_v6 = vpop.f32.mrf.mxu1  ;;  %v4440_v16 = vadd.f32 %v4249_v51, %v3957_v26 }
 0x328   : > { %10829 = vst [vmem:[#allocation54_spill] sm:$0xff] %v10234_v6  ;;  %v3283_v6 = vadd.f32 %v10839_v25, %v10838_v7 }
 0x329   : > { %v10236_v11 = vpop.f32.mrf.mxu1 }
 0x32a   : > { %10830 = vst [vmem:[#allocation56_spill] sm:$0xff] %v10236_v11  ;;  %v10840_v11 = vld [vmem:[#allocation15_spill] sm:$0xff] }
 0x32b   : > { %v10240_v8 = vpop.f32.mrf.mxu1  ;;  %v3958_v17 = vadd.f32 %v10840_v11, %v9988_v13 }
 0x32c   : > { %10832 = vst [vmem:[#allocation67_spill] sm:$0xff] %v10240_v8  ;;  %v3621_v8 = vadd.f32 %v10010_v36, %v3283_v6 }
 0x32d   : > { %v10244_v37 = vpop.f32.mrf.mxu1  ;;  %v4441_v41 = vadd.f32 %v7502_v50, %v3958_v17  ;;  %v10275_v50 = vld [vmem:[%s10539_s8] ss:$0 sm:$0xff] }
 0x32e   : > { %10835 = vst [vmem:[#allocation57_spill] sm:$0xff] %v10244_v37  ;;  %v10259_v37 = vpop.f32.mrf.mxu0  ;;  %v3959_v13 = vadd.f32 %v9735_v38, %v3621_v8  ;;  %v3961_v38 = vadd.f32 %v9771_v3, %v10026_v31  ;;  %v3963_v3 = vadd.f32 %v9807_v49, %v10036_v54 }
 0x32f   : > { %v10249_v20 = vpop.f32.mrf.mxu1  ;;  %v4779_v11 = vadd.f32 %v7582_v29, %v4441_v41 }
 0x330   : > { %10837 = vst [vmem:[#allocation61_spill] sm:$0xff] %v10249_v20  ;;  %v10842_v20 = vld [vmem:[#allocation24_spill] sm:$0xff]  ;;  %v10268_v7 = vpop.f32.mrf.mxu0  ;;  %v4442_v17 = vadd.f32 %v4259_v48, %v3959_v13 }
 0x331   : > { %v10255_v12 = vpop.f32.mrf.mxu1  ;;  %v3960_v9 = vadd.f32 %v10842_v20, %v10005_v4  ;;  %v4778_v4 = vadd.f32 %v10172_v22, %v4440_v16 }
 0x332   : > { %v10281_v29 = vpop.f32.mrf.mxu0 }
 0x333   : > { %v10261_v58 = vpop.f32.mrf.mxu1  ;;  %v4443_v25 = vadd.f32 %v7505_v27, %v3960_v9  ;;  %v4445_v9 = vadd.f32 %v7508_v57, %v3962_v23  ;;  %v4444_v27 = vadd.f32 %v10176_v55, %v3961_v38  ;;  %v4780_v57 = vadd.f32 %v10178_v35, %v4442_v17 }
 0x334   : > { %v10293_v56 = vpop.f32.mrf.mxu0  ;;  %v3966_v55 = vadd.f32 %v9825_v53, %v10042_v61  ;;  %v4446_v35 = vadd.f32 %v10182_v47, %v3963_v3  ;;  %v3968_v47 = vadd.f32 %v9863_v1, %v10052_v39 }
 0x335   : > { %v10265_v43 = vpop.f32.mrf.mxu1  ;;  %v4781_v8 = vadd.f32 %v10174_v30, %v4443_v25  ;;  %v4447_v30 = vadd.f32 %v10180_v32, %v3964_v5  ;;  %v4783_v52 = vadd.f32 %v10184_v40, %v4445_v9  ;;  %v4782_v32 = vadd.f32 %v10190_v18, %v4444_v27 }
 0x336   : > { %v3965_v40 = vadd.f32 %v9844_v45, %v10046_v42  ;;  %v10305_v23 = vpop.f32.mrf.mxu0  ;;  %v4451_v38 = vadd.f32 %v10192_v21, %v3968_v47  ;;  %v10853_v47 = vld [vmem:[#allocation4_spill] sm:$0xff] }
 0x337   : > { %v7662_v36 = vpop.f32.mrf.mxu1  ;;  %v4785_v17 = vadd.f32 %v10196_v44, %v4447_v30  ;;  %v3967_v44 = vadd.f32 %v9882_v59, %v10056_v33 }
 0x338   : > { %v5117_v6 = vadd.f32 %v7662_v36, %v4779_v11  ;;  %v4449_v36 = vadd.f32 %v10186_v15, %v3966_v55  ;;  %v4784_v15 = vadd.f32 %v10202_v60, %v4446_v35 }
 0x339   : > { %v4925_v20 = vpop.f32.mrf.mxu1 }
 0x33a   : > { %v5116_v41 = vadd.f32 %v4925_v20, %v4778_v4  ;;  %v5220_v14 = vadd.f32 %v10275_v50, %v5117_v6  ;;  %v4448_v20 = vadd.f32 %v10188_v34, %v3965_v40  ;;  %v3970_v34 = vadd.f32 %v9901_v24, %v10062_v28 }
 0x33b   : > { %v7665_v51 = vpop.f32.mrf.mxu1 }
 0x33c   : > { %v5219_v22 = vadd.f32 %v10275_v50, %v5116_v41  ;;  %v5119_v48 = vadd.f32 %v7665_v51, %v4781_v8  ;;  %v5252_v16 = vmax.f32 %v5220_v14, 0.0  ;;  %v4787_v41 = vadd.f32 %v10208_v46, %v4449_v36  ;;  %v10317_v8 = vpop.f32.mrf.mxu0  ;;  %v10851_v36 = vld [vmem:[#allocation65_spill] sm:$0xff] }
 0x33d   : > { %v4935_v31 = vpop.f32.mrf.mxu1  ;;  %v4450_v51 = vadd.f32 %v10194_v63, %v3967_v44  ;;  %v4786_v21 = vadd.f32 %v10214_v62, %v4448_v20  ;;  %v3969_v46 = vadd.f32 %v9920_v19, %v10068_v10  ;;  %v10844_v63 = vld [vmem:[#allocation63_spill] sm:$0xff] }
 0x33e   : > { %v5251_v0 = vmax.f32 %v5219_v22, 0.0  ;;  %v5118_v26 = vadd.f32 %v4935_v31, %v4780_v57  ;;  %v5222_v25 = vadd.f32 %v10275_v50, %v5119_v48  ;;  %v4453_v22 = vadd.f32 %v10198_v2, %v3970_v34  ;;  %v10843_v48 = vld [vmem:[#allocation51_spill] sm:$0xff]  ;;  %v10329_v3 = vpop.f32.mrf.mxu0  ;;  %v10845_v31 = vld [vmem:[#allocation13_spill] sm:$0xff]  ;;  %v10847_v2 = vld [vmem:[#allocation52_spill] sm:$0xff] }
 0x33f   : > { %v7668_v13 = vpop.f32.mrf.mxu1  ;;  %v4789_v57 = vadd.f32 %v10843_v48, %v4451_v38  ;;  %v3972_v30 = vadd.f32 %v10845_v31, %v10844_v63 }
 0x340   : > { %v5221_v49 = vadd.f32 %v10275_v50, %v5118_v26  ;;  %v5121_v54 = vadd.f32 %v7668_v13, %v4783_v52  ;;  %7820 = vmatprep.mubr.f32.mxu0 %v5251_v0  ;;  %v5254_v6 = vmax.f32 %v5222_v25, 0.0  ;;  %v10846_v52 = vld [vmem:[#allocation3_spill] sm:$0xff]  ;;  %v10849_v13 = vld [vmem:[#allocation10_spill] sm:$0xff] }
 0x341   : > { %v4945_v11 = vpop.f32.mrf.mxu1  ;;  %7821 = vmatmul.mubr.f32.vlgmr.msra.gmra.mxu0 %v5252_v16  ;;  %v4452_v55 = vadd.f32 %v10846_v52, %v3969_v46  ;;  %v4788_v16 = vadd.f32 %v10847_v2, %v4450_v51  ;;  %v10848_v25 = vld [vmem:[#allocation11_spill] sm:$0xff]  ;;  %v10860_v46 = vld [vmem:[#allocation69_spill] sm:$0xff] }
 0x342   : > { %v5253_v53 = vmax.f32 %v5221_v49, 0.0  ;;  %v5120_v61 = vadd.f32 %v4945_v11, %v4782_v32  ;;  %v5224_v4 = vadd.f32 %v10275_v50, %v5121_v54  ;;  %v3971_v35 = vadd.f32 %v10849_v13, %v10848_v25  ;;  %v10850_v54 = vld [vmem:[#allocation58_spill] sm:$0xff] }
 0x343   : > { %v7671_v18 = vpop.f32.mrf.mxu1  ;;  %v4455_v32 = vadd.f32 %v10850_v54, %v3972_v30 }
 0x344   : > { %v5223_v45 = vadd.f32 %v10275_v50, %v5120_v61  ;;  %v5123_v42 = vadd.f32 %v7671_v18, %v4785_v17  ;;  %7823 = vmatprep.mubr.f32.mxu0 %v5253_v53  ;;  %v5256_v5 = vmax.f32 %v5224_v4, 0.0  ;;  %v4791_v53 = vadd.f32 %v10851_v36, %v4453_v22  ;;  %v10341_v61 = vpop.f32.mrf.mxu0  ;;  %v10852_v17 = vld [vmem:[#allocation66_spill] sm:$0xff] }
 0x345   : > { %v4955_v9 = vpop.f32.mrf.mxu1  ;;  %7824 = vmatmul.mubr.f32.gmra.mxu0 %v5254_v6  ;;  %v3974_v6 = vadd.f32 %v10853_v47, %v10852_v17 }
 0x346   : > { %v5255_v1 = vmax.f32 %v5223_v45, 0.0  ;;  %v5122_v39 = vadd.f32 %v4955_v9, %v4784_v15  ;;  %v5226_v14 = vadd.f32 %v10275_v50, %v5123_v42  ;;  %v10854_v45 = vld [vmem:[#allocation48_spill] sm:$0xff]  ;;  %v10855_v9 = vld [vmem:[#allocation38_spill] sm:$0xff] }
 0x347   : > { %v7674_v60 = vpop.f32.mrf.mxu1  ;;  %v4454_v42 = vadd.f32 %v10854_v45, %v3971_v35  ;;  %v4790_v38 = vadd.f32 %v10855_v9, %v4452_v55  ;;  %v10866_v35 = vld [vmem:[#allocation72_spill] sm:$0xff] }
 0x348   : > { %v5225_v59 = vadd.f32 %v10275_v50, %v5122_v39  ;;  %v5125_v33 = vadd.f32 %v7674_v60, %v4787_v41  ;;  %7826 = vmatprep.mubr.f32.mxu0 %v5255_v1  ;;  %v5258_v0 = vmax.f32 %v5226_v14, 0.0  ;;  %v10856_v1 = vld [vmem:[#allocation12_spill] sm:$0xff]  ;;  %v10857_v39 = vld [vmem:[#allocation59_spill] sm:$0xff] }
 0x349   : > { %v4965_v27 = vpop.f32.mrf.mxu1  ;;  %7827 = vmatmul.mubr.f32.gmra.mxu0 %v5256_v5  ;;  %v3973_v41 = vadd.f32 %v10857_v39, %v10856_v1  ;;  %v10858_v5 = vld [vmem:[#allocation49_spill] sm:$0xff] }
 0x34a   : > { %v5257_v24 = vmax.f32 %v5225_v59, 0.0  ;;  %v5124_v28 = vadd.f32 %v4965_v27, %v4786_v21  ;;  %v5228_v26 = vadd.f32 %v10275_v50, %v5125_v33  ;;  %v4457_v14 = vadd.f32 %v10858_v5, %v3974_v6  ;;  %v10859_v59 = vld [vmem:[#allocation16_spill] sm:$0xff]  ;;  %v10353_v21 = vpop.f32.mrf.mxu0  ;;  %v10861_v27 = vld [vmem:[#allocation21_spill] sm:$0xff]  ;;  %v10869_v6 = vld [vmem:[#allocation7_spill] sm:$0xff] }
 0x34b   : > { %v7677_v62 = vpop.f32.mrf.mxu1  ;;  %v4793_v33 = vadd.f32 %v10859_v59, %v4455_v32  ;;  %v3976_v22 = vadd.f32 %v10861_v27, %v10860_v46  ;;  %v10873_v1 = vld [vmem:[#allocation25_spill] sm:$0xff]  ;;  %v10876_v46 = vld [vmem:[#allocation32_spill] sm:$0xff] }
 0x34c   : > { %v5227_v19 = vadd.f32 %v10275_v50, %v5124_v28  ;;  %v5127_v10 = vadd.f32 %v7677_v62, %v4789_v57  ;;  %7829 = vmatprep.mubr.f32.mxu0 %v5257_v24  ;;  %v5260_v4 = vmax.f32 %v5228_v26, 0.0  ;;  %v10862_v57 = vld [vmem:[#allocation26_spill] sm:$0xff]  ;;  %v4795_v25 = vadd.f32 %v10268_v7, %v4457_v14  ;;  %v10365_v13 = vpop.f32.mrf.mxu0 }
 0x34d   : > { %v4975_v49 = vpop.f32.mrf.mxu1  ;;  %7830 = vmatmul.mubr.f32.gmra.mxu0 %v5258_v0  ;;  %v4456_v63 = vadd.f32 %v10862_v57, %v3973_v41  ;;  %v4792_v0 = vadd.f32 %v10259_v37, %v4454_v42  ;;  %v10863_v26 = vld [vmem:[#allocation6_spill] sm:$0xff] }
 0x34e   : > { %v5259_v40 = vmax.f32 %v5227_v19, 0.0  ;;  %v5126_v11 = vadd.f32 %v4975_v49, %v4788_v16  ;;  %v5230_v18 = vadd.f32 %v10275_v50, %v5127_v10  ;;  %v10864_v62 = vld [vmem:[#allocation22_spill] sm:$0xff]  ;;  %v10865_v19 = vld [vmem:[#allocation60_spill] sm:$0xff]  ;;  %v4707_v9 = vpop.f32.mrf.mxu0 }
 0x34f   : > { %v7680_v20 = vpop.f32.mrf.mxu1  ;;  %v3975_v52 = vadd.f32 %v10864_v62, %v10863_v26  ;;  %v4459_v10 = vadd.f32 %v10865_v19, %v3976_v22  ;;  %v10867_v49 = vld [vmem:[#allocation28_spill] sm:$0xff]  ;;  %v4794_v47 = vadd.f32 %v10281_v29, %v4456_v63  ;;  %v10874_v29 = vld [vmem:[#allocation18_spill] sm:$0xff]  ;;  %v10877_v22 = vld [vmem:[#allocation53_spill] sm:$0xff] }
 0x350   : > { %v5229_v15 = vadd.f32 %v10275_v50, %v5126_v11  ;;  %v5129_v44 = vadd.f32 %v7680_v20, %v4791_v53  ;;  %7832 = vmatprep.mubr.f32.mxu0 %v5259_v40  ;;  %v5262_v24 = vmax.f32 %v5230_v18, 0.0  ;;  %v3978_v54 = vadd.f32 %v10867_v49, %v10866_v35  ;;  %v10868_v11 = vld [vmem:[#allocation50_spill] sm:$0xff]  ;;  %v7621_v63 = vpop.f32.mrf.mxu0 }
 0x351   : > { %v4985_v34 = vpop.f32.mrf.mxu1  ;;  %7833 = vmatmul.mubr.f32.gmra.mxu0 %v5260_v4  ;;  %v4458_v36 = vadd.f32 %v10868_v11, %v3975_v52  ;;  %v10870_v4 = vld [vmem:[#allocation62_spill] sm:$0xff] }
 0x352   : > { %v5261_v60 = vmax.f32 %v5229_v15, 0.0  ;;  %v5128_v51 = vadd.f32 %v4985_v34, %v4790_v38  ;;  %v5232_v28 = vadd.f32 %v10275_v50, %v5129_v44  ;;  %v3977_v7 = vadd.f32 %v10870_v4, %v10869_v6  ;;  %v10871_v20 = vld [vmem:[#allocation30_spill] sm:$0xff]  ;;  %v10872_v38 = vld [vmem:[#allocation31_spill] sm:$0xff]  ;;  %v4717_v11 = vpop.f32.mrf.mxu0 }
 0x353   : > { %v7683_v48 = vpop.f32.mrf.mxu1  ;;  %v4461_v45 = vadd.f32 %v10871_v20, %v3978_v54  ;;  %v4797_v44 = vadd.f32 %v10293_v56, %v4459_v10  ;;  %v3980_v39 = vadd.f32 %v10873_v1, %v10872_v38  ;;  %v4796_v59 = vadd.f32 %v10305_v23, %v4458_v36  ;;  %v10880_v23 = vld [vmem:[#allocation34_spill] sm:$0xff]  ;;  %v10889_v38 = vld [vmem:[#allocation67_spill] sm:$0xff] }
 0x354   : > { %v5231_v31 = vadd.f32 %v10275_v50, %v5128_v51  ;;  %v5131_v30 = vadd.f32 %v7683_v48, %v4793_v33  ;;  %7835 = vmatprep.mubr.f32.mxu0 %v5261_v60  ;;  %v5264_v32 = vmax.f32 %v5232_v28, 0.0  ;;  %v4460_v14 = vadd.f32 %v10874_v29, %v3977_v7  ;;  %v10875_v33 = vld [vmem:[#allocation33_spill] sm:$0xff]  ;;  %v10883_v49 = vld [vmem:[#allocation54_spill] sm:$0xff] }
 0x355   : > { %v4995_v55 = vpop.f32.mrf.mxu1  ;;  %7836 = vmatmul.mubr.f32.gmra.mxu0 %v5262_v24  ;;  %v3979_v27 = vadd.f32 %v10876_v46, %v10875_v33  ;;  %v4463_v24 = vadd.f32 %v10877_v22, %v3980_v39  ;;  %v4799_v57 = vadd.f32 %v10317_v8, %v4461_v45  ;;  %v10884_v36 = vld [vmem:[#allocation42_spill] sm:$0xff]  ;;  %v10890_v29 = vld [vmem:[#allocation45_spill] sm:$0xff] }
 0x356   : > { %v5263_v2 = vmax.f32 %v5231_v31, 0.0  ;;  %v5130_v16 = vadd.f32 %v4995_v55, %v4792_v0  ;;  %v5234_v40 = vadd.f32 %v10275_v50, %v5131_v30  ;;  %v10878_v31 = vld [vmem:[#allocation37_spill] sm:$0xff]  ;;  %v10879_v30 = vld [vmem:[#allocation36_spill] sm:$0xff] }
 0x357   : > { %v7686_v37 = vpop.f32.mrf.mxu1  ;;  %v3982_v0 = vadd.f32 %v10879_v30, %v10878_v31  ;;  %v4462_v55 = vadd.f32 %v10880_v23, %v3979_v27  ;;  %v10897_v23 = vld [vmem:[#allocation44_spill] sm:$0xff] }
 0x358   : > { %v5233_v53 = vadd.f32 %v10275_v50, %v5130_v16  ;;  %v5133_v17 = vadd.f32 %v7686_v37, %v4795_v25  ;;  %7838 = vmatprep.mubr.f32.mxu1 %v5263_v2  ;;  %v5266_v41 = vmax.f32 %v5234_v40, 0.0  ;;  %v4798_v2 = vadd.f32 %v10329_v3, %v4460_v14  ;;  %v10881_v16 = vld [vmem:[#allocation39_spill] sm:$0xff]  ;;  %v10882_v25 = vld [vmem:[#allocation40_spill] sm:$0xff] }
 0x359   : > { %v5005_v18 = vpop.f32.mrf.mxu1  ;;  %7839 = vmatmul.mubr.f32.vlgmr.msra.gmra.mxu1 %v5264_v32  ;;  %v3981_v35 = vadd.f32 %v10882_v25, %v10881_v16  ;;  %v4465_v54 = vadd.f32 %v10883_v49, %v3982_v0  ;;  %v4801_v37 = vadd.f32 %v10341_v61, %v4463_v24  ;;  %v10886_v3 = vld [vmem:[#allocation56_spill] sm:$0xff]  ;;  %v4800_v45 = vadd.f32 %v10353_v21, %v4462_v55  ;;  %v10891_v14 = vld [vmem:[#allocation35_spill] sm:$0xff]  ;;  %v10892_v21 = vld [vmem:[#allocation57_spill] sm:$0xff] }
 0x35a   : > { %v5265_v42 = vmax.f32 %v5233_v53, 0.0  ;;  %v5132_v15 = vadd.f32 %v5005_v18, %v4794_v47  ;;  %v5236_v34 = vadd.f32 %v10275_v50, %v5133_v17  ;;  %v10885_v53 = vld [vmem:[#allocation8_spill] sm:$0xff]  ;;  %v10893_v24 = vld [vmem:[#allocation14_spill] sm:$0xff]  ;;  %v10899_v49 = vld [vmem:[#allocation55_spill] sm:$0xff] }
 0x35b   : > { %v7689_v5 = vpop.f32.mrf.mxu1  ;;  %v3984_v17 = vadd.f32 %v10885_v53, %v10884_v36  ;;  %v4464_v7 = vadd.f32 %v10886_v3, %v3981_v35 }
 0x35c   : > { %v5235_v60 = vadd.f32 %v10275_v50, %v5132_v15  ;;  %v5135_v51 = vadd.f32 %v7689_v5, %v4797_v44  ;;  %7841 = vmatprep.mubr.f32.mxu1 %v5265_v42  ;;  %v5268_v26 = vmax.f32 %v5236_v34, 0.0  ;;  %v10887_v42 = vld [vmem:[#allocation43_spill] sm:$0xff]  ;;  %v4803_v34 = vadd.f32 %v10365_v13, %v4465_v54  ;;  %v7624_v5 = vpop.f32.mrf.mxu0  ;;  %v10895_v13 = vld [vmem:[#allocation61_spill] sm:$0xff] }
 0x35d   : > { %v5015_v56 = vpop.f32.mrf.mxu1  ;;  %7842 = vmatmul.mubr.f32.gmra.mxu1 %v5266_v41  ;;  %v10888_v15 = vld [vmem:[#allocation27_spill] sm:$0xff]  ;;  %v4467_v1 = vadd.f32 %v10889_v38, %v3984_v17  ;;  %v4802_v22 = vadd.f32 %v4707_v9, %v4464_v7 }
 0x35e   : > { %v5267_v28 = vmax.f32 %v5235_v60, 0.0  ;;  %v5134_v48 = vadd.f32 %v5015_v56, %v4796_v59  ;;  %v5238_v62 = vadd.f32 %v10275_v50, %v5135_v51  ;;  %v3983_v44 = vadd.f32 %v10888_v15, %v10887_v42 }
 0x35f   : > { %v7692_v52 = vpop.f32.mrf.mxu1  ;;  %v3986_v60 = vadd.f32 %v10891_v14, %v10890_v29 }
 0x360   : > { %v5237_v19 = vadd.f32 %v10275_v50, %v5134_v48  ;;  %v5137_v10 = vadd.f32 %v7692_v52, %v4799_v57  ;;  %7844 = vmatprep.mubr.f32.mxu1 %v5267_v28  ;;  %v5270_v47 = vmax.f32 %v5238_v62, 0.0  ;;  %v4466_v46 = vadd.f32 %v10892_v21, %v3983_v44  ;;  %v10894_v28 = vld [vmem:[#allocation41_spill] sm:$0xff]  ;;  %v4727_v62 = vpop.f32.mrf.mxu0  ;;  %v10896_v52 = vld [vmem:[#allocation46_spill] sm:$0xff] }
 0x361   : > { %v5025_v8 = vpop.f32.mrf.mxu1  ;;  %7845 = vmatmul.mubr.f32.gmra.mxu1 %v5268_v26  ;;  %v3985_v48 = vadd.f32 %v10894_v28, %v10893_v24  ;;  %v4469_v31 = vadd.f32 %v10895_v13, %v3986_v60  ;;  %v4805_v26 = vadd.f32 %v7621_v63, %v4467_v1  ;;  %v3988_v55 = vadd.f32 %v10897_v23, %v10896_v52 }
 0x362   : > { %v5269_v32 = vmax.f32 %v5237_v19, 0.0  ;;  %v5136_v40 = vadd.f32 %v5025_v8, %v4798_v2  ;;  %v5240_v6 = vadd.f32 %v10275_v50, %v5137_v10  ;;  %v4804_v35 = vadd.f32 %v4717_v11, %v4466_v46  ;;  %v10898_v8 = vld [vmem:[#allocation47_spill] sm:$0xff]  ;;  %v7627_v53 = vpop.f32.mrf.mxu0 }
 0x363   : > { %v7695_v4 = vpop.f32.mrf.mxu1  ;;  %v4468_v9 = vadd.f32 %v10255_v12, %v3985_v48  ;;  %v3987_v54 = vadd.f32 %v10899_v49, %v10898_v8  ;;  %v4471_v63 = vadd.f32 %v10261_v58, %v3988_v55  ;;  %v4807_v36 = vadd.f32 %v7624_v5, %v4469_v31 }
 0x364   : > { %v5239_v18 = vadd.f32 %v10275_v50, %v5136_v40  ;;  %v5139_v20 = vadd.f32 %v7695_v4, %v4801_v37  ;;  %7847 = vmatprep.mubr.f32.mxu1 %v5269_v32  ;;  %v5272_v51 = vmax.f32 %v5240_v6, 0.0 }
 0x365   : > { %v5035_v61 = vpop.f32.mrf.mxu1  ;;  %7848 = vmatmul.mubr.f32.gmra.mxu1 %v5270_v47  ;;  %v4470_v6 = vadd.f32 %v10265_v43, %v3987_v54  ;;  %v4806_v3 = vadd.f32 %v4727_v62, %v4468_v9  ;;  %v4809_v58 = vadd.f32 %v7627_v53, %v4471_v63 }
 0x366   : > { %v5271_v39 = vmax.f32 %v5239_v18, 0.0  ;;  %v5138_v41 = vadd.f32 %v5035_v61, %v4800_v45  ;;  %v5242_v59 = vadd.f32 %v10275_v50, %v5139_v20  ;;  %v4737_v45 = vpop.f32.mrf.mxu0 }
 0x367   : > { %v7698_v33 = vpop.f32.mrf.mxu1  ;;  %v4808_v43 = vadd.f32 %v4737_v45, %v4470_v6 }
 0x368   : > { %v5241_v27 = vadd.f32 %v10275_v50, %v5138_v41  ;;  %v5141_v56 = vadd.f32 %v7698_v33, %v4803_v34  ;;  %7850 = vmatprep.mubr.f32.mxu1 %v5271_v39  ;;  %v5274_v19 = vmax.f32 %v5242_v59, 0.0 }
 0x369   : > { %v5045_v57 = vpop.f32.mrf.mxu1  ;;  %7851 = vmatmul.mubr.f32.gmra.mxu1 %v5272_v51  ;;  %v7742_v51 = vpop.f32.mrf.mxu0 }
 0x36a   : > { %v5273_v30 = vmax.f32 %v5241_v27, 0.0  ;;  %v5140_v0 = vadd.f32 %v5045_v57, %v4802_v22  ;;  %v5244_v10 = vadd.f32 %v10275_v50, %v5141_v56 }
 0x36b   : > { %v7701_v2 = vpop.f32.mrf.mxu1  ;;  %v5523_v59 = vpop.f32.mrf.mxu0 }
 0x36c   : > { %v5243_v16 = vadd.f32 %v10275_v50, %v5140_v0  ;;  %v5143_v25 = vadd.f32 %v7701_v2, %v4805_v26  ;;  %7853 = vmatprep.mubr.f32.mxu1 %v5273_v30  ;;  %v5276_v17 = vmax.f32 %v5244_v10, 0.0 }
 0x36d   : > { %v5055_v32 = vpop.f32.mrf.mxu1  ;;  %7854 = vmatmul.mubr.f32.gmra.mxu1 %v5274_v19  ;;  %v7745_v33 = vpop.f32.mrf.mxu0 }
 0x36e   : > { %v5275_v40 = vmax.f32 %v5243_v16, 0.0  ;;  %v5142_v37 = vadd.f32 %v5055_v32, %v4804_v35  ;;  %v5246_v47 = vadd.f32 %v10275_v50, %v5143_v25 }
 0x36f   : > { %v7704_v12 = vpop.f32.mrf.mxu1  ;;  %v5533_v21 = vpop.f32.mrf.mxu0 }
 0x370   : > { %v5245_v4 = vadd.f32 %v10275_v50, %v5142_v37  ;;  %v5145_v11 = vadd.f32 %v7704_v12, %v4807_v36  ;;  %7856 = vmatprep.mubr.f32.mxu1 %v5275_v40  ;;  %v5278_v42 = vmax.f32 %v5246_v47, 0.0 }
 0x371   : > { %v5065_v7 = vpop.f32.mrf.mxu1  ;;  %7857 = vmatmul.mubr.f32.gmra.mxu1 %v5276_v17  ;;  %v7748_v46 = vpop.f32.mrf.mxu0 }
 0x372   : > { %v5277_v18 = vmax.f32 %v5245_v4, 0.0  ;;  %v5144_v20 = vadd.f32 %v5065_v7, %v4806_v3  ;;  %v5248_v15 = vadd.f32 %v10275_v50, %v5145_v11 }
 0x373   : > { %v7707_v44 = vpop.f32.mrf.mxu1  ;;  %v5543_v27 = vpop.f32.mrf.mxu0 }
 0x374   : > { %v5247_v61 = vadd.f32 %v10275_v50, %v5144_v20  ;;  %v5147_v38 = vadd.f32 %v7707_v44, %v4809_v58  ;;  %7859 = vmatprep.mubr.f32.mxu1 %v5277_v18  ;;  %v5280_v34 = vmax.f32 %v5248_v15, 0.0 }
 0x375   : > { %v5075_v1 = vpop.f32.mrf.mxu1  ;;  %7860 = vmatmul.mubr.f32.gmra.mxu1 %v5278_v42  ;;  %v7751_v56 = vpop.f32.mrf.mxu0 }
 0x376   : > { %v5279_v39 = vmax.f32 %v5247_v61, 0.0  ;;  %v5146_v41 = vadd.f32 %v5075_v1, %v4808_v43  ;;  %v5250_v5 = vadd.f32 %v10275_v50, %v5147_v38 }
 0x377   : > { %v5553_v22 = vpop.f32.mrf.mxu0 }
 0x378   : > { %v5249_v29 = vadd.f32 %v10275_v50, %v5146_v41  ;;  %7862 = vmatprep.mubr.f32.mxu1 %v5279_v39  ;;  %v5282_v60 = vmax.f32 %v5250_v5, 0.0 }
 0x379   : > { %7863 = vmatmul.mubr.f32.gmra.mxu1 %v5280_v34  ;;  %v7754_v24 = vpop.f32.mrf.mxu0 }
 0x37a   : > { %v5281_v14 = vmax.f32 %v5249_v29, 0.0 }
 0x37b   : > { %v5563_v28 = vpop.f32.mrf.mxu0 }
 0x37c   : > { %7865 = vmatprep.mubr.f32.mxu1 %v5281_v14 }
 0x37d   : > { %7866 = vmatmul.mubr.f32.gmra.mxu1 %v5282_v60  ;;  %v7757_v48 = vpop.f32.mrf.mxu0 }
 0x37f   : > { %v5573_v57 = vpop.f32.mrf.mxu0 }
 0x381   : > { %v7760_v13 = vpop.f32.mrf.mxu0 }
 0x383   : > { %v5583_v50 = vpop.f32.mrf.mxu0 }
 0x385   : > { %v10430_v31 = vpop.f32.mrf.mxu0 }
 0x387   : > { %v10432_v30 = vpop.f32.mrf.mxu0 }
 0x389   : > { %v10434_v0 = vpop.f32.mrf.mxu0 }
 0x38b   : > { %v10436_v26 = vpop.f32.mrf.mxu0 }
 0x38d   : > { %v10438_v62 = vpop.f32.mrf.mxu0 }
 0x38f   : > { %v10440_v52 = vpop.f32.mrf.mxu0 }
 0x391   : > { %v10442_v23 = vpop.f32.mrf.mxu0 }
 0x393   : > { %v10444_v55 = vpop.f32.mrf.mxu0 }
 0x395   : > { %v10446_v19 = vpop.f32.mrf.mxu0 }
 0x397   : > { %v10448_v10 = vpop.f32.mrf.mxu0 }
 0x399   : > { %v10450_v2 = vpop.f32.mrf.mxu0 }
 0x39b   : > { %v10452_v9 = vpop.f32.mrf.mxu0 }
 0x39d   : > { %v10454_v16 = vpop.f32.mrf.mxu0 }
 0x39f   : > { %v10456_v25 = vpop.f32.mrf.mxu0 }
 0x3a1   : > { %v10458_v35 = vpop.f32.mrf.mxu0 }
 0x3a3   : > { %v10460_v8 = vpop.f32.mrf.mxu0 }
 0x3a5   : > { %v10462_v49 = vpop.f32.mrf.mxu0 }
 0x3a7   : > { %v10464_v54 = vpop.f32.mrf.mxu0 }
 0x401   : > { %v7822_v32 = vpop.f32.mrf.mxu0 }
 0x402   : > { %v5754_v63 = vadd.f32 %v7822_v32, %v7742_v51 }
 0x403   : > { %v5748_v40 = vpop.f32.mrf.mxu0 }
 0x404   : > { %5908 = vst [vmem:[%s10470_s24 + $0x8] sm:$0xff] %v5754_v63  ;;  %v5749_v37 = vadd.f32 %v5748_v40, %v5523_v59 }
 0x405   : > { %v7825_v36 = vpop.f32.mrf.mxu0 }
 0x406   : > { %5907 = vst [vmem:[%s10470_s24] sm:$0xff] %v5749_v37  ;;  %v5764_v53 = vadd.f32 %v7825_v36, %v7745_v33 }
 0x407   : > { %v5758_v17 = vpop.f32.mrf.mxu0 }
 0x408   : > { %5910 = vst [vmem:[%s10470_s24 + $0x18] sm:$0xff] %v5764_v53  ;;  %v5759_v47 = vadd.f32 %v5758_v17, %v5533_v21 }
 0x409   : > { %v7828_v12 = vpop.f32.mrf.mxu0 }
 0x40a   : > { %5909 = vst [vmem:[%s10470_s24 + $0x10] sm:$0xff] %v5759_v47  ;;  %v5774_v6 = vadd.f32 %v7828_v12, %v7748_v46 }
 0x40b   : > { %v5768_v4 = vpop.f32.mrf.mxu0 }
 0x40c   : > { %5912 = vst [vmem:[%s10470_s24 + $0x28] sm:$0xff] %v5774_v6  ;;  %v5769_v11 = vadd.f32 %v5768_v4, %v5543_v27 }
 0x40d   : > { %v7831_v3 = vpop.f32.mrf.mxu0 }
 0x40e   : > { %5911 = vst [vmem:[%s10470_s24 + $0x20] sm:$0xff] %v5769_v11  ;;  %v5784_v7 = vadd.f32 %v7831_v3, %v7751_v56 }
 0x40f   : > { %v5778_v18 = vpop.f32.mrf.mxu0 }
 0x410   : > { %5914 = vst [vmem:[%s10470_s24 + $0x38] sm:$0xff] %v5784_v7  ;;  %v5779_v20 = vadd.f32 %v5778_v18, %v5553_v22 }
 0x411   : > { %v7834_v58 = vpop.f32.mrf.mxu0 }
 0x412   : > { %5913 = vst [vmem:[%s10470_s24 + $0x30] sm:$0xff] %v5779_v20  ;;  %v5794_v45 = vadd.f32 %v7834_v58, %v7754_v24 }
 0x413   : > { %v5788_v42 = vpop.f32.mrf.mxu0 }
 0x414   : > { %5916 = vst [vmem:[%s10470_s24 + $0x48] sm:$0xff] %v5794_v45  ;;  %v5789_v15 = vadd.f32 %v5788_v42, %v5563_v28 }
 0x415   : > { %v7837_v44 = vpop.f32.mrf.mxu0 }
 0x416   : > { %5915 = vst [vmem:[%s10470_s24 + $0x40] sm:$0xff] %v5789_v15  ;;  %v5804_v61 = vadd.f32 %v7837_v44, %v7757_v48 }
 0x417   : > { %v5798_v38 = vpop.f32.mrf.mxu0 }
 0x418   : > { %5918 = vst [vmem:[%s10470_s24 + $0x58] sm:$0xff] %v5804_v61  ;;  %v5799_v43 = vadd.f32 %v5798_v38, %v5573_v57 }
 0x419   : > { %v7840_v1 = vpop.f32.mrf.mxu1 }
 0x41a   : > { %5917 = vst [vmem:[%s10470_s24 + $0x50] sm:$0xff] %v5799_v43  ;;  %v5814_v39 = vadd.f32 %v7840_v1, %v7760_v13 }
 0x41b   : > { %v5808_v41 = vpop.f32.mrf.mxu1 }
 0x41c   : > { %5920 = vst [vmem:[%s10470_s24 + $0x68] sm:$0xff] %v5814_v39  ;;  %v5809_v34 = vadd.f32 %v5808_v41, %v5583_v50 }
 0x41d   : > { %v7843_v5 = vpop.f32.mrf.mxu1 }
 0x41e   : > { %5919 = vst [vmem:[%s10470_s24 + $0x60] sm:$0xff] %v5809_v34  ;;  %v5824_v29 = vadd.f32 %v7843_v5, %v10430_v31 }
 0x41f   : > { %v5818_v14 = vpop.f32.mrf.mxu1 }
 0x420   : > { %5922 = vst [vmem:[%s10470_s24 + $0x78] sm:$0xff] %v5824_v29  ;;  %v5819_v60 = vadd.f32 %v5818_v14, %v10432_v30 }
 0x421   : > { %v7846_v51 = vpop.f32.mrf.mxu1 }
 0x422   : > { %5921 = vst [vmem:[%s10470_s24 + $0x70] sm:$0xff] %v5819_v60  ;;  %v5834_v59 = vadd.f32 %v7846_v51, %v10434_v0 }
 0x423   : > { %v5828_v33 = vpop.f32.mrf.mxu1 }
 0x424   : > { %5924 = vst [vmem:[%s10470_s24 + $0x88] sm:$0xff] %v5834_v59  ;;  %v5829_v21 = vadd.f32 %v5828_v33, %v10436_v26 }
 0x425   : > { %v7849_v46 = vpop.f32.mrf.mxu1 }
 0x426   : > { %5923 = vst [vmem:[%s10470_s24 + $0x80] sm:$0xff] %v5829_v21  ;;  %v5844_v27 = vadd.f32 %v7849_v46, %v10438_v62 }
 0x427   : > { %v5838_v56 = vpop.f32.mrf.mxu1 }
 0x428   : > { %5926 = vst [vmem:[%s10470_s24 + $0x98] sm:$0xff] %v5844_v27  ;;  %v5839_v22 = vadd.f32 %v5838_v56, %v10440_v52 }
 0x429   : > { %v7852_v24 = vpop.f32.mrf.mxu1 }
 0x42a   : > { %5925 = vst [vmem:[%s10470_s24 + $0x90] sm:$0xff] %v5839_v22  ;;  %v5854_v28 = vadd.f32 %v7852_v24, %v10442_v23 }
 0x42b   : > { %v5848_v48 = vpop.f32.mrf.mxu1 }
 0x42c   : > { %5928 = vst [vmem:[%s10470_s24 + $0xa8] sm:$0xff] %v5854_v28  ;;  %v5849_v57 = vadd.f32 %v5848_v48, %v10444_v55 }
 0x42d   : > { %v7855_v13 = vpop.f32.mrf.mxu1 }
 0x42e   : > { %5927 = vst [vmem:[%s10470_s24 + $0xa0] sm:$0xff] %v5849_v57  ;;  %v5864_v50 = vadd.f32 %v7855_v13, %v10446_v19 }
 0x42f   : > { %v5858_v31 = vpop.f32.mrf.mxu1 }
 0x430   : > { %5930 = vst [vmem:[%s10470_s24 + $0xb8] sm:$0xff] %v5864_v50  ;;  %v5859_v30 = vadd.f32 %v5858_v31, %v10448_v10 }
 0x431   : > { %v7858_v0 = vpop.f32.mrf.mxu1 }
 0x432   : > { %5929 = vst [vmem:[%s10470_s24 + $0xb0] sm:$0xff] %v5859_v30  ;;  %v5874_v26 = vadd.f32 %v7858_v0, %v10450_v2 }
 0x433   : > { %v5868_v62 = vpop.f32.mrf.mxu1 }
 0x434   : > { %5932 = vst [vmem:[%s10470_s24 + $0xc8] sm:$0xff] %v5874_v26  ;;  %v5869_v52 = vadd.f32 %v5868_v62, %v10452_v9 }
 0x435   : > { %v7861_v23 = vpop.f32.mrf.mxu1 }
 0x436   : > { %5931 = vst [vmem:[%s10470_s24 + $0xc0] sm:$0xff] %v5869_v52  ;;  %v5884_v55 = vadd.f32 %v7861_v23, %v10454_v16 }
 0x437   : > { %v5878_v19 = vpop.f32.mrf.mxu1 }
 0x438   : > { %5934 = vst [vmem:[%s10470_s24 + $0xd8] sm:$0xff] %v5884_v55  ;;  %v5879_v10 = vadd.f32 %v5878_v19, %v10456_v25 }
 0x439   : > { %v7864_v32 = vpop.f32.mrf.mxu1 }
 0x43a   : > { %5933 = vst [vmem:[%s10470_s24 + $0xd0] sm:$0xff] %v5879_v10  ;;  %v5894_v63 = vadd.f32 %v7864_v32, %v10458_v35 }
 0x43b   : > { %v5888_v2 = vpop.f32.mrf.mxu1 }
 0x43c   : > { %5936 = vst [vmem:[%s10470_s24 + $0xe8] sm:$0xff] %v5894_v63  ;;  %v5889_v40 = vadd.f32 %v5888_v2, %v10460_v8 }
 0x43d   : > { %v7867_v37 = vpop.f32.mrf.mxu1 }
 0x43e   : > { %5935 = vst [vmem:[%s10470_s24 + $0xe0] sm:$0xff] %v5889_v40  ;;  %v5904_v9 = vadd.f32 %v7867_v37, %v10462_v49 }
 0x43f   : > { %v5898_v36 = vpop.f32.mrf.mxu1 }
 0x440   : > { %5938 = vst [vmem:[%s10470_s24 + $0xf8] sm:$0xff] %v5904_v9  ;;  %v5899_v16 = vadd.f32 %v5898_v36, %v10464_v54 }
 0x442   : > { %5937 = vst [vmem:[%s10470_s24 + $0xf0] sm:$0xff] %v5899_v16 }
 0x443 PF: > { %s23_s27 = sadd.s32 1, %s7947_s27   ;;  %s10900_s25 = smov %s7943_s26 }
 0x444   : > { %p20_p5 = scmp.ge.s32.totalorder %s23_s27, 4   ;;  %s10901_s26 = smov %s10903_s28 }
 0x446   :  { %22 = sbr.rel (!%p20_p5) target bundleno = 2 (0x2), region = 116 }

</bundles_post_ra>
